<compile_context>
chip_gen: v6e
topology: v6e:2x2x1
jax: 0.10.0
libtpu: 0.0.40
codegen_flags: <defaults>
</compile_context>

<pallas_src>
import functools
import math

import jax
import jax.numpy as jnp
from jax.experimental import pallas as pl
from jax.experimental.pallas import tpu as pltpu


# ------------------------------ fused kernel --------------------------------

def _forward_kernel(x_ref, ew_ref, eb_ref,
                    wqkv_ref, bqkv_ref, wo_ref, bo_ref,
                    g1_ref, b1_ref, g2_ref, b2_ref,
                    w1_ref, bf1_ref, w2_ref, bf2_ref,
                    fw_ref, fb_ref, o_ref, *, eps, nhead, batch, seq):
    f32 = jnp.float32
    bf16 = jnp.bfloat16
    num_layers = wqkv_ref.shape[0]
    d = ew_ref.shape[1]
    dh = d // nhead

    def matmul(a, w):                       # a @ w, f32 accumulation on the MXU
        return jax.lax.dot_general(a, w, (((1,), (0,)), ((), ())),
                                   preferred_element_type=f32)

    def matmul_t(a, b):                     # a @ b.T without an explicit transpose
        return jax.lax.dot_general(a, b, (((1,), (1,)), ((), ())),
                                   preferred_element_type=f32)

    def layernorm(v, g, b):                 # all vector math in f32 (v5e-safe)
        mu = jnp.mean(v, axis=-1, keepdims=True)
        c = v - mu
        var = jnp.mean(c * c, axis=-1, keepdims=True)
        return c * jax.lax.rsqrt(var + eps) * g + b

    # ---- embedding over all B*S rows at once (tiny; kept f32) ----
    h = matmul(x_ref[...], ew_ref[...]) + eb_ref[...]            # (B*S, d) f32

    for l in range(num_layers):                                  # statically unrolled
        # ---- fused QKV projection for the whole batch (bf16 MXU, f32 acc) ----
        qkv = matmul(h.astype(bf16), wqkv_ref[l]) + bqkv_ref[l]  # (B*S, 3d) f32

        # ---- per-batch-element attention; heads via static lane slices ----
        ctx_rows = []
        for b in range(batch):
            r0 = b * seq
            head_outs = []
            for hd in range(nhead):
                c0 = hd * dh
                q = qkv[r0:r0 + seq, c0:c0 + dh]          # 1/sqrt(dh) pre-folded
                k = qkv[r0:r0 + seq, d + c0:d + c0 + dh]
                v = qkv[r0:r0 + seq, 2 * d + c0:2 * d + c0 + dh]
                s = matmul_t(q.astype(bf16), k.astype(bf16))     # (S, S) f32
                m = jnp.max(s, axis=-1, keepdims=True)
                p = jnp.exp(s - m)                               # f32 softmax
                p = p * pl.reciprocal(jnp.sum(p, axis=-1, keepdims=True),
                                      approx=True)
                head_outs.append(matmul(p.astype(bf16), v.astype(bf16)))  # (S, dh)
            ctx_rows.append(jnp.concatenate(head_outs, axis=-1))          # (S, d)
        ctx = jnp.concatenate(ctx_rows, axis=0)                           # (B*S, d)

        # ---- single full-width output projection for the whole batch ----
        attn = matmul(ctx.astype(bf16), wo_ref[l]) + bo_ref[l]
        # dropout(p=0.1) is identity at inference
        h = layernorm(h + attn, g1_ref[l], b1_ref[l])

        # ---- feed-forward; (B*S, dim_ff) intermediate never leaves VMEM ----
        ff = jnp.maximum(matmul(h.astype(bf16), w1_ref[l]) + bf1_ref[l], 0.0)
        ff = matmul(ff.astype(bf16), w2_ref[l]) + bf2_ref[l]
        h = layernorm(h + ff, g2_ref[l], b2_ref[l])

    # ---- last timestep per batch element + lane-dense (128-padded) fc ----
    last = jnp.concatenate(
        [h[b * seq + seq - 1: b * seq + seq, :] for b in range(batch)], axis=0)
    # dropout(p=0.3) is identity at inference
    o_ref[...] = (matmul(last, fw_ref[...]) + fb_ref[...]).astype(o_ref.dtype)


_WEIGHT_NAMES = ("embed_w", "embed_b",
                 "w_qkv", "b_qkv", "w_out", "b_out",
                 "ln1_g", "ln1_b", "ln2_g", "ln2_b",
                 "w_ff1", "b_ff1", "w_ff2", "b_ff2",
                 "fc_w", "fc_b")


def forward(x, kp, *, nhead, out_size):
    """x: (B, S, input_size); kp: kernel-ready params from prepare_params."""
    B, S, in_size = x.shape
    x2 = x.reshape(B * S, in_size)              # host-side; zero-cost collapse
    weights = [kp[n] for n in _WEIGHT_NAMES]
    out_pad = kp["fc_w"].shape[1]               # lane-dense padded output width

    def full_spec(a):
        # Whole-array VMEM residency; constant index map -> DMA'd exactly once.
        return pl.BlockSpec(a.shape, lambda i, _nd=a.ndim: (0,) * _nd)

    out = pl.pallas_call(
        functools.partial(_forward_kernel, eps=1e-5, nhead=nhead, batch=B, seq=S),
        out_shape=jax.ShapeDtypeStruct((B, out_pad), jnp.float32),
        grid=(1,),                               # whole batch in one invocation
        in_specs=[full_spec(x2)] + [full_spec(w) for w in weights],
        out_specs=pl.BlockSpec((B, out_pad), lambda i: (0, 0)),
        compiler_params=pltpu.CompilerParams(
            dimension_semantics=("arbitrary",),
            vmem_limit_bytes=32 * 1024 * 1024,   # usage ~1.5 MiB; safe on all gens
        ),
    )(x2, *weights)
    return out[:, :out_size].astype(x.dtype)


# --------------------- parameter prep (one-time, host side) ------------------

def prepare_params(params, nhead):
    """Stack per-layer params into kernel-ready slabs: fused QKV weight with the
    1/sqrt(dh) scale folded into the Q columns, bf16 matmul weights (f32 biases /
    LN params), and a lane-dense (128-padded) final fc."""
    bf16 = jnp.bfloat16
    d = params["embed_w"].shape[1]
    dh = d // nhead
    L = len(params["layers"])
    scale = 1.0 / math.sqrt(dh)

    def stack(name):
        return jnp.stack([lp[name] for lp in params["layers"]])

    w_qkv = stack("w_qkv")                                   # (L, d, 3d)
    b_qkv = stack("b_qkv")                                   # (L, 3d)
    w_qkv = w_qkv.at[:, :, :d].multiply(scale)               # fold softmax scale
    b_qkv = b_qkv.at[:, :d].multiply(scale)

    fc_w = params["fc_w"]                                    # (d, out)
    out_size = fc_w.shape[1]
    out_pad = ((out_size + 127) // 128) * 128                # lane-dense fc
    fc_w_p = jnp.pad(fc_w, ((0, 0), (0, out_pad - out_size)))
    fc_b_p = jnp.pad(params["fc_b"], (0, out_pad - out_size)).reshape(1, out_pad)

    return dict(
        embed_w=params["embed_w"],                           # f32 (tiny)
        embed_b=params["embed_b"].reshape(1, d),
        w_qkv=w_qkv.astype(bf16),                            # (L, d, 3d) bf16
        b_qkv=b_qkv.reshape(L, 1, 3 * d),                    # f32
        w_out=stack("w_out").astype(bf16),                   # (L, d, d) bf16
        b_out=stack("b_out").reshape(L, 1, d),
        ln1_g=stack("ln1_g").reshape(L, 1, d),
        ln1_b=stack("ln1_b").reshape(L, 1, d),
        ln2_g=stack("ln2_g").reshape(L, 1, d),
        ln2_b=stack("ln2_b").reshape(L, 1, d),
        w_ff1=stack("w_ff1").astype(bf16),                   # (L, d, ff) bf16
        b_ff1=stack("b_ff1")[:, None, :],
        w_ff2=stack("w_ff2").astype(bf16),                   # (L, ff, d) bf16
        b_ff2=stack("b_ff2")[:, None, :],
        fc_w=fc_w_p,                                         # f32 (d, 128)
        fc_b=fc_b_p,
    )


# --------------------------- deterministic params ---------------------------

def init_params(key, input_size, d_model, num_layers, dim_ff, output_size):
    def dense(k, fan_in, fan_out):
        kw, kb = jax.random.split(k)
        lim = 1.0 / math.sqrt(fan_in)
        w = jax.random.uniform(kw, (fan_in, fan_out), jnp.float32, -lim, lim)
        b = jax.random.uniform(kb, (fan_out,), jnp.float32, -lim, lim)
        return w, b

    keys = jax.random.split(key, num_layers + 2)
    embed_w, embed_b = dense(keys[0], input_size, d_model)
    fc_w, fc_b = dense(keys[1], d_model, output_size)
    layers = []
    for i in range(num_layers):
        lk = jax.random.split(keys[2 + i], 4)
        w_qkv, b_qkv = dense(lk[0], d_model, 3 * d_model)
        w_out, b_out = dense(lk[1], d_model, d_model)
        w_ff1, b_ff1 = dense(lk[2], d_model, dim_ff)
        w_ff2, b_ff2 = dense(lk[3], dim_ff, d_model)
        layers.append(dict(
            w_qkv=w_qkv, b_qkv=b_qkv, w_out=w_out, b_out=b_out,
            w_ff1=w_ff1, b_ff1=b_ff1, w_ff2=w_ff2, b_ff2=b_ff2,
            ln1_g=jnp.ones((d_model,), jnp.float32), ln1_b=jnp.zeros((d_model,), jnp.float32),
            ln2_g=jnp.ones((d_model,), jnp.float32), ln2_b=jnp.zeros((d_model,), jnp.float32)))
    return dict(embed_w=embed_w, embed_b=embed_b, fc_w=fc_w, fc_b=fc_b, layers=layers)


# ------------------------------ pure-JAX reference ---------------------------

def ref_forward(x, params, nhead):
    def lin(t, w, b):
        return t @ w + b

    def ln(t, g, bt):
        mu = t.mean(-1, keepdims=True)
        var = ((t - mu) ** 2).mean(-1, keepdims=True)
        return (t - mu) / jnp.sqrt(var + 1e-5) * g + bt

    b, s, _ = x.shape
    d = params["embed_w"].shape[1]
    dh = d // nhead
    h = lin(x, params["embed_w"], params["embed_b"])
    for p in params["layers"]:
        qkv = lin(h, p["w_qkv"], p["b_qkv"])
        q, k, v = jnp.split(qkv, 3, -1)

        def heads(t):
            return t.reshape(b, s, nhead, dh).transpose(0, 2, 1, 3)

        qh, kh, vh = heads(q), heads(k), heads(v)
        sc = jnp.einsum("bhqd,bhkd->bhqk", qh, kh) / math.sqrt(dh)
        pr = jax.nn.softmax(sc, -1)
        o = jnp.einsum("bhqk,bhkd->bhqd", pr, vh).transpose(0, 2, 1, 3).reshape(b, s, d)
        o = lin(o, p["w_out"], p["b_out"])
        h = ln(h + o, p["ln1_g"], p["ln1_b"])
        ff = lin(jnp.maximum(lin(h, p["w_ff1"], p["b_ff1"]), 0.0), p["w_ff2"], p["b_ff2"])
        h = ln(h + ff, p["ln2_g"], p["ln2_b"])
    return lin(h[:, -1, :], params["fc_w"], params["fc_b"])


# ----------------------------------- main ------------------------------------

if __name__ == "__main__":
    # small config consistent with the module's constructor signature
    BATCH = 2
    N_STEPS = 8          # sequence length
    INPUT_SIZE = 4
    D_MODEL = 32
    NHEAD = 4
    NUM_LAYERS = 2
    OUTPUT_SIZE = 1
    DIM_FF = 2048        # nn.TransformerEncoderLayer default dim_feedforward

    key = jax.random.PRNGKey(0)
    kx, kp = jax.random.split(key)
    x = jax.random.normal(kx, (BATCH, N_STEPS, INPUT_SIZE), jnp.float32)
    params = init_params(kp, INPUT_SIZE, D_MODEL, NUM_LAYERS, DIM_FF, OUTPUT_SIZE)
    kparams = prepare_params(params, NHEAD)

    fwd = jax.jit(functools.partial(forward, nhead=NHEAD, out_size=OUTPUT_SIZE))
    out = jax.block_until_ready(fwd(x, kparams))

    assert out.shape == (BATCH, OUTPUT_SIZE), out.shape
    assert bool(jnp.all(jnp.isfinite(out)))
    ref = ref_forward(x, params, NHEAD)
    assert bool(jnp.allclose(out, ref, atol=5e-2, rtol=5e-2)), (out, ref)

    print("KERNEL_OK")
</pallas_src>

<mosaic_0001>
module attributes {stable_mosaic.version = 11 : i64} {
  func.func @_forward_kernel(%arg0: i32, %arg1: memref<16x4xf32, #tpu.memory_space<vmem>>, %arg2: memref<4x32xf32, #tpu.memory_space<vmem>>, %arg3: memref<1x32xf32, #tpu.memory_space<vmem>>, %arg4: memref<2x32x96xbf16, #tpu.memory_space<vmem>>, %arg5: memref<2x1x96xf32, #tpu.memory_space<vmem>>, %arg6: memref<2x32x32xbf16, #tpu.memory_space<vmem>>, %arg7: memref<2x1x32xf32, #tpu.memory_space<vmem>>, %arg8: memref<2x1x32xf32, #tpu.memory_space<vmem>>, %arg9: memref<2x1x32xf32, #tpu.memory_space<vmem>>, %arg10: memref<2x1x32xf32, #tpu.memory_space<vmem>>, %arg11: memref<2x1x32xf32, #tpu.memory_space<vmem>>, %arg12: memref<2x32x2048xbf16, #tpu.memory_space<vmem>>, %arg13: memref<2x1x2048xf32, #tpu.memory_space<vmem>>, %arg14: memref<2x2048x32xbf16, #tpu.memory_space<vmem>>, %arg15: memref<2x1x32xf32, #tpu.memory_space<vmem>>, %arg16: memref<32x128xf32, #tpu.memory_space<vmem>>, %arg17: memref<1x128xf32, #tpu.memory_space<vmem>>, %arg18: memref<2x128xf32, #tpu.memory_space<vmem>>) attributes {dimension_semantics = [#tpu.dimension_semantics<arbitrary>], iteration_bounds = array<i64: 1>, scalar_prefetch = 0 : i64, scratch_operands = 0 : i64, tpu.core_type = #tpu.core_type<tc>, window_params = [{pipeline_mode = #tpu.pipeline_mode<synchronous>, transform_indices = @transform_0, window_bounds = array<i64: 16, 4>}, {pipeline_mode = #tpu.pipeline_mode<synchronous>, transform_indices = @transform_1, window_bounds = array<i64: 4, 32>}, {pipeline_mode = #tpu.pipeline_mode<synchronous>, transform_indices = @transform_2, window_bounds = array<i64: 1, 32>}, {pipeline_mode = #tpu.pipeline_mode<synchronous>, transform_indices = @transform_3, window_bounds = array<i64: 2, 32, 96>}, {pipeline_mode = #tpu.pipeline_mode<synchronous>, transform_indices = @transform_4, window_bounds = array<i64: 2, 1, 96>}, {pipeline_mode = #tpu.pipeline_mode<synchronous>, transform_indices = @transform_5, window_bounds = array<i64: 2, 32, 32>}, {pipeline_mode = #tpu.pipeline_mode<synchronous>, transform_indices = @transform_6, window_bounds = array<i64: 2, 1, 32>}, {pipeline_mode = #tpu.pipeline_mode<synchronous>, transform_indices = @transform_7, window_bounds = array<i64: 2, 1, 32>}, {pipeline_mode = #tpu.pipeline_mode<synchronous>, transform_indices = @transform_8, window_bounds = array<i64: 2, 1, 32>}, {pipeline_mode = #tpu.pipeline_mode<synchronous>, transform_indices = @transform_9, window_bounds = array<i64: 2, 1, 32>}, {pipeline_mode = #tpu.pipeline_mode<synchronous>, transform_indices = @transform_10, window_bounds = array<i64: 2, 1, 32>}, {pipeline_mode = #tpu.pipeline_mode<synchronous>, transform_indices = @transform_11, window_bounds = array<i64: 2, 32, 2048>}, {pipeline_mode = #tpu.pipeline_mode<synchronous>, transform_indices = @transform_12, window_bounds = array<i64: 2, 1, 2048>}, {pipeline_mode = #tpu.pipeline_mode<synchronous>, transform_indices = @transform_13, window_bounds = array<i64: 2, 2048, 32>}, {pipeline_mode = #tpu.pipeline_mode<synchronous>, transform_indices = @transform_14, window_bounds = array<i64: 2, 1, 32>}, {pipeline_mode = #tpu.pipeline_mode<synchronous>, transform_indices = @transform_15, window_bounds = array<i64: 32, 128>}, {pipeline_mode = #tpu.pipeline_mode<synchronous>, transform_indices = @transform_16, window_bounds = array<i64: 1, 128>}, {pipeline_mode = #tpu.pipeline_mode<synchronous>, transform_indices = @transform_17, window_bounds = array<i64: 2, 128>}]} {
    %c0 = arith.constant 0 : index
    %c0_0 = arith.constant 0 : index
    %0 = vector.load %arg1[%c0, %c0_0] : memref<16x4xf32, #tpu.memory_space<vmem>>, vector<16x4xf32>
    %c0_1 = arith.constant 0 : index
    %c0_2 = arith.constant 0 : index
    %1 = vector.load %arg2[%c0_1, %c0_2] : memref<4x32xf32, #tpu.memory_space<vmem>>, vector<4x32xf32>
    %cst = arith.constant dense<0.000000e+00> : vector<16x32xf32>
    %2 = tpu.matmul %0, %1, %cst {dimension_numbers = #tpu.dot_dimension_numbers<[1], [0], [0], [1], [0, 0, 1, 1], [], []>} : vector<16x4xf32>, vector<4x32xf32>, vector<16x32xf32> -> vector<16x32xf32>
    %c0_3 = arith.constant 0 : index
    %c0_4 = arith.constant 0 : index
    %3 = vector.load %arg3[%c0_3, %c0_4] : memref<1x32xf32, #tpu.memory_space<vmem>>, vector<1x32xf32>
    %4 = vector.broadcast %3 : vector<1x32xf32> to vector<16x32xf32>
    %5 = arith.addf %2, %4 : vector<16x32xf32>
    %6 = arith.truncf %5 : vector<16x32xf32> to vector<16x32xbf16>
    %c0_5 = arith.constant 0 : index
    %c0_6 = arith.constant 0 : index
    %c0_7 = arith.constant 0 : index
    %7 = vector.load %arg4[%c0_5, %c0_6, %c0_7] : memref<2x32x96xbf16, #tpu.memory_space<vmem>>, vector<1x32x96xbf16>
    %8 = vector.shape_cast %7 : vector<1x32x96xbf16> to vector<32x96xbf16>
    %cst_8 = arith.constant dense<0.000000e+00> : vector<16x96xf32>
    %9 = tpu.matmul %6, %8, %cst_8 {dimension_numbers = #tpu.dot_dimension_numbers<[1], [0], [0], [1], [0, 0, 1, 1], [], []>} : vector<16x32xbf16>, vector<32x96xbf16>, vector<16x96xf32> -> vector<16x96xf32>
    %c0_9 = arith.constant 0 : index
    %c0_10 = arith.constant 0 : index
    %c0_11 = arith.constant 0 : index
    %10 = vector.load %arg5[%c0_9, %c0_10, %c0_11] : memref<2x1x96xf32, #tpu.memory_space<vmem>>, vector<1x1x96xf32>
    %11 = vector.shape_cast %10 : vector<1x1x96xf32> to vector<1x96xf32>
    %12 = vector.broadcast %11 : vector<1x96xf32> to vector<16x96xf32>
    %13 = arith.addf %9, %12 : vector<16x96xf32>
    %14 = vector.extract_strided_slice %13 {offsets = [0, 0], sizes = [8, 8], strides = [1, 1]} : vector<16x96xf32> to vector<8x8xf32>
    %15 = vector.extract_strided_slice %13 {offsets = [0, 32], sizes = [8, 8], strides = [1, 1]} : vector<16x96xf32> to vector<8x8xf32>
    %16 = vector.extract_strided_slice %13 {offsets = [0, 64], sizes = [8, 8], strides = [1, 1]} : vector<16x96xf32> to vector<8x8xf32>
    %17 = arith.truncf %14 : vector<8x8xf32> to vector<8x8xbf16>
    %18 = arith.truncf %15 : vector<8x8xf32> to vector<8x8xbf16>
    %cst_12 = arith.constant dense<0.000000e+00> : vector<8x8xf32>
    %19 = tpu.matmul %17, %18, %cst_12 {dimension_numbers = #tpu.dot_dimension_numbers<[1], [1], [0], [0], [0, 0, 1, 0], [], []>} : vector<8x8xbf16>, vector<8x8xbf16>, vector<8x8xf32> -> vector<8x8xf32>
    %cst_13 = arith.constant dense<0xFF800000> : vector<8xf32>
    %20 = vector.multi_reduction <maximumf>, %19, %cst_13 [1] : vector<8x8xf32> to vector<8xf32>
    %21 = vector.shape_cast %20 : vector<8xf32> to vector<8x1xf32>
    %22 = vector.broadcast %21 : vector<8x1xf32> to vector<8x8xf32>
    %23 = arith.subf %19, %22 : vector<8x8xf32>
    %24 = math.exp %23 : vector<8x8xf32>
    %cst_14 = arith.constant dense<0.000000e+00> : vector<8xf32>
    %25 = vector.multi_reduction <add>, %24, %cst_14 [1] : vector<8x8xf32> to vector<8xf32>
    %26 = vector.shape_cast %25 : vector<8xf32> to vector<8x1xf32>
    %27 = tpu.reciprocal %26 {approx = true} : vector<8x1xf32> -> vector<8x1xf32>
    %28 = vector.broadcast %27 : vector<8x1xf32> to vector<8x8xf32>
    %29 = arith.mulf %24, %28 : vector<8x8xf32>
    %30 = arith.truncf %29 : vector<8x8xf32> to vector<8x8xbf16>
    %31 = arith.truncf %16 : vector<8x8xf32> to vector<8x8xbf16>
    %cst_15 = arith.constant dense<0.000000e+00> : vector<8x8xf32>
    %32 = tpu.matmul %30, %31, %cst_15 {dimension_numbers = #tpu.dot_dimension_numbers<[1], [0], [0], [1], [0, 0, 1, 1], [], []>} : vector<8x8xbf16>, vector<8x8xbf16>, vector<8x8xf32> -> vector<8x8xf32>
    %33 = vector.extract_strided_slice %13 {offsets = [0, 8], sizes = [8, 8], strides = [1, 1]} : vector<16x96xf32> to vector<8x8xf32>
    %34 = vector.extract_strided_slice %13 {offsets = [0, 40], sizes = [8, 8], strides = [1, 1]} : vector<16x96xf32> to vector<8x8xf32>
    %35 = vector.extract_strided_slice %13 {offsets = [0, 72], sizes = [8, 8], strides = [1, 1]} : vector<16x96xf32> to vector<8x8xf32>
    %36 = arith.truncf %33 : vector<8x8xf32> to vector<8x8xbf16>
    %37 = arith.truncf %34 : vector<8x8xf32> to vector<8x8xbf16>
    %cst_16 = arith.constant dense<0.000000e+00> : vector<8x8xf32>
    %38 = tpu.matmul %36, %37, %cst_16 {dimension_numbers = #tpu.dot_dimension_numbers<[1], [1], [0], [0], [0, 0, 1, 0], [], []>} : vector<8x8xbf16>, vector<8x8xbf16>, vector<8x8xf32> -> vector<8x8xf32>
    %cst_17 = arith.constant dense<0xFF800000> : vector<8xf32>
    %39 = vector.multi_reduction <maximumf>, %38, %cst_17 [1] : vector<8x8xf32> to vector<8xf32>
    %40 = vector.shape_cast %39 : vector<8xf32> to vector<8x1xf32>
    %41 = vector.broadcast %40 : vector<8x1xf32> to vector<8x8xf32>
    %42 = arith.subf %38, %41 : vector<8x8xf32>
    %43 = math.exp %42 : vector<8x8xf32>
    %cst_18 = arith.constant dense<0.000000e+00> : vector<8xf32>
    %44 = vector.multi_reduction <add>, %43, %cst_18 [1] : vector<8x8xf32> to vector<8xf32>
    %45 = vector.shape_cast %44 : vector<8xf32> to vector<8x1xf32>
    %46 = tpu.reciprocal %45 {approx = true} : vector<8x1xf32> -> vector<8x1xf32>
    %47 = vector.broadcast %46 : vector<8x1xf32> to vector<8x8xf32>
    %48 = arith.mulf %43, %47 : vector<8x8xf32>
    %49 = arith.truncf %48 : vector<8x8xf32> to vector<8x8xbf16>
    %50 = arith.truncf %35 : vector<8x8xf32> to vector<8x8xbf16>
    %cst_19 = arith.constant dense<0.000000e+00> : vector<8x8xf32>
    %51 = tpu.matmul %49, %50, %cst_19 {dimension_numbers = #tpu.dot_dimension_numbers<[1], [0], [0], [1], [0, 0, 1, 1], [], []>} : vector<8x8xbf16>, vector<8x8xbf16>, vector<8x8xf32> -> vector<8x8xf32>
    %52 = vector.extract_strided_slice %13 {offsets = [0, 16], sizes = [8, 8], strides = [1, 1]} : vector<16x96xf32> to vector<8x8xf32>
    %53 = vector.extract_strided_slice %13 {offsets = [0, 48], sizes = [8, 8], strides = [1, 1]} : vector<16x96xf32> to vector<8x8xf32>
    %54 = vector.extract_strided_slice %13 {offsets = [0, 80], sizes = [8, 8], strides = [1, 1]} : vector<16x96xf32> to vector<8x8xf32>
    %55 = arith.truncf %52 : vector<8x8xf32> to vector<8x8xbf16>
    %56 = arith.truncf %53 : vector<8x8xf32> to vector<8x8xbf16>
    %cst_20 = arith.constant dense<0.000000e+00> : vector<8x8xf32>
    %57 = tpu.matmul %55, %56, %cst_20 {dimension_numbers = #tpu.dot_dimension_numbers<[1], [1], [0], [0], [0, 0, 1, 0], [], []>} : vector<8x8xbf16>, vector<8x8xbf16>, vector<8x8xf32> -> vector<8x8xf32>
    %cst_21 = arith.constant dense<0xFF800000> : vector<8xf32>
    %58 = vector.multi_reduction <maximumf>, %57, %cst_21 [1] : vector<8x8xf32> to vector<8xf32>
    %59 = vector.shape_cast %58 : vector<8xf32> to vector<8x1xf32>
    %60 = vector.broadcast %59 : vector<8x1xf32> to vector<8x8xf32>
    %61 = arith.subf %57, %60 : vector<8x8xf32>
    %62 = math.exp %61 : vector<8x8xf32>
    %cst_22 = arith.constant dense<0.000000e+00> : vector<8xf32>
    %63 = vector.multi_reduction <add>, %62, %cst_22 [1] : vector<8x8xf32> to vector<8xf32>
    %64 = vector.shape_cast %63 : vector<8xf32> to vector<8x1xf32>
    %65 = tpu.reciprocal %64 {approx = true} : vector<8x1xf32> -> vector<8x1xf32>
    %66 = vector.broadcast %65 : vector<8x1xf32> to vector<8x8xf32>
    %67 = arith.mulf %62, %66 : vector<8x8xf32>
    %68 = arith.truncf %67 : vector<8x8xf32> to vector<8x8xbf16>
    %69 = arith.truncf %54 : vector<8x8xf32> to vector<8x8xbf16>
    %cst_23 = arith.constant dense<0.000000e+00> : vector<8x8xf32>
    %70 = tpu.matmul %68, %69, %cst_23 {dimension_numbers = #tpu.dot_dimension_numbers<[1], [0], [0], [1], [0, 0, 1, 1], [], []>} : vector<8x8xbf16>, vector<8x8xbf16>, vector<8x8xf32> -> vector<8x8xf32>
    %71 = vector.extract_strided_slice %13 {offsets = [0, 24], sizes = [8, 8], strides = [1, 1]} : vector<16x96xf32> to vector<8x8xf32>
    %72 = vector.extract_strided_slice %13 {offsets = [0, 56], sizes = [8, 8], strides = [1, 1]} : vector<16x96xf32> to vector<8x8xf32>
    %73 = vector.extract_strided_slice %13 {offsets = [0, 88], sizes = [8, 8], strides = [1, 1]} : vector<16x96xf32> to vector<8x8xf32>
    %74 = arith.truncf %71 : vector<8x8xf32> to vector<8x8xbf16>
    %75 = arith.truncf %72 : vector<8x8xf32> to vector<8x8xbf16>
    %cst_24 = arith.constant dense<0.000000e+00> : vector<8x8xf32>
    %76 = tpu.matmul %74, %75, %cst_24 {dimension_numbers = #tpu.dot_dimension_numbers<[1], [1], [0], [0], [0, 0, 1, 0], [], []>} : vector<8x8xbf16>, vector<8x8xbf16>, vector<8x8xf32> -> vector<8x8xf32>
    %cst_25 = arith.constant dense<0xFF800000> : vector<8xf32>
    %77 = vector.multi_reduction <maximumf>, %76, %cst_25 [1] : vector<8x8xf32> to vector<8xf32>
    %78 = vector.shape_cast %77 : vector<8xf32> to vector<8x1xf32>
    %79 = vector.broadcast %78 : vector<8x1xf32> to vector<8x8xf32>
    %80 = arith.subf %76, %79 : vector<8x8xf32>
    %81 = math.exp %80 : vector<8x8xf32>
    %cst_26 = arith.constant dense<0.000000e+00> : vector<8xf32>
    %82 = vector.multi_reduction <add>, %81, %cst_26 [1] : vector<8x8xf32> to vector<8xf32>
    %83 = vector.shape_cast %82 : vector<8xf32> to vector<8x1xf32>
    %84 = tpu.reciprocal %83 {approx = true} : vector<8x1xf32> -> vector<8x1xf32>
    %85 = vector.broadcast %84 : vector<8x1xf32> to vector<8x8xf32>
    %86 = arith.mulf %81, %85 : vector<8x8xf32>
    %87 = arith.truncf %86 : vector<8x8xf32> to vector<8x8xbf16>
    %88 = arith.truncf %73 : vector<8x8xf32> to vector<8x8xbf16>
    %cst_27 = arith.constant dense<0.000000e+00> : vector<8x8xf32>
    %89 = tpu.matmul %87, %88, %cst_27 {dimension_numbers = #tpu.dot_dimension_numbers<[1], [0], [0], [1], [0, 0, 1, 1], [], []>} : vector<8x8xbf16>, vector<8x8xbf16>, vector<8x8xf32> -> vector<8x8xf32>
    %90 = tpu.concatenate %32, %51, %70, %89 in 1 : vector<8x8xf32>, vector<8x8xf32>, vector<8x8xf32>, vector<8x8xf32> -> vector<8x32xf32>
    %91 = vector.extract_strided_slice %13 {offsets = [8, 0], sizes = [8, 8], strides = [1, 1]} : vector<16x96xf32> to vector<8x8xf32>
    %92 = vector.extract_strided_slice %13 {offsets = [8, 32], sizes = [8, 8], strides = [1, 1]} : vector<16x96xf32> to vector<8x8xf32>
    %93 = vector.extract_strided_slice %13 {offsets = [8, 64], sizes = [8, 8], strides = [1, 1]} : vector<16x96xf32> to vector<8x8xf32>
    %94 = arith.truncf %91 : vector<8x8xf32> to vector<8x8xbf16>
    %95 = arith.truncf %92 : vector<8x8xf32> to vector<8x8xbf16>
    %cst_28 = arith.constant dense<0.000000e+00> : vector<8x8xf32>
    %96 = tpu.matmul %94, %95, %cst_28 {dimension_numbers = #tpu.dot_dimension_numbers<[1], [1], [0], [0], [0, 0, 1, 0], [], []>} : vector<8x8xbf16>, vector<8x8xbf16>, vector<8x8xf32> -> vector<8x8xf32>
    %cst_29 = arith.constant dense<0xFF800000> : vector<8xf32>
    %97 = vector.multi_reduction <maximumf>, %96, %cst_29 [1] : vector<8x8xf32> to vector<8xf32>
    %98 = vector.shape_cast %97 : vector<8xf32> to vector<8x1xf32>
    %99 = vector.broadcast %98 : vector<8x1xf32> to vector<8x8xf32>
    %100 = arith.subf %96, %99 : vector<8x8xf32>
    %101 = math.exp %100 : vector<8x8xf32>
    %cst_30 = arith.constant dense<0.000000e+00> : vector<8xf32>
    %102 = vector.multi_reduction <add>, %101, %cst_30 [1] : vector<8x8xf32> to vector<8xf32>
    %103 = vector.shape_cast %102 : vector<8xf32> to vector<8x1xf32>
    %104 = tpu.reciprocal %103 {approx = true} : vector<8x1xf32> -> vector<8x1xf32>
    %105 = vector.broadcast %104 : vector<8x1xf32> to vector<8x8xf32>
    %106 = arith.mulf %101, %105 : vector<8x8xf32>
    %107 = arith.truncf %106 : vector<8x8xf32> to vector<8x8xbf16>
    %108 = arith.truncf %93 : vector<8x8xf32> to vector<8x8xbf16>
    %cst_31 = arith.constant dense<0.000000e+00> : vector<8x8xf32>
    %109 = tpu.matmul %107, %108, %cst_31 {dimension_numbers = #tpu.dot_dimension_numbers<[1], [0], [0], [1], [0, 0, 1, 1], [], []>} : vector<8x8xbf16>, vector<8x8xbf16>, vector<8x8xf32> -> vector<8x8xf32>
    %110 = vector.extract_strided_slice %13 {offsets = [8, 8], sizes = [8, 8], strides = [1, 1]} : vector<16x96xf32> to vector<8x8xf32>
    %111 = vector.extract_strided_slice %13 {offsets = [8, 40], sizes = [8, 8], strides = [1, 1]} : vector<16x96xf32> to vector<8x8xf32>
    %112 = vector.extract_strided_slice %13 {offsets = [8, 72], sizes = [8, 8], strides = [1, 1]} : vector<16x96xf32> to vector<8x8xf32>
    %113 = arith.truncf %110 : vector<8x8xf32> to vector<8x8xbf16>
    %114 = arith.truncf %111 : vector<8x8xf32> to vector<8x8xbf16>
    %cst_32 = arith.constant dense<0.000000e+00> : vector<8x8xf32>
    %115 = tpu.matmul %113, %114, %cst_32 {dimension_numbers = #tpu.dot_dimension_numbers<[1], [1], [0], [0], [0, 0, 1, 0], [], []>} : vector<8x8xbf16>, vector<8x8xbf16>, vector<8x8xf32> -> vector<8x8xf32>
    %cst_33 = arith.constant dense<0xFF800000> : vector<8xf32>
    %116 = vector.multi_reduction <maximumf>, %115, %cst_33 [1] : vector<8x8xf32> to vector<8xf32>
    %117 = vector.shape_cast %116 : vector<8xf32> to vector<8x1xf32>
    %118 = vector.broadcast %117 : vector<8x1xf32> to vector<8x8xf32>
    %119 = arith.subf %115, %118 : vector<8x8xf32>
    %120 = math.exp %119 : vector<8x8xf32>
    %cst_34 = arith.constant dense<0.000000e+00> : vector<8xf32>
    %121 = vector.multi_reduction <add>, %120, %cst_34 [1] : vector<8x8xf32> to vector<8xf32>
    %122 = vector.shape_cast %121 : vector<8xf32> to vector<8x1xf32>
    %123 = tpu.reciprocal %122 {approx = true} : vector<8x1xf32> -> vector<8x1xf32>
    %124 = vector.broadcast %123 : vector<8x1xf32> to vector<8x8xf32>
    %125 = arith.mulf %120, %124 : vector<8x8xf32>
    %126 = arith.truncf %125 : vector<8x8xf32> to vector<8x8xbf16>
    %127 = arith.truncf %112 : vector<8x8xf32> to vector<8x8xbf16>
    %cst_35 = arith.constant dense<0.000000e+00> : vector<8x8xf32>
    %128 = tpu.matmul %126, %127, %cst_35 {dimension_numbers = #tpu.dot_dimension_numbers<[1], [0], [0], [1], [0, 0, 1, 1], [], []>} : vector<8x8xbf16>, vector<8x8xbf16>, vector<8x8xf32> -> vector<8x8xf32>
    %129 = vector.extract_strided_slice %13 {offsets = [8, 16], sizes = [8, 8], strides = [1, 1]} : vector<16x96xf32> to vector<8x8xf32>
    %130 = vector.extract_strided_slice %13 {offsets = [8, 48], sizes = [8, 8], strides = [1, 1]} : vector<16x96xf32> to vector<8x8xf32>
    %131 = vector.extract_strided_slice %13 {offsets = [8, 80], sizes = [8, 8], strides = [1, 1]} : vector<16x96xf32> to vector<8x8xf32>
    %132 = arith.truncf %129 : vector<8x8xf32> to vector<8x8xbf16>
    %133 = arith.truncf %130 : vector<8x8xf32> to vector<8x8xbf16>
    %cst_36 = arith.constant dense<0.000000e+00> : vector<8x8xf32>
    %134 = tpu.matmul %132, %133, %cst_36 {dimension_numbers = #tpu.dot_dimension_numbers<[1], [1], [0], [0], [0, 0, 1, 0], [], []>} : vector<8x8xbf16>, vector<8x8xbf16>, vector<8x8xf32> -> vector<8x8xf32>
    %cst_37 = arith.constant dense<0xFF800000> : vector<8xf32>
    %135 = vector.multi_reduction <maximumf>, %134, %cst_37 [1] : vector<8x8xf32> to vector<8xf32>
    %136 = vector.shape_cast %135 : vector<8xf32> to vector<8x1xf32>
    %137 = vector.broadcast %136 : vector<8x1xf32> to vector<8x8xf32>
    %138 = arith.subf %134, %137 : vector<8x8xf32>
    %139 = math.exp %138 : vector<8x8xf32>
    %cst_38 = arith.constant dense<0.000000e+00> : vector<8xf32>
    %140 = vector.multi_reduction <add>, %139, %cst_38 [1] : vector<8x8xf32> to vector<8xf32>
    %141 = vector.shape_cast %140 : vector<8xf32> to vector<8x1xf32>
    %142 = tpu.reciprocal %141 {approx = true} : vector<8x1xf32> -> vector<8x1xf32>
    %143 = vector.broadcast %142 : vector<8x1xf32> to vector<8x8xf32>
    %144 = arith.mulf %139, %143 : vector<8x8xf32>
    %145 = arith.truncf %144 : vector<8x8xf32> to vector<8x8xbf16>
    %146 = arith.truncf %131 : vector<8x8xf32> to vector<8x8xbf16>
    %cst_39 = arith.constant dense<0.000000e+00> : vector<8x8xf32>
    %147 = tpu.matmul %145, %146, %cst_39 {dimension_numbers = #tpu.dot_dimension_numbers<[1], [0], [0], [1], [0, 0, 1, 1], [], []>} : vector<8x8xbf16>, vector<8x8xbf16>, vector<8x8xf32> -> vector<8x8xf32>
    %148 = vector.extract_strided_slice %13 {offsets = [8, 24], sizes = [8, 8], strides = [1, 1]} : vector<16x96xf32> to vector<8x8xf32>
    %149 = vector.extract_strided_slice %13 {offsets = [8, 56], sizes = [8, 8], strides = [1, 1]} : vector<16x96xf32> to vector<8x8xf32>
    %150 = vector.extract_strided_slice %13 {offsets = [8, 88], sizes = [8, 8], strides = [1, 1]} : vector<16x96xf32> to vector<8x8xf32>
    %151 = arith.truncf %148 : vector<8x8xf32> to vector<8x8xbf16>
    %152 = arith.truncf %149 : vector<8x8xf32> to vector<8x8xbf16>
    %cst_40 = arith.constant dense<0.000000e+00> : vector<8x8xf32>
    %153 = tpu.matmul %151, %152, %cst_40 {dimension_numbers = #tpu.dot_dimension_numbers<[1], [1], [0], [0], [0, 0, 1, 0], [], []>} : vector<8x8xbf16>, vector<8x8xbf16>, vector<8x8xf32> -> vector<8x8xf32>
    %cst_41 = arith.constant dense<0xFF800000> : vector<8xf32>
    %154 = vector.multi_reduction <maximumf>, %153, %cst_41 [1] : vector<8x8xf32> to vector<8xf32>
    %155 = vector.shape_cast %154 : vector<8xf32> to vector<8x1xf32>
    %156 = vector.broadcast %155 : vector<8x1xf32> to vector<8x8xf32>
    %157 = arith.subf %153, %156 : vector<8x8xf32>
    %158 = math.exp %157 : vector<8x8xf32>
    %cst_42 = arith.constant dense<0.000000e+00> : vector<8xf32>
    %159 = vector.multi_reduction <add>, %158, %cst_42 [1] : vector<8x8xf32> to vector<8xf32>
    %160 = vector.shape_cast %159 : vector<8xf32> to vector<8x1xf32>
    %161 = tpu.reciprocal %160 {approx = true} : vector<8x1xf32> -> vector<8x1xf32>
    %162 = vector.broadcast %161 : vector<8x1xf32> to vector<8x8xf32>
    %163 = arith.mulf %158, %162 : vector<8x8xf32>
    %164 = arith.truncf %163 : vector<8x8xf32> to vector<8x8xbf16>
    %165 = arith.truncf %150 : vector<8x8xf32> to vector<8x8xbf16>
    %cst_43 = arith.constant dense<0.000000e+00> : vector<8x8xf32>
    %166 = tpu.matmul %164, %165, %cst_43 {dimension_numbers = #tpu.dot_dimension_numbers<[1], [0], [0], [1], [0, 0, 1, 1], [], []>} : vector<8x8xbf16>, vector<8x8xbf16>, vector<8x8xf32> -> vector<8x8xf32>
    %167 = tpu.concatenate %109, %128, %147, %166 in 1 : vector<8x8xf32>, vector<8x8xf32>, vector<8x8xf32>, vector<8x8xf32> -> vector<8x32xf32>
    %168 = tpu.concatenate %90, %167 in 0 : vector<8x32xf32>, vector<8x32xf32> -> vector<16x32xf32>
    %169 = arith.truncf %168 : vector<16x32xf32> to vector<16x32xbf16>
    %c0_44 = arith.constant 0 : index
    %c0_45 = arith.constant 0 : index
    %c0_46 = arith.constant 0 : index
    %170 = vector.load %arg6[%c0_44, %c0_45, %c0_46] : memref<2x32x32xbf16, #tpu.memory_space<vmem>>, vector<1x32x32xbf16>
    %171 = vector.shape_cast %170 : vector<1x32x32xbf16> to vector<32x32xbf16>
    %cst_47 = arith.constant dense<0.000000e+00> : vector<16x32xf32>
    %172 = tpu.matmul %169, %171, %cst_47 {dimension_numbers = #tpu.dot_dimension_numbers<[1], [0], [0], [1], [0, 0, 1, 1], [], []>} : vector<16x32xbf16>, vector<32x32xbf16>, vector<16x32xf32> -> vector<16x32xf32>
    %c0_48 = arith.constant 0 : index
    %c0_49 = arith.constant 0 : index
    %c0_50 = arith.constant 0 : index
    %173 = vector.load %arg7[%c0_48, %c0_49, %c0_50] : memref<2x1x32xf32, #tpu.memory_space<vmem>>, vector<1x1x32xf32>
    %174 = vector.shape_cast %173 : vector<1x1x32xf32> to vector<1x32xf32>
    %175 = vector.broadcast %174 : vector<1x32xf32> to vector<16x32xf32>
    %176 = arith.addf %172, %175 : vector<16x32xf32>
    %177 = arith.addf %5, %176 : vector<16x32xf32>
    %c0_51 = arith.constant 0 : index
    %c0_52 = arith.constant 0 : index
    %c0_53 = arith.constant 0 : index
    %178 = vector.load %arg8[%c0_51, %c0_52, %c0_53] : memref<2x1x32xf32, #tpu.memory_space<vmem>>, vector<1x1x32xf32>
    %179 = vector.shape_cast %178 : vector<1x1x32xf32> to vector<1x32xf32>
    %c0_54 = arith.constant 0 : index
    %c0_55 = arith.constant 0 : index
    %c0_56 = arith.constant 0 : index
    %180 = vector.load %arg9[%c0_54, %c0_55, %c0_56] : memref<2x1x32xf32, #tpu.memory_space<vmem>>, vector<1x1x32xf32>
    %181 = vector.shape_cast %180 : vector<1x1x32xf32> to vector<1x32xf32>
    %cst_57 = arith.constant dense<0.000000e+00> : vector<16xf32>
    %182 = vector.multi_reduction <add>, %177, %cst_57 [1] : vector<16x32xf32> to vector<16xf32>
    %183 = vector.shape_cast %182 : vector<16xf32> to vector<16x1xf32>
    %cst_58 = arith.constant 3.200000e+01 : f32
    %184 = vector.broadcast %cst_58 : f32 to vector<16x1xf32>
    %185 = arith.divf %183, %184 : vector<16x1xf32>
    %186 = vector.broadcast %185 : vector<16x1xf32> to vector<16x32xf32>
    %187 = arith.subf %177, %186 : vector<16x32xf32>
    %188 = arith.mulf %187, %187 : vector<16x32xf32>
    %cst_59 = arith.constant dense<0.000000e+00> : vector<16xf32>
    %189 = vector.multi_reduction <add>, %188, %cst_59 [1] : vector<16x32xf32> to vector<16xf32>
    %190 = vector.shape_cast %189 : vector<16xf32> to vector<16x1xf32>
    %cst_60 = arith.constant 3.200000e+01 : f32
    %191 = vector.broadcast %cst_60 : f32 to vector<16x1xf32>
    %192 = arith.divf %190, %191 : vector<16x1xf32>
    %cst_61 = arith.constant 9.99999974E-6 : f32
    %193 = vector.broadcast %cst_61 : f32 to vector<16x1xf32>
    %194 = arith.addf %192, %193 : vector<16x1xf32>
    %195 = math.rsqrt %194 : vector<16x1xf32>
    %196 = vector.broadcast %195 : vector<16x1xf32> to vector<16x32xf32>
    %197 = arith.mulf %187, %196 : vector<16x32xf32>
    %198 = vector.broadcast %179 : vector<1x32xf32> to vector<16x32xf32>
    %199 = arith.mulf %197, %198 : vector<16x32xf32>
    %200 = vector.broadcast %181 : vector<1x32xf32> to vector<16x32xf32>
    %201 = arith.addf %199, %200 : vector<16x32xf32>
    %202 = arith.truncf %201 : vector<16x32xf32> to vector<16x32xbf16>
    %c0_62 = arith.constant 0 : index
    %c0_63 = arith.constant 0 : index
    %c0_64 = arith.constant 0 : index
    %203 = vector.load %arg12[%c0_62, %c0_63, %c0_64] : memref<2x32x2048xbf16, #tpu.memory_space<vmem>>, vector<1x32x2048xbf16>
    %204 = vector.shape_cast %203 : vector<1x32x2048xbf16> to vector<32x2048xbf16>
    %cst_65 = arith.constant dense<0.000000e+00> : vector<16x2048xf32>
    %205 = tpu.matmul %202, %204, %cst_65 {dimension_numbers = #tpu.dot_dimension_numbers<[1], [0], [0], [1], [0, 0, 1, 1], [], []>} : vector<16x32xbf16>, vector<32x2048xbf16>, vector<16x2048xf32> -> vector<16x2048xf32>
    %c0_66 = arith.constant 0 : index
    %c0_67 = arith.constant 0 : index
    %c0_68 = arith.constant 0 : index
    %206 = vector.load %arg13[%c0_66, %c0_67, %c0_68] : memref<2x1x2048xf32, #tpu.memory_space<vmem>>, vector<1x1x2048xf32>
    %207 = vector.shape_cast %206 : vector<1x1x2048xf32> to vector<1x2048xf32>
    %208 = vector.broadcast %207 : vector<1x2048xf32> to vector<16x2048xf32>
    %209 = arith.addf %205, %208 : vector<16x2048xf32>
    %cst_69 = arith.constant 0.000000e+00 : f32
    %210 = vector.broadcast %cst_69 : f32 to vector<16x2048xf32>
    %211 = arith.maximumf %209, %210 : vector<16x2048xf32>
    %212 = arith.truncf %211 : vector<16x2048xf32> to vector<16x2048xbf16>
    %c0_70 = arith.constant 0 : index
    %c0_71 = arith.constant 0 : index
    %c0_72 = arith.constant 0 : index
    %213 = vector.load %arg14[%c0_70, %c0_71, %c0_72] : memref<2x2048x32xbf16, #tpu.memory_space<vmem>>, vector<1x2048x32xbf16>
    %214 = vector.shape_cast %213 : vector<1x2048x32xbf16> to vector<2048x32xbf16>
    %cst_73 = arith.constant dense<0.000000e+00> : vector<16x32xf32>
    %215 = tpu.matmul %212, %214, %cst_73 {dimension_numbers = #tpu.dot_dimension_numbers<[1], [0], [0], [1], [0, 0, 1, 1], [], []>} : vector<16x2048xbf16>, vector<2048x32xbf16>, vector<16x32xf32> -> vector<16x32xf32>
    %c0_74 = arith.constant 0 : index
    %c0_75 = arith.constant 0 : index
    %c0_76 = arith.constant 0 : index
    %216 = vector.load %arg15[%c0_74, %c0_75, %c0_76] : memref<2x1x32xf32, #tpu.memory_space<vmem>>, vector<1x1x32xf32>
    %217 = vector.shape_cast %216 : vector<1x1x32xf32> to vector<1x32xf32>
    %218 = vector.broadcast %217 : vector<1x32xf32> to vector<16x32xf32>
    %219 = arith.addf %215, %218 : vector<16x32xf32>
    %220 = arith.addf %201, %219 : vector<16x32xf32>
    %c0_77 = arith.constant 0 : index
    %c0_78 = arith.constant 0 : index
    %c0_79 = arith.constant 0 : index
    %221 = vector.load %arg10[%c0_77, %c0_78, %c0_79] : memref<2x1x32xf32, #tpu.memory_space<vmem>>, vector<1x1x32xf32>
    %222 = vector.shape_cast %221 : vector<1x1x32xf32> to vector<1x32xf32>
    %c0_80 = arith.constant 0 : index
    %c0_81 = arith.constant 0 : index
    %c0_82 = arith.constant 0 : index
    %223 = vector.load %arg11[%c0_80, %c0_81, %c0_82] : memref<2x1x32xf32, #tpu.memory_space<vmem>>, vector<1x1x32xf32>
    %224 = vector.shape_cast %223 : vector<1x1x32xf32> to vector<1x32xf32>
    %cst_83 = arith.constant dense<0.000000e+00> : vector<16xf32>
    %225 = vector.multi_reduction <add>, %220, %cst_83 [1] : vector<16x32xf32> to vector<16xf32>
    %226 = vector.shape_cast %225 : vector<16xf32> to vector<16x1xf32>
    %cst_84 = arith.constant 3.200000e+01 : f32
    %227 = vector.broadcast %cst_84 : f32 to vector<16x1xf32>
    %228 = arith.divf %226, %227 : vector<16x1xf32>
    %229 = vector.broadcast %228 : vector<16x1xf32> to vector<16x32xf32>
    %230 = arith.subf %220, %229 : vector<16x32xf32>
    %231 = arith.mulf %230, %230 : vector<16x32xf32>
    %cst_85 = arith.constant dense<0.000000e+00> : vector<16xf32>
    %232 = vector.multi_reduction <add>, %231, %cst_85 [1] : vector<16x32xf32> to vector<16xf32>
    %233 = vector.shape_cast %232 : vector<16xf32> to vector<16x1xf32>
    %cst_86 = arith.constant 3.200000e+01 : f32
    %234 = vector.broadcast %cst_86 : f32 to vector<16x1xf32>
    %235 = arith.divf %233, %234 : vector<16x1xf32>
    %cst_87 = arith.constant 9.99999974E-6 : f32
    %236 = vector.broadcast %cst_87 : f32 to vector<16x1xf32>
    %237 = arith.addf %235, %236 : vector<16x1xf32>
    %238 = math.rsqrt %237 : vector<16x1xf32>
    %239 = vector.broadcast %238 : vector<16x1xf32> to vector<16x32xf32>
    %240 = arith.mulf %230, %239 : vector<16x32xf32>
    %241 = vector.broadcast %222 : vector<1x32xf32> to vector<16x32xf32>
    %242 = arith.mulf %240, %241 : vector<16x32xf32>
    %243 = vector.broadcast %224 : vector<1x32xf32> to vector<16x32xf32>
    %244 = arith.addf %242, %243 : vector<16x32xf32>
    %245 = arith.truncf %244 : vector<16x32xf32> to vector<16x32xbf16>
    %c1 = arith.constant 1 : index
    %c0_88 = arith.constant 0 : index
    %c0_89 = arith.constant 0 : index
    %246 = vector.load %arg4[%c1, %c0_88, %c0_89] : memref<2x32x96xbf16, #tpu.memory_space<vmem>>, vector<1x32x96xbf16>
    %247 = vector.shape_cast %246 : vector<1x32x96xbf16> to vector<32x96xbf16>
    %cst_90 = arith.constant dense<0.000000e+00> : vector<16x96xf32>
    %248 = tpu.matmul %245, %247, %cst_90 {dimension_numbers = #tpu.dot_dimension_numbers<[1], [0], [0], [1], [0, 0, 1, 1], [], []>} : vector<16x32xbf16>, vector<32x96xbf16>, vector<16x96xf32> -> vector<16x96xf32>
    %c1_91 = arith.constant 1 : index
    %c0_92 = arith.constant 0 : index
    %c0_93 = arith.constant 0 : index
    %249 = vector.load %arg5[%c1_91, %c0_92, %c0_93] : memref<2x1x96xf32, #tpu.memory_space<vmem>>, vector<1x1x96xf32>
    %250 = vector.shape_cast %249 : vector<1x1x96xf32> to vector<1x96xf32>
    %251 = vector.broadcast %250 : vector<1x96xf32> to vector<16x96xf32>
    %252 = arith.addf %248, %251 : vector<16x96xf32>
    %253 = vector.extract_strided_slice %252 {offsets = [0, 0], sizes = [8, 8], strides = [1, 1]} : vector<16x96xf32> to vector<8x8xf32>
    %254 = vector.extract_strided_slice %252 {offsets = [0, 32], sizes = [8, 8], strides = [1, 1]} : vector<16x96xf32> to vector<8x8xf32>
    %255 = vector.extract_strided_slice %252 {offsets = [0, 64], sizes = [8, 8], strides = [1, 1]} : vector<16x96xf32> to vector<8x8xf32>
    %256 = arith.truncf %253 : vector<8x8xf32> to vector<8x8xbf16>
    %257 = arith.truncf %254 : vector<8x8xf32> to vector<8x8xbf16>
    %cst_94 = arith.constant dense<0.000000e+00> : vector<8x8xf32>
    %258 = tpu.matmul %256, %257, %cst_94 {dimension_numbers = #tpu.dot_dimension_numbers<[1], [1], [0], [0], [0, 0, 1, 0], [], []>} : vector<8x8xbf16>, vector<8x8xbf16>, vector<8x8xf32> -> vector<8x8xf32>
    %cst_95 = arith.constant dense<0xFF800000> : vector<8xf32>
    %259 = vector.multi_reduction <maximumf>, %258, %cst_95 [1] : vector<8x8xf32> to vector<8xf32>
    %260 = vector.shape_cast %259 : vector<8xf32> to vector<8x1xf32>
    %261 = vector.broadcast %260 : vector<8x1xf32> to vector<8x8xf32>
    %262 = arith.subf %258, %261 : vector<8x8xf32>
    %263 = math.exp %262 : vector<8x8xf32>
    %cst_96 = arith.constant dense<0.000000e+00> : vector<8xf32>
    %264 = vector.multi_reduction <add>, %263, %cst_96 [1] : vector<8x8xf32> to vector<8xf32>
    %265 = vector.shape_cast %264 : vector<8xf32> to vector<8x1xf32>
    %266 = tpu.reciprocal %265 {approx = true} : vector<8x1xf32> -> vector<8x1xf32>
    %267 = vector.broadcast %266 : vector<8x1xf32> to vector<8x8xf32>
    %268 = arith.mulf %263, %267 : vector<8x8xf32>
    %269 = arith.truncf %268 : vector<8x8xf32> to vector<8x8xbf16>
    %270 = arith.truncf %255 : vector<8x8xf32> to vector<8x8xbf16>
    %cst_97 = arith.constant dense<0.000000e+00> : vector<8x8xf32>
    %271 = tpu.matmul %269, %270, %cst_97 {dimension_numbers = #tpu.dot_dimension_numbers<[1], [0], [0], [1], [0, 0, 1, 1], [], []>} : vector<8x8xbf16>, vector<8x8xbf16>, vector<8x8xf32> -> vector<8x8xf32>
    %272 = vector.extract_strided_slice %252 {offsets = [0, 8], sizes = [8, 8], strides = [1, 1]} : vector<16x96xf32> to vector<8x8xf32>
    %273 = vector.extract_strided_slice %252 {offsets = [0, 40], sizes = [8, 8], strides = [1, 1]} : vector<16x96xf32> to vector<8x8xf32>
    %274 = vector.extract_strided_slice %252 {offsets = [0, 72], sizes = [8, 8], strides = [1, 1]} : vector<16x96xf32> to vector<8x8xf32>
    %275 = arith.truncf %272 : vector<8x8xf32> to vector<8x8xbf16>
    %276 = arith.truncf %273 : vector<8x8xf32> to vector<8x8xbf16>
    %cst_98 = arith.constant dense<0.000000e+00> : vector<8x8xf32>
    %277 = tpu.matmul %275, %276, %cst_98 {dimension_numbers = #tpu.dot_dimension_numbers<[1], [1], [0], [0], [0, 0, 1, 0], [], []>} : vector<8x8xbf16>, vector<8x8xbf16>, vector<8x8xf32> -> vector<8x8xf32>
    %cst_99 = arith.constant dense<0xFF800000> : vector<8xf32>
    %278 = vector.multi_reduction <maximumf>, %277, %cst_99 [1] : vector<8x8xf32> to vector<8xf32>
    %279 = vector.shape_cast %278 : vector<8xf32> to vector<8x1xf32>
    %280 = vector.broadcast %279 : vector<8x1xf32> to vector<8x8xf32>
    %281 = arith.subf %277, %280 : vector<8x8xf32>
    %282 = math.exp %281 : vector<8x8xf32>
    %cst_100 = arith.constant dense<0.000000e+00> : vector<8xf32>
    %283 = vector.multi_reduction <add>, %282, %cst_100 [1] : vector<8x8xf32> to vector<8xf32>
    %284 = vector.shape_cast %283 : vector<8xf32> to vector<8x1xf32>
    %285 = tpu.reciprocal %284 {approx = true} : vector<8x1xf32> -> vector<8x1xf32>
    %286 = vector.broadcast %285 : vector<8x1xf32> to vector<8x8xf32>
    %287 = arith.mulf %282, %286 : vector<8x8xf32>
    %288 = arith.truncf %287 : vector<8x8xf32> to vector<8x8xbf16>
    %289 = arith.truncf %274 : vector<8x8xf32> to vector<8x8xbf16>
    %cst_101 = arith.constant dense<0.000000e+00> : vector<8x8xf32>
    %290 = tpu.matmul %288, %289, %cst_101 {dimension_numbers = #tpu.dot_dimension_numbers<[1], [0], [0], [1], [0, 0, 1, 1], [], []>} : vector<8x8xbf16>, vector<8x8xbf16>, vector<8x8xf32> -> vector<8x8xf32>
    %291 = vector.extract_strided_slice %252 {offsets = [0, 16], sizes = [8, 8], strides = [1, 1]} : vector<16x96xf32> to vector<8x8xf32>
    %292 = vector.extract_strided_slice %252 {offsets = [0, 48], sizes = [8, 8], strides = [1, 1]} : vector<16x96xf32> to vector<8x8xf32>
    %293 = vector.extract_strided_slice %252 {offsets = [0, 80], sizes = [8, 8], strides = [1, 1]} : vector<16x96xf32> to vector<8x8xf32>
    %294 = arith.truncf %291 : vector<8x8xf32> to vector<8x8xbf16>
    %295 = arith.truncf %292 : vector<8x8xf32> to vector<8x8xbf16>
    %cst_102 = arith.constant dense<0.000000e+00> : vector<8x8xf32>
    %296 = tpu.matmul %294, %295, %cst_102 {dimension_numbers = #tpu.dot_dimension_numbers<[1], [1], [0], [0], [0, 0, 1, 0], [], []>} : vector<8x8xbf16>, vector<8x8xbf16>, vector<8x8xf32> -> vector<8x8xf32>
    %cst_103 = arith.constant dense<0xFF800000> : vector<8xf32>
    %297 = vector.multi_reduction <maximumf>, %296, %cst_103 [1] : vector<8x8xf32> to vector<8xf32>
    %298 = vector.shape_cast %297 : vector<8xf32> to vector<8x1xf32>
    %299 = vector.broadcast %298 : vector<8x1xf32> to vector<8x8xf32>
    %300 = arith.subf %296, %299 : vector<8x8xf32>
    %301 = math.exp %300 : vector<8x8xf32>
    %cst_104 = arith.constant dense<0.000000e+00> : vector<8xf32>
    %302 = vector.multi_reduction <add>, %301, %cst_104 [1] : vector<8x8xf32> to vector<8xf32>
    %303 = vector.shape_cast %302 : vector<8xf32> to vector<8x1xf32>
    %304 = tpu.reciprocal %303 {approx = true} : vector<8x1xf32> -> vector<8x1xf32>
    %305 = vector.broadcast %304 : vector<8x1xf32> to vector<8x8xf32>
    %306 = arith.mulf %301, %305 : vector<8x8xf32>
    %307 = arith.truncf %306 : vector<8x8xf32> to vector<8x8xbf16>
    %308 = arith.truncf %293 : vector<8x8xf32> to vector<8x8xbf16>
    %cst_105 = arith.constant dense<0.000000e+00> : vector<8x8xf32>
    %309 = tpu.matmul %307, %308, %cst_105 {dimension_numbers = #tpu.dot_dimension_numbers<[1], [0], [0], [1], [0, 0, 1, 1], [], []>} : vector<8x8xbf16>, vector<8x8xbf16>, vector<8x8xf32> -> vector<8x8xf32>
    %310 = vector.extract_strided_slice %252 {offsets = [0, 24], sizes = [8, 8], strides = [1, 1]} : vector<16x96xf32> to vector<8x8xf32>
    %311 = vector.extract_strided_slice %252 {offsets = [0, 56], sizes = [8, 8], strides = [1, 1]} : vector<16x96xf32> to vector<8x8xf32>
    %312 = vector.extract_strided_slice %252 {offsets = [0, 88], sizes = [8, 8], strides = [1, 1]} : vector<16x96xf32> to vector<8x8xf32>
    %313 = arith.truncf %310 : vector<8x8xf32> to vector<8x8xbf16>
    %314 = arith.truncf %311 : vector<8x8xf32> to vector<8x8xbf16>
    %cst_106 = arith.constant dense<0.000000e+00> : vector<8x8xf32>
    %315 = tpu.matmul %313, %314, %cst_106 {dimension_numbers = #tpu.dot_dimension_numbers<[1], [1], [0], [0], [0, 0, 1, 0], [], []>} : vector<8x8xbf16>, vector<8x8xbf16>, vector<8x8xf32> -> vector<8x8xf32>
    %cst_107 = arith.constant dense<0xFF800000> : vector<8xf32>
    %316 = vector.multi_reduction <maximumf>, %315, %cst_107 [1] : vector<8x8xf32> to vector<8xf32>
    %317 = vector.shape_cast %316 : vector<8xf32> to vector<8x1xf32>
    %318 = vector.broadcast %317 : vector<8x1xf32> to vector<8x8xf32>
    %319 = arith.subf %315, %318 : vector<8x8xf32>
    %320 = math.exp %319 : vector<8x8xf32>
    %cst_108 = arith.constant dense<0.000000e+00> : vector<8xf32>
    %321 = vector.multi_reduction <add>, %320, %cst_108 [1] : vector<8x8xf32> to vector<8xf32>
    %322 = vector.shape_cast %321 : vector<8xf32> to vector<8x1xf32>
    %323 = tpu.reciprocal %322 {approx = true} : vector<8x1xf32> -> vector<8x1xf32>
    %324 = vector.broadcast %323 : vector<8x1xf32> to vector<8x8xf32>
    %325 = arith.mulf %320, %324 : vector<8x8xf32>
    %326 = arith.truncf %325 : vector<8x8xf32> to vector<8x8xbf16>
    %327 = arith.truncf %312 : vector<8x8xf32> to vector<8x8xbf16>
    %cst_109 = arith.constant dense<0.000000e+00> : vector<8x8xf32>
    %328 = tpu.matmul %326, %327, %cst_109 {dimension_numbers = #tpu.dot_dimension_numbers<[1], [0], [0], [1], [0, 0, 1, 1], [], []>} : vector<8x8xbf16>, vector<8x8xbf16>, vector<8x8xf32> -> vector<8x8xf32>
    %329 = tpu.concatenate %271, %290, %309, %328 in 1 : vector<8x8xf32>, vector<8x8xf32>, vector<8x8xf32>, vector<8x8xf32> -> vector<8x32xf32>
    %330 = vector.extract_strided_slice %252 {offsets = [8, 0], sizes = [8, 8], strides = [1, 1]} : vector<16x96xf32> to vector<8x8xf32>
    %331 = vector.extract_strided_slice %252 {offsets = [8, 32], sizes = [8, 8], strides = [1, 1]} : vector<16x96xf32> to vector<8x8xf32>
    %332 = vector.extract_strided_slice %252 {offsets = [8, 64], sizes = [8, 8], strides = [1, 1]} : vector<16x96xf32> to vector<8x8xf32>
    %333 = arith.truncf %330 : vector<8x8xf32> to vector<8x8xbf16>
    %334 = arith.truncf %331 : vector<8x8xf32> to vector<8x8xbf16>
    %cst_110 = arith.constant dense<0.000000e+00> : vector<8x8xf32>
    %335 = tpu.matmul %333, %334, %cst_110 {dimension_numbers = #tpu.dot_dimension_numbers<[1], [1], [0], [0], [0, 0, 1, 0], [], []>} : vector<8x8xbf16>, vector<8x8xbf16>, vector<8x8xf32> -> vector<8x8xf32>
    %cst_111 = arith.constant dense<0xFF800000> : vector<8xf32>
    %336 = vector.multi_reduction <maximumf>, %335, %cst_111 [1] : vector<8x8xf32> to vector<8xf32>
    %337 = vector.shape_cast %336 : vector<8xf32> to vector<8x1xf32>
    %338 = vector.broadcast %337 : vector<8x1xf32> to vector<8x8xf32>
    %339 = arith.subf %335, %338 : vector<8x8xf32>
    %340 = math.exp %339 : vector<8x8xf32>
    %cst_112 = arith.constant dense<0.000000e+00> : vector<8xf32>
    %341 = vector.multi_reduction <add>, %340, %cst_112 [1] : vector<8x8xf32> to vector<8xf32>
    %342 = vector.shape_cast %341 : vector<8xf32> to vector<8x1xf32>
    %343 = tpu.reciprocal %342 {approx = true} : vector<8x1xf32> -> vector<8x1xf32>
    %344 = vector.broadcast %343 : vector<8x1xf32> to vector<8x8xf32>
    %345 = arith.mulf %340, %344 : vector<8x8xf32>
    %346 = arith.truncf %345 : vector<8x8xf32> to vector<8x8xbf16>
    %347 = arith.truncf %332 : vector<8x8xf32> to vector<8x8xbf16>
    %cst_113 = arith.constant dense<0.000000e+00> : vector<8x8xf32>
    %348 = tpu.matmul %346, %347, %cst_113 {dimension_numbers = #tpu.dot_dimension_numbers<[1], [0], [0], [1], [0, 0, 1, 1], [], []>} : vector<8x8xbf16>, vector<8x8xbf16>, vector<8x8xf32> -> vector<8x8xf32>
    %349 = vector.extract_strided_slice %252 {offsets = [8, 8], sizes = [8, 8], strides = [1, 1]} : vector<16x96xf32> to vector<8x8xf32>
    %350 = vector.extract_strided_slice %252 {offsets = [8, 40], sizes = [8, 8], strides = [1, 1]} : vector<16x96xf32> to vector<8x8xf32>
    %351 = vector.extract_strided_slice %252 {offsets = [8, 72], sizes = [8, 8], strides = [1, 1]} : vector<16x96xf32> to vector<8x8xf32>
    %352 = arith.truncf %349 : vector<8x8xf32> to vector<8x8xbf16>
    %353 = arith.truncf %350 : vector<8x8xf32> to vector<8x8xbf16>
    %cst_114 = arith.constant dense<0.000000e+00> : vector<8x8xf32>
    %354 = tpu.matmul %352, %353, %cst_114 {dimension_numbers = #tpu.dot_dimension_numbers<[1], [1], [0], [0], [0, 0, 1, 0], [], []>} : vector<8x8xbf16>, vector<8x8xbf16>, vector<8x8xf32> -> vector<8x8xf32>
    %cst_115 = arith.constant dense<0xFF800000> : vector<8xf32>
    %355 = vector.multi_reduction <maximumf>, %354, %cst_115 [1] : vector<8x8xf32> to vector<8xf32>
    %356 = vector.shape_cast %355 : vector<8xf32> to vector<8x1xf32>
    %357 = vector.broadcast %356 : vector<8x1xf32> to vector<8x8xf32>
    %358 = arith.subf %354, %357 : vector<8x8xf32>
    %359 = math.exp %358 : vector<8x8xf32>
    %cst_116 = arith.constant dense<0.000000e+00> : vector<8xf32>
    %360 = vector.multi_reduction <add>, %359, %cst_116 [1] : vector<8x8xf32> to vector<8xf32>
    %361 = vector.shape_cast %360 : vector<8xf32> to vector<8x1xf32>
    %362 = tpu.reciprocal %361 {approx = true} : vector<8x1xf32> -> vector<8x1xf32>
    %363 = vector.broadcast %362 : vector<8x1xf32> to vector<8x8xf32>
    %364 = arith.mulf %359, %363 : vector<8x8xf32>
    %365 = arith.truncf %364 : vector<8x8xf32> to vector<8x8xbf16>
    %366 = arith.truncf %351 : vector<8x8xf32> to vector<8x8xbf16>
    %cst_117 = arith.constant dense<0.000000e+00> : vector<8x8xf32>
    %367 = tpu.matmul %365, %366, %cst_117 {dimension_numbers = #tpu.dot_dimension_numbers<[1], [0], [0], [1], [0, 0, 1, 1], [], []>} : vector<8x8xbf16>, vector<8x8xbf16>, vector<8x8xf32> -> vector<8x8xf32>
    %368 = vector.extract_strided_slice %252 {offsets = [8, 16], sizes = [8, 8], strides = [1, 1]} : vector<16x96xf32> to vector<8x8xf32>
    %369 = vector.extract_strided_slice %252 {offsets = [8, 48], sizes = [8, 8], strides = [1, 1]} : vector<16x96xf32> to vector<8x8xf32>
    %370 = vector.extract_strided_slice %252 {offsets = [8, 80], sizes = [8, 8], strides = [1, 1]} : vector<16x96xf32> to vector<8x8xf32>
    %371 = arith.truncf %368 : vector<8x8xf32> to vector<8x8xbf16>
    %372 = arith.truncf %369 : vector<8x8xf32> to vector<8x8xbf16>
    %cst_118 = arith.constant dense<0.000000e+00> : vector<8x8xf32>
    %373 = tpu.matmul %371, %372, %cst_118 {dimension_numbers = #tpu.dot_dimension_numbers<[1], [1], [0], [0], [0, 0, 1, 0], [], []>} : vector<8x8xbf16>, vector<8x8xbf16>, vector<8x8xf32> -> vector<8x8xf32>
    %cst_119 = arith.constant dense<0xFF800000> : vector<8xf32>
    %374 = vector.multi_reduction <maximumf>, %373, %cst_119 [1] : vector<8x8xf32> to vector<8xf32>
    %375 = vector.shape_cast %374 : vector<8xf32> to vector<8x1xf32>
    %376 = vector.broadcast %375 : vector<8x1xf32> to vector<8x8xf32>
    %377 = arith.subf %373, %376 : vector<8x8xf32>
    %378 = math.exp %377 : vector<8x8xf32>
    %cst_120 = arith.constant dense<0.000000e+00> : vector<8xf32>
    %379 = vector.multi_reduction <add>, %378, %cst_120 [1] : vector<8x8xf32> to vector<8xf32>
    %380 = vector.shape_cast %379 : vector<8xf32> to vector<8x1xf32>
    %381 = tpu.reciprocal %380 {approx = true} : vector<8x1xf32> -> vector<8x1xf32>
    %382 = vector.broadcast %381 : vector<8x1xf32> to vector<8x8xf32>
    %383 = arith.mulf %378, %382 : vector<8x8xf32>
    %384 = arith.truncf %383 : vector<8x8xf32> to vector<8x8xbf16>
    %385 = arith.truncf %370 : vector<8x8xf32> to vector<8x8xbf16>
    %cst_121 = arith.constant dense<0.000000e+00> : vector<8x8xf32>
    %386 = tpu.matmul %384, %385, %cst_121 {dimension_numbers = #tpu.dot_dimension_numbers<[1], [0], [0], [1], [0, 0, 1, 1], [], []>} : vector<8x8xbf16>, vector<8x8xbf16>, vector<8x8xf32> -> vector<8x8xf32>
    %387 = vector.extract_strided_slice %252 {offsets = [8, 24], sizes = [8, 8], strides = [1, 1]} : vector<16x96xf32> to vector<8x8xf32>
    %388 = vector.extract_strided_slice %252 {offsets = [8, 56], sizes = [8, 8], strides = [1, 1]} : vector<16x96xf32> to vector<8x8xf32>
    %389 = vector.extract_strided_slice %252 {offsets = [8, 88], sizes = [8, 8], strides = [1, 1]} : vector<16x96xf32> to vector<8x8xf32>
    %390 = arith.truncf %387 : vector<8x8xf32> to vector<8x8xbf16>
    %391 = arith.truncf %388 : vector<8x8xf32> to vector<8x8xbf16>
    %cst_122 = arith.constant dense<0.000000e+00> : vector<8x8xf32>
    %392 = tpu.matmul %390, %391, %cst_122 {dimension_numbers = #tpu.dot_dimension_numbers<[1], [1], [0], [0], [0, 0, 1, 0], [], []>} : vector<8x8xbf16>, vector<8x8xbf16>, vector<8x8xf32> -> vector<8x8xf32>
    %cst_123 = arith.constant dense<0xFF800000> : vector<8xf32>
    %393 = vector.multi_reduction <maximumf>, %392, %cst_123 [1] : vector<8x8xf32> to vector<8xf32>
    %394 = vector.shape_cast %393 : vector<8xf32> to vector<8x1xf32>
    %395 = vector.broadcast %394 : vector<8x1xf32> to vector<8x8xf32>
    %396 = arith.subf %392, %395 : vector<8x8xf32>
    %397 = math.exp %396 : vector<8x8xf32>
    %cst_124 = arith.constant dense<0.000000e+00> : vector<8xf32>
    %398 = vector.multi_reduction <add>, %397, %cst_124 [1] : vector<8x8xf32> to vector<8xf32>
    %399 = vector.shape_cast %398 : vector<8xf32> to vector<8x1xf32>
    %400 = tpu.reciprocal %399 {approx = true} : vector<8x1xf32> -> vector<8x1xf32>
    %401 = vector.broadcast %400 : vector<8x1xf32> to vector<8x8xf32>
    %402 = arith.mulf %397, %401 : vector<8x8xf32>
    %403 = arith.truncf %402 : vector<8x8xf32> to vector<8x8xbf16>
    %404 = arith.truncf %389 : vector<8x8xf32> to vector<8x8xbf16>
    %cst_125 = arith.constant dense<0.000000e+00> : vector<8x8xf32>
    %405 = tpu.matmul %403, %404, %cst_125 {dimension_numbers = #tpu.dot_dimension_numbers<[1], [0], [0], [1], [0, 0, 1, 1], [], []>} : vector<8x8xbf16>, vector<8x8xbf16>, vector<8x8xf32> -> vector<8x8xf32>
    %406 = tpu.concatenate %348, %367, %386, %405 in 1 : vector<8x8xf32>, vector<8x8xf32>, vector<8x8xf32>, vector<8x8xf32> -> vector<8x32xf32>
    %407 = tpu.concatenate %329, %406 in 0 : vector<8x32xf32>, vector<8x32xf32> -> vector<16x32xf32>
    %408 = arith.truncf %407 : vector<16x32xf32> to vector<16x32xbf16>
    %c1_126 = arith.constant 1 : index
    %c0_127 = arith.constant 0 : index
    %c0_128 = arith.constant 0 : index
    %409 = vector.load %arg6[%c1_126, %c0_127, %c0_128] : memref<2x32x32xbf16, #tpu.memory_space<vmem>>, vector<1x32x32xbf16>
    %410 = vector.shape_cast %409 : vector<1x32x32xbf16> to vector<32x32xbf16>
    %cst_129 = arith.constant dense<0.000000e+00> : vector<16x32xf32>
    %411 = tpu.matmul %408, %410, %cst_129 {dimension_numbers = #tpu.dot_dimension_numbers<[1], [0], [0], [1], [0, 0, 1, 1], [], []>} : vector<16x32xbf16>, vector<32x32xbf16>, vector<16x32xf32> -> vector<16x32xf32>
    %c1_130 = arith.constant 1 : index
    %c0_131 = arith.constant 0 : index
    %c0_132 = arith.constant 0 : index
    %412 = vector.load %arg7[%c1_130, %c0_131, %c0_132] : memref<2x1x32xf32, #tpu.memory_space<vmem>>, vector<1x1x32xf32>
    %413 = vector.shape_cast %412 : vector<1x1x32xf32> to vector<1x32xf32>
    %414 = vector.broadcast %413 : vector<1x32xf32> to vector<16x32xf32>
    %415 = arith.addf %411, %414 : vector<16x32xf32>
    %416 = arith.addf %244, %415 : vector<16x32xf32>
    %c1_133 = arith.constant 1 : index
    %c0_134 = arith.constant 0 : index
    %c0_135 = arith.constant 0 : index
    %417 = vector.load %arg8[%c1_133, %c0_134, %c0_135] : memref<2x1x32xf32, #tpu.memory_space<vmem>>, vector<1x1x32xf32>
    %418 = vector.shape_cast %417 : vector<1x1x32xf32> to vector<1x32xf32>
    %c1_136 = arith.constant 1 : index
    %c0_137 = arith.constant 0 : index
    %c0_138 = arith.constant 0 : index
    %419 = vector.load %arg9[%c1_136, %c0_137, %c0_138] : memref<2x1x32xf32, #tpu.memory_space<vmem>>, vector<1x1x32xf32>
    %420 = vector.shape_cast %419 : vector<1x1x32xf32> to vector<1x32xf32>
    %cst_139 = arith.constant dense<0.000000e+00> : vector<16xf32>
    %421 = vector.multi_reduction <add>, %416, %cst_139 [1] : vector<16x32xf32> to vector<16xf32>
    %422 = vector.shape_cast %421 : vector<16xf32> to vector<16x1xf32>
    %cst_140 = arith.constant 3.200000e+01 : f32
    %423 = vector.broadcast %cst_140 : f32 to vector<16x1xf32>
    %424 = arith.divf %422, %423 : vector<16x1xf32>
    %425 = vector.broadcast %424 : vector<16x1xf32> to vector<16x32xf32>
    %426 = arith.subf %416, %425 : vector<16x32xf32>
    %427 = arith.mulf %426, %426 : vector<16x32xf32>
    %cst_141 = arith.constant dense<0.000000e+00> : vector<16xf32>
    %428 = vector.multi_reduction <add>, %427, %cst_141 [1] : vector<16x32xf32> to vector<16xf32>
    %429 = vector.shape_cast %428 : vector<16xf32> to vector<16x1xf32>
    %cst_142 = arith.constant 3.200000e+01 : f32
    %430 = vector.broadcast %cst_142 : f32 to vector<16x1xf32>
    %431 = arith.divf %429, %430 : vector<16x1xf32>
    %cst_143 = arith.constant 9.99999974E-6 : f32
    %432 = vector.broadcast %cst_143 : f32 to vector<16x1xf32>
    %433 = arith.addf %431, %432 : vector<16x1xf32>
    %434 = math.rsqrt %433 : vector<16x1xf32>
    %435 = vector.broadcast %434 : vector<16x1xf32> to vector<16x32xf32>
    %436 = arith.mulf %426, %435 : vector<16x32xf32>
    %437 = vector.broadcast %418 : vector<1x32xf32> to vector<16x32xf32>
    %438 = arith.mulf %436, %437 : vector<16x32xf32>
    %439 = vector.broadcast %420 : vector<1x32xf32> to vector<16x32xf32>
    %440 = arith.addf %438, %439 : vector<16x32xf32>
    %441 = arith.truncf %440 : vector<16x32xf32> to vector<16x32xbf16>
    %c1_144 = arith.constant 1 : index
    %c0_145 = arith.constant 0 : index
    %c0_146 = arith.constant 0 : index
    %442 = vector.load %arg12[%c1_144, %c0_145, %c0_146] : memref<2x32x2048xbf16, #tpu.memory_space<vmem>>, vector<1x32x2048xbf16>
    %443 = vector.shape_cast %442 : vector<1x32x2048xbf16> to vector<32x2048xbf16>
    %cst_147 = arith.constant dense<0.000000e+00> : vector<16x2048xf32>
    %444 = tpu.matmul %441, %443, %cst_147 {dimension_numbers = #tpu.dot_dimension_numbers<[1], [0], [0], [1], [0, 0, 1, 1], [], []>} : vector<16x32xbf16>, vector<32x2048xbf16>, vector<16x2048xf32> -> vector<16x2048xf32>
    %c1_148 = arith.constant 1 : index
    %c0_149 = arith.constant 0 : index
    %c0_150 = arith.constant 0 : index
    %445 = vector.load %arg13[%c1_148, %c0_149, %c0_150] : memref<2x1x2048xf32, #tpu.memory_space<vmem>>, vector<1x1x2048xf32>
    %446 = vector.shape_cast %445 : vector<1x1x2048xf32> to vector<1x2048xf32>
    %447 = vector.broadcast %446 : vector<1x2048xf32> to vector<16x2048xf32>
    %448 = arith.addf %444, %447 : vector<16x2048xf32>
    %cst_151 = arith.constant 0.000000e+00 : f32
    %449 = vector.broadcast %cst_151 : f32 to vector<16x2048xf32>
    %450 = arith.maximumf %448, %449 : vector<16x2048xf32>
    %451 = arith.truncf %450 : vector<16x2048xf32> to vector<16x2048xbf16>
    %c1_152 = arith.constant 1 : index
    %c0_153 = arith.constant 0 : index
    %c0_154 = arith.constant 0 : index
    %452 = vector.load %arg14[%c1_152, %c0_153, %c0_154] : memref<2x2048x32xbf16, #tpu.memory_space<vmem>>, vector<1x2048x32xbf16>
    %453 = vector.shape_cast %452 : vector<1x2048x32xbf16> to vector<2048x32xbf16>
    %cst_155 = arith.constant dense<0.000000e+00> : vector<16x32xf32>
    %454 = tpu.matmul %451, %453, %cst_155 {dimension_numbers = #tpu.dot_dimension_numbers<[1], [0], [0], [1], [0, 0, 1, 1], [], []>} : vector<16x2048xbf16>, vector<2048x32xbf16>, vector<16x32xf32> -> vector<16x32xf32>
    %c1_156 = arith.constant 1 : index
    %c0_157 = arith.constant 0 : index
    %c0_158 = arith.constant 0 : index
    %455 = vector.load %arg15[%c1_156, %c0_157, %c0_158] : memref<2x1x32xf32, #tpu.memory_space<vmem>>, vector<1x1x32xf32>
    %456 = vector.shape_cast %455 : vector<1x1x32xf32> to vector<1x32xf32>
    %457 = vector.broadcast %456 : vector<1x32xf32> to vector<16x32xf32>
    %458 = arith.addf %454, %457 : vector<16x32xf32>
    %459 = arith.addf %440, %458 : vector<16x32xf32>
    %c1_159 = arith.constant 1 : index
    %c0_160 = arith.constant 0 : index
    %c0_161 = arith.constant 0 : index
    %460 = vector.load %arg10[%c1_159, %c0_160, %c0_161] : memref<2x1x32xf32, #tpu.memory_space<vmem>>, vector<1x1x32xf32>
    %461 = vector.shape_cast %460 : vector<1x1x32xf32> to vector<1x32xf32>
    %c1_162 = arith.constant 1 : index
    %c0_163 = arith.constant 0 : index
    %c0_164 = arith.constant 0 : index
    %462 = vector.load %arg11[%c1_162, %c0_163, %c0_164] : memref<2x1x32xf32, #tpu.memory_space<vmem>>, vector<1x1x32xf32>
    %463 = vector.shape_cast %462 : vector<1x1x32xf32> to vector<1x32xf32>
    %cst_165 = arith.constant dense<0.000000e+00> : vector<16xf32>
    %464 = vector.multi_reduction <add>, %459, %cst_165 [1] : vector<16x32xf32> to vector<16xf32>
    %465 = vector.shape_cast %464 : vector<16xf32> to vector<16x1xf32>
    %cst_166 = arith.constant 3.200000e+01 : f32
    %466 = vector.broadcast %cst_166 : f32 to vector<16x1xf32>
    %467 = arith.divf %465, %466 : vector<16x1xf32>
    %468 = vector.broadcast %467 : vector<16x1xf32> to vector<16x32xf32>
    %469 = arith.subf %459, %468 : vector<16x32xf32>
    %470 = arith.mulf %469, %469 : vector<16x32xf32>
    %cst_167 = arith.constant dense<0.000000e+00> : vector<16xf32>
    %471 = vector.multi_reduction <add>, %470, %cst_167 [1] : vector<16x32xf32> to vector<16xf32>
    %472 = vector.shape_cast %471 : vector<16xf32> to vector<16x1xf32>
    %cst_168 = arith.constant 3.200000e+01 : f32
    %473 = vector.broadcast %cst_168 : f32 to vector<16x1xf32>
    %474 = arith.divf %472, %473 : vector<16x1xf32>
    %cst_169 = arith.constant 9.99999974E-6 : f32
    %475 = vector.broadcast %cst_169 : f32 to vector<16x1xf32>
    %476 = arith.addf %474, %475 : vector<16x1xf32>
    %477 = math.rsqrt %476 : vector<16x1xf32>
    %478 = vector.broadcast %477 : vector<16x1xf32> to vector<16x32xf32>
    %479 = arith.mulf %469, %478 : vector<16x32xf32>
    %480 = vector.broadcast %461 : vector<1x32xf32> to vector<16x32xf32>
    %481 = arith.mulf %479, %480 : vector<16x32xf32>
    %482 = vector.broadcast %463 : vector<1x32xf32> to vector<16x32xf32>
    %483 = arith.addf %481, %482 : vector<16x32xf32>
    %484 = vector.extract_strided_slice %483 {offsets = [7, 0], sizes = [1, 32], strides = [1, 1]} : vector<16x32xf32> to vector<1x32xf32>
    %485 = vector.extract_strided_slice %483 {offsets = [15, 0], sizes = [1, 32], strides = [1, 1]} : vector<16x32xf32> to vector<1x32xf32>
    %486 = tpu.concatenate %484, %485 in 0 : vector<1x32xf32>, vector<1x32xf32> -> vector<2x32xf32>
    %c0_170 = arith.constant 0 : index
    %c0_171 = arith.constant 0 : index
    %487 = vector.load %arg16[%c0_170, %c0_171] : memref<32x128xf32, #tpu.memory_space<vmem>>, vector<32x128xf32>
    %cst_172 = arith.constant dense<0.000000e+00> : vector<2x128xf32>
    %488 = tpu.matmul %486, %487, %cst_172 {dimension_numbers = #tpu.dot_dimension_numbers<[1], [0], [0], [1], [0, 0, 1, 1], [], []>} : vector<2x32xf32>, vector<32x128xf32>, vector<2x128xf32> -> vector<2x128xf32>
    %c0_173 = arith.constant 0 : index
    %c0_174 = arith.constant 0 : index
    %489 = vector.load %arg17[%c0_173, %c0_174] : memref<1x128xf32, #tpu.memory_space<vmem>>, vector<1x128xf32>
    %490 = vector.broadcast %489 : vector<1x128xf32> to vector<2x128xf32>
    %491 = arith.addf %488, %490 : vector<2x128xf32>
    %c0_175 = arith.constant 0 : index
    %c0_176 = arith.constant 0 : index
    %492 = vector.load %arg18[%c0_175, %c0_176] : memref<2x128xf32, #tpu.memory_space<vmem>>, vector<2x128xf32>
    tpu.vector_store %arg18[%c0_175, %c0_176], %491 {strides = array<i32>} : memref<2x128xf32, #tpu.memory_space<vmem>>, vector<2x128xf32>,
    return
  }
  func.func @transform_0(%arg0: i32) -> (i32, i32) {
    %c0_i32 = arith.constant 0 : i32
    %c0_i32_0 = arith.constant 0 : i32
    %c0_i32_1 = arith.constant 0 : i32
    return %c0_i32, %c0_i32_0 : i32, i32
  }
  func.func @transform_1(%arg0: i32) -> (i32, i32) {
    %c0_i32 = arith.constant 0 : i32
    %c0_i32_0 = arith.constant 0 : i32
    %c0_i32_1 = arith.constant 0 : i32
    return %c0_i32, %c0_i32_0 : i32, i32
  }
  func.func @transform_2(%arg0: i32) -> (i32, i32) {
    %c0_i32 = arith.constant 0 : i32
    %c0_i32_0 = arith.constant 0 : i32
    %c0_i32_1 = arith.constant 0 : i32
    return %c0_i32, %c0_i32_0 : i32, i32
  }
  func.func @transform_3(%arg0: i32) -> (i32, i32, i32) {
    %c0_i32 = arith.constant 0 : i32
    %c0_i32_0 = arith.constant 0 : i32
    %c0_i32_1 = arith.constant 0 : i32
    %c0_i32_2 = arith.constant 0 : i32
    return %c0_i32, %c0_i32_0, %c0_i32_1 : i32, i32, i32
  }
  func.func @transform_4(%arg0: i32) -> (i32, i32, i32) {
    %c0_i32 = arith.constant 0 : i32
    %c0_i32_0 = arith.constant 0 : i32
    %c0_i32_1 = arith.constant 0 : i32
    %c0_i32_2 = arith.constant 0 : i32
    return %c0_i32, %c0_i32_0, %c0_i32_1 : i32, i32, i32
  }
  func.func @transform_5(%arg0: i32) -> (i32, i32, i32) {
    %c0_i32 = arith.constant 0 : i32
    %c0_i32_0 = arith.constant 0 : i32
    %c0_i32_1 = arith.constant 0 : i32
    %c0_i32_2 = arith.constant 0 : i32
    return %c0_i32, %c0_i32_0, %c0_i32_1 : i32, i32, i32
  }
  func.func @transform_6(%arg0: i32) -> (i32, i32, i32) {
    %c0_i32 = arith.constant 0 : i32
    %c0_i32_0 = arith.constant 0 : i32
    %c0_i32_1 = arith.constant 0 : i32
    %c0_i32_2 = arith.constant 0 : i32
    return %c0_i32, %c0_i32_0, %c0_i32_1 : i32, i32, i32
  }
  func.func @transform_7(%arg0: i32) -> (i32, i32, i32) {
    %c0_i32 = arith.constant 0 : i32
    %c0_i32_0 = arith.constant 0 : i32
    %c0_i32_1 = arith.constant 0 : i32
    %c0_i32_2 = arith.constant 0 : i32
    return %c0_i32, %c0_i32_0, %c0_i32_1 : i32, i32, i32
  }
  func.func @transform_8(%arg0: i32) -> (i32, i32, i32) {
    %c0_i32 = arith.constant 0 : i32
    %c0_i32_0 = arith.constant 0 : i32
    %c0_i32_1 = arith.constant 0 : i32
    %c0_i32_2 = arith.constant 0 : i32
    return %c0_i32, %c0_i32_0, %c0_i32_1 : i32, i32, i32
  }
  func.func @transform_9(%arg0: i32) -> (i32, i32, i32) {
    %c0_i32 = arith.constant 0 : i32
    %c0_i32_0 = arith.constant 0 : i32
    %c0_i32_1 = arith.constant 0 : i32
    %c0_i32_2 = arith.constant 0 : i32
    return %c0_i32, %c0_i32_0, %c0_i32_1 : i32, i32, i32
  }
  func.func @transform_10(%arg0: i32) -> (i32, i32, i32) {
    %c0_i32 = arith.constant 0 : i32
    %c0_i32_0 = arith.constant 0 : i32
    %c0_i32_1 = arith.constant 0 : i32
    %c0_i32_2 = arith.constant 0 : i32
    return %c0_i32, %c0_i32_0, %c0_i32_1 : i32, i32, i32
  }
  func.func @transform_11(%arg0: i32) -> (i32, i32, i32) {
    %c0_i32 = arith.constant 0 : i32
    %c0_i32_0 = arith.constant 0 : i32
    %c0_i32_1 = arith.constant 0 : i32
    %c0_i32_2 = arith.constant 0 : i32
    return %c0_i32, %c0_i32_0, %c0_i32_1 : i32, i32, i32
  }
  func.func @transform_12(%arg0: i32) -> (i32, i32, i32) {
    %c0_i32 = arith.constant 0 : i32
    %c0_i32_0 = arith.constant 0 : i32
    %c0_i32_1 = arith.constant 0 : i32
    %c0_i32_2 = arith.constant 0 : i32
    return %c0_i32, %c0_i32_0, %c0_i32_1 : i32, i32, i32
  }
  func.func @transform_13(%arg0: i32) -> (i32, i32, i32) {
    %c0_i32 = arith.constant 0 : i32
    %c0_i32_0 = arith.constant 0 : i32
    %c0_i32_1 = arith.constant 0 : i32
    %c0_i32_2 = arith.constant 0 : i32
    return %c0_i32, %c0_i32_0, %c0_i32_1 : i32, i32, i32
  }
  func.func @transform_14(%arg0: i32) -> (i32, i32, i32) {
    %c0_i32 = arith.constant 0 : i32
    %c0_i32_0 = arith.constant 0 : i32
    %c0_i32_1 = arith.constant 0 : i32
    %c0_i32_2 = arith.constant 0 : i32
    return %c0_i32, %c0_i32_0, %c0_i32_1 : i32, i32, i32
  }
  func.func @transform_15(%arg0: i32) -> (i32, i32) {
    %c0_i32 = arith.constant 0 : i32
    %c0_i32_0 = arith.constant 0 : i32
    %c0_i32_1 = arith.constant 0 : i32
    return %c0_i32, %c0_i32_0 : i32, i32
  }
  func.func @transform_16(%arg0: i32) -> (i32, i32) {
    %c0_i32 = arith.constant 0 : i32
    %c0_i32_0 = arith.constant 0 : i32
    %c0_i32_1 = arith.constant 0 : i32
    return %c0_i32, %c0_i32_0 : i32, i32
  }
  func.func @transform_17(%arg0: i32) -> (i32, i32) {
    %c0_i32 = arith.constant 0 : i32
    %c0_i32_0 = arith.constant 0 : i32
    %c0_i32_1 = arith.constant 0 : i32
    return %c0_i32, %c0_i32_0 : i32, i32
  }
}

</mosaic_0001>

<bundles_post_ra>
// kernel: forward.1
= control target key start
LH: loop header
LB: loop body
LE: loop exit
PB: predicated region body
PF: predicated region fallthrough
CT: control target
= control target key end

     0   :  { %vm74_vm0 = vcmask 1043456   ;;  %vm67_vm1 = vcmask 31744   ;;  %v8377_v3 = vmov 0.0   ;;  %vm8378_vm2 = vmmov 0   ;;  %s8380_s25 = smov 96   ;;  %s8382_s27 = smov 88   ;;  %s10237_s1 = inlined_call_operand.vmem [shape: f32[4,32], index: 1, kind: input, shape index: {}]   ;;  %s10238_s0 = inlined_call_operand.vmem [shape: f32[16,4], index: 0, kind: input, shape index: {}]   ;;  %s10239_s3 = inlined_call_operand.vmem [shape: bf16[2,32,96], index: 3, kind: input, shape index: {}]   ;;  %s10240_s2 = inlined_call_operand.vmem [shape: f32[1,32], index: 2, kind: input, shape index: {}]   ;;  %s10241_s4 = inlined_call_operand.vmem [shape: f32[2,1,96], index: 4, kind: input, shape index: {}]   ;;  %s10242_s5 = inlined_call_operand.vmem [shape: bf16[2,32,32], index: 5, kind: input, shape index: {}]   ;;  %s10243_s6 = inlined_call_operand.vmem [shape: f32[2,1,32], index: 6, kind: input, shape index: {}]   ;;  %s10244_s11 = inlined_call_operand.vmem [shape: bf16[2,32,2048], index: 11, kind: input, shape index: {}]   ;;  %s10245_s13 = inlined_call_operand.vmem [shape: bf16[2,2048,32], index: 13, kind: input, shape index: {}]   ;;  %s10246_s7 = inlined_call_operand.vmem [shape: f32[2,1,32], index: 7, kind: input, shape index: {}]   ;;  %s10247_s8 = inlined_call_operand.vmem [shape: f32[2,1,32], index: 8, kind: input, shape index: {}]   ;;  %s10248_s12 = inlined_call_operand.vmem [shape: f32[2,1,2048], index: 12, kind: input, shape index: {}]   ;;  %s10249_s14 = inlined_call_operand.vmem [shape: f32[2,1,32], index: 14, kind: input, shape index: {}]   ;;  %s10250_s9 = inlined_call_operand.vmem [shape: f32[2,1,32], index: 9, kind: input, shape index: {}]   ;;  %s10251_s10 = inlined_call_operand.vmem [shape: f32[2,1,32], index: 10, kind: input, shape index: {}]   ;;  %s10252_s15 = inlined_call_operand.vmem [shape: f32[32,128], index: 15, kind: input, shape index: {}]   ;;  %s10253_s16 = inlined_call_operand.vmem [shape: f32[1,128], index: 16, kind: input, shape index: {}]   ;;  %s10254_s17 = inlined_call_operand.vmem [shape: f32[2,128], index: 17, kind: output, shape index: {}]  }
   0x1   :  { %10269 = sst [smem:[#allocation2_spill]] %s10237_s1  ;;  %7751 = vmatprep.subr.bf16.mxu1 %v8377_v3  ;;  %v8033_v4 = vld [vmem:[%s10239_s3 + $0x8] sm:$0xff]   ;;  %v8034_v5 = vld [vmem:[%s10239_s3] sm:$0xff]   ;;  %7755 = vmatprep.mubr.msk.bf16.mxu1 %vm8378_vm2, %v8377_v3  ;;  %vm177_vm3 = vcmask 261120   ;;  %s8383_s28 = smov 72   ;;  %vm226_vm4 = vcmask 64512  }
   0x2   :  { %10270 = sst [smem:[#allocation3_spill]] %s10238_s0  ;;  %7752 = vmatpush3.bf16.msra.mxu1 %v8033_v4  ;;  %v6605_v7 = vld [vmem:[%s10240_s2] ss:$0 sm:$0xff]  ;;  %s8379_s2 = smov 120   ;;  %vm676_vm5 = vcmask 130048   ;;  %vm678_vm6 = vcmask 195584  }
   0x3   :  { %s10271_s26 = sld [smem:[#allocation2_spill]]  ;;  %7753 = vmatprep.subr.bf16.mxu1 %v8377_v3  ;;  %v6609_v12 = vld [vmem:[%s10241_s4] ss:$0 sm:$0xff]  ;;  %s10267_s1 = smov 104   ;;  %vm6514_vm7 = vcmask 1040384  }
   0x4   :  { %s10272_s29 = sld [smem:[#allocation3_spill]]  ;;  %s10265_s30 = smov 56  }
   0x5   :  { %s10263_s18 = smov 64   ;;  %s10261_s19 = smov 48  }
   0x6   :  { %7754 = vmatpush3.bf16.msra.mxu1 %v8034_v5  ;;  %s10256_s0 = smov 40   ;;  %s10260_s22 = smov 8  }
   0x7   :  { %7765 = vmatprep.subr.bf16.mxu1 %v8377_v3  ;;  %s10258_s20 = smov 24  }
   0x9   :  { %v59_v0 = vld [vmem:[%s10271_s26] sm:$0xf]  ;;  %s8381_s26 = smov 80  }
   0xa   :  { %v57_v1 = vld [vmem:[%s10272_s29] sm:$0xff]  ;;  %v58_v2 = vld [vmem:[%s10272_s29 + $0x8] sm:$0xff]  ;;  %7746 = vmatprep.subr.msk.mxu0 %vm74_vm0, %v59_v0  ;;  %s8384_s29 = smov 112  }
   0xb   :  { %7748 = vmatprep.mubr.msk.f32.mxu0 %vm67_vm1, %v57_v1  ;;  %7747 = vmatpush3.msk.msra.mxu0 %vm74_vm0, %v59_v0 }
   0xc   :  { %7749 = vmatmul.mubr.msk.f32.vlgmr.msra.gmra.mxu0 %vm67_vm1, %v58_v2  ;;  %7759 = vmatprep.subr.bf16.mxu0 %v8377_v3 }
   0xd   :  { %7761 = vmatprep.mubr.msk.bf16.mxu0 %vm8378_vm2, %v8377_v3 }
  0xcc   :  { %v7750_v6 = vpop.f32.mrf.mxu0 }
  0xcd   :  { %v8512_v9 = vadd.f32 %v7750_v6, %v6605_v7 }
  0xce   :  { %v144_v8 = vpop.f32.mrf.mxu0 }
  0xcf   :  { %v8514_v10 = vadd.f32 %v6605_v7, %v144_v8 }
  0xd1   :  { %v153_v11 = vpack.c.bf16 %v8512_v9, %v8514_v10 }
  0xd3   :  { %7756 = vmatmul.mubr.msk.bf16.vlgmr.msra.gmra.mxu1 %vm177_vm3, %v153_v11 }
  0xd4   :  { %7767 = vmatprep.mubr.msk.bf16.mxu1 %vm8378_vm2, %v8377_v3 }
 0x193   :  { %v215_v13 = vpop.f32.mrf.mxu1 }
 0x194   :  { %v216_v14 = vadd.f32 %v6609_v12, %v215_v13 }
 0x195   :  { %v7757_v15 = vpop.f32.mrf.mxu1 }
 0x196   :  { %v8524_v16 = vpack.c.bf16 %v216_v14, %v216_v14 }
 0x197   :  { %v218_v17 = vpop.f32.mrf.mxu1 }
 0x198   :  { %333 = vrot.lane.b32.xlu1 %v8524_v16, %s8379_s2  ;;  %224 = vrot.lane.b32.xlu0 %v8524_v16, %s8380_s25  ;;  %v219_v19 = vadd.f32 %v6609_v12, %v218_v17 }
 0x199   :  { %v7758_v18 = vpop.f32.mrf.mxu1 }
 0x19a   :  { %v8538_v20 = vpack.c.bf16 %v219_v19, %v219_v19 }
 0x19c   :  { %445 = vrot.lane.b32.xlu1 %v8524_v16, %s8381_s26  ;;  %335 = vrot.lane.b32.xlu0 %v8524_v16, %s8382_s27 }
 0x1a0   :  { %555 = vrot.lane.b32.xlu1 %v8524_v16, %s8383_s28  ;;  %443 = vrot.lane.b32.xlu0 %v8524_v16, %s8384_s29 }
 0x1a4   :  { %553 = vrot.lane.b32.xlu0 %v8524_v16, %s10267_s1  ;;  %682 = vrot.lane.b32.xlu1 %v8538_v20, %s8380_s25 }
 0x1a8   :  { %792 = vrot.lane.b32.xlu0 %v8538_v20, %s8382_s27  ;;  %790 = vrot.lane.b32.xlu1 %v8538_v20, %s8379_s2 }
 0x1ac   :  { %902 = vrot.lane.b32.xlu0 %v8538_v20, %s8381_s26  ;;  %900 = vrot.lane.b32.xlu1 %v8538_v20, %s8384_s29 }
 0x1b0   :  { %1012 = vrot.lane.b32.xlu0 %v8538_v20, %s8383_s28  ;;  %1010 = vrot.lane.b32.xlu1 %v8538_v20, %s10267_s1 }
 0x20a   :  { %v225_v21 = vpop.permute.xlu0 %224  ;;  %v334_v24 = vpop.permute.xlu1 %333 }
 0x20b   :  { %v231_v22 = vsel %vm226_vm4, %v225_v21, 0 }
 0x20c   :  { %7760 = vmatpush3.bf16.xpose.msra.mxu0 %v231_v22 }
 0x20d   :  { %7771 = vmatprep.subr.bf16.mxu0 %v8377_v3 }
 0x20e   :  { %v336_v23 = vpop.permute.xlu0 %335  ;;  %v446_v26 = vpop.permute.xlu1 %445 }
 0x20f   :  { %v341_v25 = vsel %vm226_vm4, %v336_v23, 0  ;;  %v451_v27 = vsel %vm226_vm4, %v446_v26, 0 }
 0x212   :  { %v556_v28 = vpop.permute.xlu1 %555  ;;  %v444_v29 = vpop.permute.xlu0 %443 }
 0x213   :  { %7762 = vmatmul.mubr.msk.bf16.vlgmr.msra.gmra.mxu0 %vm226_vm4, %v8524_v16  ;;  %v561_v30 = vsel %vm226_vm4, %v556_v28, 0 }
 0x214   :  { %7772 = vmatpush3.bf16.xpose.msra.mxu0 %v341_v25  ;;  %7773 = vmatprep.mubr.msk.bf16.mxu0 %vm8378_vm2, %v8377_v3 }
 0x215   :  { %7783 = vmatprep.subr.bf16.mxu0 %v8377_v3 }
 0x216   :  { %v683_v31 = vpop.permute.xlu1 %682  ;;  %v554_v32 = vpop.permute.xlu0 %553 }
 0x217   :  { %v688_v33 = vsel %vm226_vm4, %v683_v31, 0 }
 0x21a   :  { %v793_v34 = vpop.permute.xlu0 %792  ;;  %v791_v37 = vpop.permute.xlu1 %790 }
 0x21b   :  { %7774 = vmatmul.mubr.msk.bf16.vlgmr.msra.gmra.mxu0 %vm226_vm4, %v334_v24  ;;  %v798_v35 = vsel %vm226_vm4, %v793_v34, 0 }
 0x21c   :  { %7784 = vmatpush3.bf16.xpose.msra.mxu0 %v451_v27  ;;  %7785 = vmatprep.mubr.msk.bf16.mxu0 %vm8378_vm2, %v8377_v3 }
 0x21d   :  { %7795 = vmatprep.subr.bf16.mxu0 %v8377_v3 }
 0x21e   :  { %v903_v36 = vpop.permute.xlu0 %902  ;;  %v901_v40 = vpop.permute.xlu1 %900 }
 0x21f   :  { %v908_v38 = vsel %vm226_vm4, %v903_v36, 0 }
 0x222   :  { %v1013_v39 = vpop.permute.xlu0 %1012  ;;  %v1011_v42 = vpop.permute.xlu1 %1010 }
 0x223   :  { %7786 = vmatmul.mubr.msk.bf16.vlgmr.msra.gmra.mxu0 %vm226_vm4, %v444_v29  ;;  %v1018_v41 = vsel %vm226_vm4, %v1013_v39, 0 }
 0x224   :  { %7796 = vmatpush3.bf16.xpose.msra.mxu0 %v561_v30  ;;  %7797 = vmatprep.mubr.msk.bf16.mxu0 %vm8378_vm2, %v8377_v3 }
 0x225   :  { %7807 = vmatprep.subr.bf16.mxu0 %v8377_v3 }
 0x22b   :  { %7798 = vmatmul.mubr.msk.bf16.vlgmr.msra.gmra.mxu0 %vm226_vm4, %v554_v32 }
 0x22c   :  { %7808 = vmatpush3.bf16.xpose.msra.mxu0 %v688_v33  ;;  %7809 = vmatprep.mubr.msk.bf16.mxu0 %vm8378_vm2, %v8377_v3 }
 0x22d   :  { %7819 = vmatprep.subr.bf16.mxu0 %v8377_v3 }
 0x233   :  { %7810 = vmatmul.mubr.msk.bf16.vlgmr.msra.gmra.mxu0 %vm226_vm4, %v8538_v20 }
 0x234   :  { %7820 = vmatpush3.bf16.xpose.msra.mxu0 %v798_v35  ;;  %7821 = vmatprep.mubr.msk.bf16.mxu0 %vm8378_vm2, %v8377_v3 }
 0x235   :  { %7831 = vmatprep.subr.bf16.mxu0 %v8377_v3 }
 0x23b   :  { %7822 = vmatmul.mubr.msk.bf16.vlgmr.msra.gmra.mxu0 %vm226_vm4, %v791_v37 }
 0x23c   :  { %7832 = vmatpush3.bf16.xpose.msra.mxu0 %v908_v38  ;;  %7833 = vmatprep.mubr.msk.bf16.mxu0 %vm8378_vm2, %v8377_v3 }
 0x23d   :  { %7843 = vmatprep.subr.bf16.mxu0 %v8377_v3 }
 0x243   :  { %7834 = vmatmul.mubr.msk.bf16.vlgmr.msra.gmra.mxu0 %vm226_vm4, %v901_v40 }
 0x244   :  { %7844 = vmatpush3.bf16.xpose.msra.mxu0 %v1018_v41  ;;  %7845 = vmatprep.mubr.msk.bf16.mxu0 %vm8378_vm2, %v8377_v3 }
 0x245   :  { %7855 = vmatprep.subr.bf16.mxu0 %v8377_v3 }
 0x24b   :  { %7846 = vmatmul.mubr.msk.bf16.vlgmr.msra.gmra.mxu0 %vm226_vm4, %v1011_v42 }
 0x24c   :  { %7859 = vmatprep.mubr.msk.bf16.mxu0 %vm8378_vm2, %v8377_v3 }
 0x2d3   :  { %v267_v43 = vpop.f32.mrf.mxu0 }
 0x2d4   :  { %v273_v44 = vsel %vm226_vm4, %v267_v43, -inf }
 0x2d5   :  { %v7763_v45 = vpop.f32.mrf.mxu0  ;;  %274 = vmax.xlane.f32.xlu0 %v273_v44 }
 0x2d7   :  { %v270_v46 = vpop.f32.mrf.mxu0 }
 0x2d9   :  { %v7764_v47 = vpop.f32.mrf.mxu0 }
 0x2db   :  { %v377_v48 = vpop.f32.mrf.mxu0 }
 0x2dc   :  { %v383_v49 = vsel %vm226_vm4, %v377_v48, -inf }
 0x2dd   :  { %v7775_v50 = vpop.f32.mrf.mxu0  ;;  %384 = vmax.xlane.f32.xlu1 %v383_v49 }
 0x2df   :  { %v380_v51 = vpop.f32.mrf.mxu0 }
 0x2e1   :  { %v7776_v52 = vpop.f32.mrf.mxu0 }
 0x2e3   :  { %v487_v53 = vpop.f32.mrf.mxu0 }
 0x2e4   :  { %v493_v54 = vsel %vm226_vm4, %v487_v53, -inf }
 0x2e5   :  { %v7787_v55 = vpop.f32.mrf.mxu0  ;;  %494 = vmax.xlane.f32.xlu0 %v493_v54 }
 0x2e7   :  { %v490_v56 = vpop.f32.mrf.mxu0 }
 0x2e9   :  { %v7788_v57 = vpop.f32.mrf.mxu0 }
 0x2eb   :  { %v8601_v58 = vpop.f32.mrf.mxu0 }
 0x2ec   :  { %v603_v59 = vsel %vm226_vm4, %v8601_v58, -inf }
 0x2ed   :  { %v7799_v60 = vpop.f32.mrf.mxu0  ;;  %604 = vmax.xlane.f32.xlu0 %v603_v59 }
 0x2ef   :  { %v600_v61 = vpop.f32.mrf.mxu0 }
 0x2f1   :  { %v7800_v62 = vpop.f32.mrf.mxu0 }
 0x2f3   :  { %v8605_v63 = vpop.f32.mrf.mxu0 }
 0x2f4   :  { %v730_v0 = vsel %vm226_vm4, %v8605_v63, -inf }
 0x2f5   :  { %731 = vmax.xlane.f32.xlu1 %v730_v0  ;;  %v7811_v1 = vpop.f32.mrf.mxu0 }
 0x2f7   :  { %v727_v2 = vpop.f32.mrf.mxu0 }
 0x2f9   :  { %v7812_v4 = vpop.f32.mrf.mxu0 }
 0x2fb   :  { %v834_v5 = vpop.f32.mrf.mxu0 }
 0x2fc   :  { %v840_v6 = vsel %vm226_vm4, %v834_v5, -inf }
 0x2fd   :  { %841 = vmax.xlane.f32.xlu0 %v840_v6  ;;  %v7823_v7 = vpop.f32.mrf.mxu0 }
 0x2ff   :  { %v837_v8 = vpop.f32.mrf.mxu0 }
 0x301   :  { %v7824_v11 = vpop.f32.mrf.mxu0 }
 0x303   :  { %v944_v12 = vpop.f32.mrf.mxu0 }
 0x304   :  { %v950_v13 = vsel %vm226_vm4, %v944_v12, -inf }
 0x305   :  { %951 = vmax.xlane.f32.xlu1 %v950_v13  ;;  %v7835_v14 = vpop.f32.mrf.mxu0 }
 0x307   :  { %v947_v15 = vpop.f32.mrf.mxu0 }
 0x309   :  { %v7836_v17 = vpop.f32.mrf.mxu0 }
 0x30b   :  { %v8611_v18 = vpop.f32.mrf.mxu0 }
 0x30c   :  { %v1060_v23 = vsel %vm226_vm4, %v8611_v18, -inf }
 0x30d   :  { %v7847_v19 = vpop.f32.mrf.mxu0 }
 0x30f   :  { %v1057_v21 = vpop.f32.mrf.mxu0 }
 0x311   :  { %v7848_v22 = vpop.f32.mrf.mxu0 }
 0x313   :  { %395 = vrot.lane.b32.xlu0 %v8524_v16, %s10265_s30 }
 0x316   :  { %285 = vrot.lane.b32.xlu1 %v8524_v16, %s10263_s18 }
 0x332   :  { %1061 = vmax.xlane.f32.xlu0 %v1060_v23 }
 0x35e   :  { %v275_v24 = vpop.xlane.xlu0 %274 }
 0x35f   :  { %v276_v25 = vsub.f32 %v267_v43, %v275_v24 }
 0x361   :  { %v277_v26 = vmul.f32 1.442695, %v276_v25 }
 0x363   :  { %8297 = vpow2.f32 %v277_v26 }
 0x366   :  { %v385_v27 = vpop.xlane.xlu1 %384 }
 0x367   :  { %v386_v28 = vsub.f32 %v377_v48, %v385_v27 }
 0x369   :  { %v387_v29 = vmul.f32 1.442695, %v386_v28 }
 0x36b   :  { %8299 = vpow2.f32 %v387_v29 }
 0x36e   :  { %v495_v30 = vpop.xlane.xlu0 %494 }
 0x36f   :  { %v496_v31 = vsub.f32 %v487_v53, %v495_v30 }
 0x370   :  { %v8619_v32 = vpop.eup %8297 }
 0x371   :  { %v497_v33 = vmul.f32 1.442695, %v496_v31  ;;  %v279_v34 = vsel %vm226_vm4, %v8619_v32, 0.0 }
 0x372   :  { %280 = vadd.xlane.f32.xlu1 %v279_v34 }
 0x373   :  { %8301 = vpow2.f32 %v497_v33 }
 0x376   :  { %v605_v42 = vpop.xlane.xlu0 %604 }
 0x377   :  { %v606_v44 = vsub.f32 %v8601_v58, %v605_v42 }
 0x378   :  { %v8623_v35 = vpop.eup %8299 }
 0x379   :  { %v389_v36 = vsel %vm226_vm4, %v8623_v35, 0.0  ;;  %v607_v45 = vmul.f32 1.442695, %v606_v44 }
 0x37a   :  { %390 = vadd.xlane.f32.xlu0 %v389_v36 }
 0x37b   :  { %8303 = vpow2.f32 %v607_v45 }
 0x37e   :  { %v732_v39 = vpop.xlane.xlu1 %731 }
 0x37f   :  { %v733_v46 = vsub.f32 %v8605_v63, %v732_v39 }
 0x380   :  { %v8627_v37 = vpop.eup %8301 }
 0x381   :  { %v499_v38 = vsel %vm226_vm4, %v8627_v37, 0.0  ;;  %v734_v49 = vmul.f32 1.442695, %v733_v46 }
 0x382   :  { %500 = vadd.xlane.f32.xlu1 %v499_v38 }
 0x383   :  { %8305 = vpow2.f32 %v734_v49 }
 0x386   :  { %v842_v47 = vpop.xlane.xlu0 %841 }
 0x387   :  { %v843_v48 = vsub.f32 %v834_v5, %v842_v47 }
 0x388   :  { %v8304_v53 = vpop.eup %8303 }
 0x389   :  { %v844_v51 = vmul.f32 1.442695, %v843_v48 }
 0x38a   :  { %v396_v60 = vpop.permute.xlu0 %395 }
 0x38b   :  { %8307 = vpow2.f32 %v844_v51  ;;  %v401_v11 = vsel %vm74_vm0, %v396_v60, 0 }
 0x38e   :  { %v952_v40 = vpop.xlane.xlu1 %951 }
 0x38f   :  { %v953_v50 = vsub.f32 %v944_v12, %v952_v40 }
 0x390   :  { %505 = vrot.lane.b32.xlu0 %v8524_v16, %s10261_s19  ;;  %v8640_v54 = vpop.eup %8305 }
 0x391   :  { %v954_v52 = vmul.f32 1.442695, %v953_v50  ;;  %v736_v56 = vsel %vm226_vm4, %v8640_v54, 0.0 }
 0x392   :  { %v286_v41 = vpop.permute.xlu1 %285 }
 0x393   :  { %v291_v43 = vsel %vm74_vm0, %v286_v41, 0  ;;  %615 = vrot.lane.b32.xlu1 %v8524_v16, %s10256_s0  ;;  %8309 = vpow2.f32 %v954_v52  ;;  %v609_v16 = vsel %vm226_vm4, %v8304_v53, 0.0 }
 0x394   :  { %7766 = vmatpush3.bf16.msra.mxu1 %v291_v43 }
 0x395   :  { %7777 = vmatprep.subr.bf16.mxu1 %v8377_v3 }
 0x398   :  { %v8642_v55 = vpop.eup %8307 }
 0x399   :  { %v846_v58 = vsel %vm226_vm4, %v8642_v55, 0.0 }
 0x3a0   :  { %v8646_v57 = vpop.eup %8309 }
 0x3a1   :  { %v956_v59 = vsel %vm226_vm4, %v8646_v57, 0.0 }
 0x3af   :  { %610 = vadd.xlane.f32.xlu0 %v609_v16 }
 0x3b3   :  { %737 = vadd.xlane.f32.xlu0 %v736_v56 }
 0x3b7   :  { %847 = vadd.xlane.f32.xlu1 %v846_v58  ;;  %957 = vadd.xlane.f32.xlu0 %v956_v59 }
 0x3bb   :  { %v1062_v61 = vpop.xlane.xlu0 %1061 }
 0x3bc   :  { %v1063_v62 = vsub.f32 %v8611_v18, %v1062_v61 }
 0x3be   :  { %v1064_v63 = vmul.f32 1.442695, %v1063_v62 }
 0x3c0   :  { %8311 = vpow2.f32 %v1064_v63 }
 0x3c8   :  { %852 = vrot.lane.b32.xlu1 %v8538_v20, %s10265_s30  ;;  %s10279_s30 = smov 16  }
 0x3cc   :  { %962 = vrot.lane.b32.xlu1 %v8538_v20, %s10261_s19  ;;  %s10280_s19 = smov 24  }
 0x3cd   :  { %v8657_v0 = vpop.eup %8311 }
 0x3ce   :  { %v1066_v1 = vsel %vm226_vm4, %v8657_v0, 0.0 }
 0x3cf   :  { %1067 = vadd.xlane.f32.xlu0 %v1066_v1 }
 0x3d0   :  { %1072 = vrot.lane.b32.xlu1 %v8538_v20, %s10256_s0  ;;  %s10259_s0 = smov 16  }
 0x3e5   :  { %742 = vrot.lane.b32.xlu0 %v8538_v20, %s10263_s18 }
 0x3fb   :  { %v281_v2 = vpop.xlane.xlu1 %280 }
 0x3fc   :  { %8313 = vrcp.f32 %v281_v2 }
 0x403   :  { %v391_v4 = vpop.xlane.xlu0 %390 }
 0x404   :  { %8315 = vrcp.f32 %v391_v4 }
 0x407   :  { %v506_v13 = vpop.permute.xlu0 %505 }
 0x408   :  { %v511_v15 = vsel %vm74_vm0, %v506_v13, 0 }
 0x409   :  { %v8314_v5 = vpop.eup %8313 }
 0x40a   :  { %v283_v6 = vmul.f32 %v8314_v5, %v8619_v32 }
 0x40b   :  { %v501_v7 = vpop.xlane.xlu1 %500 }
 0x40c   :  { %8317 = vrcp.f32 %v501_v7  ;;  %v284_v8 = vpack.c.bf16 %v283_v6, %v283_v6 }
 0x40e   :  { %7768 = vmatmul.mubr.msk.bf16.vlgmr.msra.gmra.mxu1 %vm226_vm4, %v284_v8 }
 0x40f   :  { %7778 = vmatpush3.bf16.msra.mxu1 %v401_v11  ;;  %7779 = vmatprep.mubr.msk.bf16.mxu1 %vm8378_vm2, %v8377_v3  ;;  %v616_v19 = vpop.permute.xlu1 %615  ;;  %v8035_v11 = vld [vmem:[%s10242_s5 + $0x8] sm:$0xff]  }
 0x410   :  { %7789 = vmatprep.subr.bf16.mxu1 %v8377_v3  ;;  %v621_v22 = vsel %vm74_vm0, %v616_v19, 0  ;;  %7856 = vmatpush3.bf16.msra.mxu0 %v8035_v11 }
 0x411   :  { %v8316_v20 = vpop.eup %8315  ;;  %7857 = vmatprep.subr.bf16.mxu0 %v8377_v3 }
 0x412   :  { %v393_v12 = vmul.f32 %v8316_v20, %v8623_v35 }
 0x414   :  { %v394_v14 = vpack.c.bf16 %v393_v12, %v393_v12 }
 0x416   :  { %7780 = vmatmul.mubr.msk.bf16.vlgmr.msra.gmra.mxu1 %vm226_vm4, %v394_v14  ;;  %v8036_v14 = vld [vmem:[%s10242_s5] sm:$0xff]  }
 0x417   :  { %7790 = vmatpush3.bf16.msra.mxu1 %v511_v15  ;;  %7791 = vmatprep.mubr.msk.bf16.mxu1 %vm8378_vm2, %v8377_v3 }
 0x418   :  { %7801 = vmatprep.subr.bf16.mxu1 %v8377_v3  ;;  %7858 = vmatpush3.bf16.msra.mxu0 %v8036_v14 }
 0x419   :  { %v8318_v17 = vpop.eup %8317 }
 0x41a   :  { %v503_v18 = vmul.f32 %v8318_v17, %v8627_v37 }
 0x41c   :  { %v504_v21 = vpack.c.bf16 %v503_v18, %v503_v18 }
 0x41e   :  { %7792 = vmatmul.mubr.msk.bf16.vlgmr.msra.gmra.mxu1 %vm226_vm4, %v504_v21 }
 0x41f   :  { %7802 = vmatpush3.bf16.msra.mxu1 %v621_v22  ;;  %7803 = vmatprep.mubr.msk.bf16.mxu1 %vm8378_vm2, %v8377_v3 }
 0x420   :  { %7813 = vmatprep.subr.bf16.mxu1 %v8377_v3 }
 0x438   :  { %v611_v23 = vpop.xlane.xlu0 %610 }
 0x439   :  { %8319 = vrcp.f32 %v611_v23 }
 0x43c   :  { %v738_v26 = vpop.xlane.xlu0 %737 }
 0x43d   :  { %8321 = vrcp.f32 %v738_v26 }
 0x440   :  { %v848_v28 = vpop.xlane.xlu1 %847  ;;  %v958_v29 = vpop.xlane.xlu0 %957 }
 0x441   :  { %8323 = vrcp.f32 %v848_v28 }
 0x442   :  { %8325 = vrcp.f32 %v958_v29 }
 0x444   :  { %v853_v35 = vpop.permute.xlu1 %852 }
 0x445   :  { %v858_v38 = vsel %vm74_vm0, %v853_v35, 0 }
 0x446   :  { %v8320_v24 = vpop.eup %8319 }
 0x447   :  { %v613_v25 = vmul.f32 %v8320_v24, %v8304_v53 }
 0x448   :  { %v963_v40 = vpop.permute.xlu1 %962 }
 0x449   :  { %v614_v27 = vpack.c.bf16 %v613_v25, %v613_v25  ;;  %v968_v43 = vsel %vm74_vm0, %v963_v40, 0 }
 0x44a   :  { %v8322_v30 = vpop.eup %8321 }
 0x44b   :  { %7804 = vmatmul.mubr.msk.bf16.vlgmr.msra.gmra.mxu1 %vm226_vm4, %v614_v27  ;;  %v740_v32 = vmul.f32 %v8322_v30, %v8640_v54 }
 0x44c   :  { %7815 = vmatprep.mubr.msk.bf16.mxu1 %vm8378_vm2, %v8377_v3  ;;  %v1073_v45 = vpop.permute.xlu1 %1072 }
 0x44d   :  { %v741_v36 = vpack.c.bf16 %v740_v32, %v740_v32  ;;  %v1078_v48 = vsel %vm74_vm0, %v1073_v45, 0 }
 0x44e   :  { %v8324_v37 = vpop.eup %8323 }
 0x44f   :  { %v850_v39 = vmul.f32 %v8324_v37, %v8642_v55  ;;  %v8326_v42 = vpop.eup %8325 }
 0x450   :  { %v960_v44 = vmul.f32 %v8326_v42, %v8646_v57 }
 0x451   :  { %v851_v41 = vpack.c.bf16 %v850_v39, %v850_v39 }
 0x452   :  { %v961_v46 = vpack.c.bf16 %v960_v44, %v960_v44 }
 0x458   :  { %v1068_v31 = vpop.xlane.xlu0 %1067 }
 0x459   :  { %8327 = vrcp.f32 %v1068_v31 }
 0x45c   :  { %v743_v33 = vpop.permute.xlu0 %742 }
 0x45d   :  { %v748_v34 = vsel %vm74_vm0, %v743_v33, 0 }
 0x45e   :  { %7814 = vmatpush3.bf16.msra.mxu1 %v748_v34 }
 0x45f   :  { %7825 = vmatprep.subr.bf16.mxu1 %v8377_v3 }
 0x461   :  { %7816 = vmatmul.mubr.msk.bf16.vlgmr.msra.gmra.mxu1 %vm226_vm4, %v741_v36 }
 0x462   :  { %7826 = vmatpush3.bf16.msra.mxu1 %v858_v38  ;;  %7827 = vmatprep.mubr.msk.bf16.mxu1 %vm8378_vm2, %v8377_v3 }
 0x463   :  { %7837 = vmatprep.subr.bf16.mxu1 %v8377_v3 }
 0x466   :  { %v8328_v47 = vpop.eup %8327 }
 0x467   :  { %v1070_v49 = vmul.f32 %v8328_v47, %v8657_v0 }
 0x469   :  { %7828 = vmatmul.mubr.msk.bf16.vlgmr.msra.gmra.mxu1 %vm226_vm4, %v851_v41  ;;  %v1071_v50 = vpack.c.bf16 %v1070_v49, %v1070_v49 }
 0x46a   :  { %7838 = vmatpush3.bf16.msra.mxu1 %v968_v43  ;;  %7839 = vmatprep.mubr.msk.bf16.mxu1 %vm8378_vm2, %v8377_v3  ;;  %v6629_v43 = vld [vmem:[%s10243_s6] ss:$0 sm:$0xff] }
 0x46b   :  { %7849 = vmatprep.subr.bf16.mxu1 %v8377_v3 }
 0x471   :  { %7840 = vmatmul.mubr.msk.bf16.vlgmr.msra.gmra.mxu1 %vm226_vm4, %v961_v46 }
 0x472   :  { %7850 = vmatpush3.bf16.msra.mxu1 %v1078_v48  ;;  %7851 = vmatprep.mubr.msk.bf16.mxu1 %vm8378_vm2, %v8377_v3 }
 0x479   :  { %7852 = vmatmul.mubr.msk.bf16.vlgmr.msra.gmra.mxu1 %vm226_vm4, %v1071_v50 }
 0x4ce   :  { %v327_v51 = vpop.f32.mrf.mxu1 }
 0x4d0   :  { %v7769_v52 = vpop.f32.mrf.mxu1 }
 0x4d2   :  { %v330_v53 = vpop.f32.mrf.mxu1 }
 0x4d4   :  { %v7770_v16 = vpop.f32.mrf.mxu1 }
 0x4d6   :  { %v437_v54 = vpop.f32.mrf.mxu1 }
 0x4d8   :  { %v7781_v55 = vpop.f32.mrf.mxu1 }
 0x4da   :  { %v440_v56 = vpop.f32.mrf.mxu1 }
 0x4dc   :  { %v7782_v57 = vpop.f32.mrf.mxu1 }
 0x4de   :  { %v547_v58 = vpop.f32.mrf.mxu1 }
 0x4e0   :  { %v7793_v59 = vpop.f32.mrf.mxu1 }
 0x4e2   :  { %v550_v60 = vpop.f32.mrf.mxu1 }
 0x4e4   :  { %v7794_v61 = vpop.f32.mrf.mxu1 }
 0x50b   :  { %v657_v62 = vpop.f32.mrf.mxu1 }
 0x50d   :  { %v7805_v63 = vpop.f32.mrf.mxu1 }
 0x50e   :  { %v1268_v63 = vld [vmem:[%s10244_s11 + $0x88] sm:$0xff] }
 0x50f   :  { %v660_v1 = vpop.f32.mrf.mxu1 }
 0x511   :  { %v7806_v2 = vpop.f32.mrf.mxu1 }
 0x512   :  { %v1276_v2 = vld [vmem:[%s10244_s11 + $0xc8] sm:$0xff] }
 0x521   :  { %v784_v0 = vpop.f32.mrf.mxu1 }
 0x523   :  { %v7817_v4 = vpop.f32.mrf.mxu1 }
 0x524   :  { %v6653_v4 = vcombine.low %v1268_v63, %v1276_v2 }
 0x525   :  { %v787_v5 = vpop.f32.mrf.mxu1 }
 0x526   :  { %v6654_v5 = vcombine.high %v1268_v63, %v1276_v2  ;;  %v1282_v63 = vld [vmem:[%s10244_s11 + $0xf8] sm:$0xff] }
 0x527   :  { %v7818_v6 = vpop.f32.mrf.mxu1 }
 0x528   :  { %1585 = vmatprep.subr.bf16.mxu0 %v6654_v5  ;;  %v1251_v6 = vld [vmem:[%s10244_s11] sm:$0xff]  ;;  %v1257_v5 = vld [vmem:[%s10244_s11 + $0x30] sm:$0xff] }
 0x529   :  { %v894_v7 = vpop.f32.mrf.mxu1 }
 0x52a   :  { %v8003_v8 = vpack.i.bf16 %v894_v7, %v437_v54  ;;  %v1259_v7 = vld [vmem:[%s10244_s11 + $0x40] sm:$0xff] }
 0x52b   :  { %v7829_v20 = vpop.f32.mrf.mxu1  ;;  %v6636_v11 = vcombine.high %v1251_v6, %v1259_v7 }
 0x52c   :  { %8004 = vrot.lane.b32.xlu1 %v8003_v8, %s10260_s22  ;;  %v1252_v8 = vld [vmem:[%s10244_s11 + $0x8] sm:$0xff]  ;;  %s10278_s22 = smov 8  }
 0x52d   :  { %v897_v12 = vpop.f32.mrf.mxu1  ;;  %v1260_v20 = vld [vmem:[%s10244_s11 + $0x48] sm:$0xff] }
 0x52e   :  { %v6635_v12 = vcombine.low %v1251_v6, %v1259_v7  ;;  %v6638_v14 = vcombine.high %v1252_v8, %v1260_v20  ;;  %v1265_v6 = vld [vmem:[%s10244_s11 + $0x70] sm:$0xff]  ;;  %v1258_v7 = vld [vmem:[%s10244_s11 + $0x38] sm:$0xff] }
 0x52f   :  { %v7830_v13 = vpop.f32.mrf.mxu1 }
 0x530   :  { %v6637_v13 = vcombine.low %v1252_v8, %v1260_v20  ;;  %v1266_v8 = vld [vmem:[%s10244_s11 + $0x78] sm:$0xff] }
 0x531   :  { %v1004_v15 = vpop.f32.mrf.mxu1 }
 0x532   :  { %v8008_v17 = vpack.i.bf16 %v1004_v15, %v547_v58  ;;  %v1269_v15 = vld [vmem:[%s10244_s11 + $0x90] sm:$0xff] }
 0x533   :  { %v7841_v18 = vpop.f32.mrf.mxu1 }
 0x534   :  { %8009 = vrot.lane.b32.xlu1 %v8008_v17, %s10259_s0  ;;  %v1277_v17 = vld [vmem:[%s10244_s11 + $0xd0] sm:$0xff]  ;;  %v1270_v18 = vld [vmem:[%s10244_s11 + $0x98] sm:$0xff] }
 0x535   :  { %v1007_v19 = vpop.f32.mrf.mxu1 }
 0x536   :  { %v8393_v19 = vmov 0  }
 0x537   :  { %v7842_v21 = vpop.f32.mrf.mxu1  ;;  %1562 = vmatprep.mubr.bf16.mxu1 %v8393_v19 }
 0x538   :  { %v6656_v21 = vcombine.high %v1269_v15, %v1277_v17 }
 0x539   :  { %v1114_v22 = vpop.f32.mrf.mxu1 }
 0x53a   :  { %v8013_v23 = vpack.i.bf16 %v1114_v22, %v657_v62  ;;  %v1275_v62 = vld [vmem:[%s10244_s11 + $0xc0] sm:$0xff]  ;;  %v1278_v22 = vld [vmem:[%s10244_s11 + $0xd8] sm:$0xff] }
 0x53b   :  { %v7853_v24 = vpop.f32.mrf.mxu1 }
 0x53c   :  { %8014 = vrot.lane.b32.xlu0 %v8013_v23, %s10258_s20  ;;  %v6655_v23 = vcombine.low %v1269_v15, %v1277_v17  ;;  %v6657_v24 = vcombine.low %v1270_v18, %v1278_v22  ;;  %v6650_v15 = vcombine.high %v1258_v7, %v1266_v8  ;;  %v8037_v17 = vld [vmem:[%s10245_s13 + $0x78] sm:$0xff]  }
 0x53d   :  { %v1117_v25 = vpop.f32.mrf.mxu1 }
 0x53e   :  { %v6658_v25 = vcombine.high %v1270_v18, %v1278_v22  ;;  %v8038_v18 = vld [vmem:[%s10245_s13 + $0xf8] sm:$0xff]   ;;  %v6649_v22 = vcombine.low %v1258_v7, %v1266_v8 }
 0x53f   :  { %v7854_v26 = vpop.f32.mrf.mxu1 }
 0x59e   :  { %v8005_v27 = vpop.permute.xlu1 %8004 }
 0x59f   :  { %v8007_v29 = vunpack.i.h.bf16 %v8005_v27  ;;  %v8006_v30 = vunpack.i.l.bf16 %v8005_v27 }
 0x5a1   :  { %v1132_v34 = vsel %vm226_vm4, %v784_v0, %v8007_v29  ;;  %v675_v35 = vsel %vm226_vm4, %v327_v51, %v8006_v30 }
 0x5a6   :  { %v8010_v28 = vpop.permute.xlu1 %8009 }
 0x5a7   :  { %v8012_v31 = vunpack.i.h.bf16 %v8010_v28  ;;  %v8011_v32 = vunpack.i.l.bf16 %v8010_v28 }
 0x5a9   :  { %v1133_v38 = vsel %vm676_vm5, %v1132_v34, %v8012_v31  ;;  %v677_v39 = vsel %vm676_vm5, %v675_v35, %v8011_v32 }
 0x5ae   :  { %v8015_v33 = vpop.permute.xlu0 %8014 }
 0x5af   :  { %v8017_v36 = vunpack.i.h.bf16 %v8015_v33  ;;  %v8016_v37 = vunpack.i.l.bf16 %v8015_v33  ;;  %v6633_v33 = vld [vmem:[%s10246_s7] ss:$0 sm:$0xff] }
 0x5b1   :  { %v1134_v40 = vsel %vm678_vm6, %v1133_v38, %v8017_v36  ;;  %v679_v41 = vsel %vm678_vm6, %v677_v39, %v8016_v37  ;;  %v6634_v36 = vld [vmem:[%s10247_s8] ss:$0 sm:$0xff]  ;;  %v1253_v39 = vld [vmem:[%s10244_s11 + $0x10] sm:$0xff] }
 0x5b2   :  { %v1135_v42 = vpack.c.bf16 %v1134_v40, %v679_v41  ;;  %v1261_v40 = vld [vmem:[%s10244_s11 + $0x50] sm:$0xff]  ;;  %v1254_v41 = vld [vmem:[%s10244_s11 + $0x18] sm:$0xff] }
 0x5b4   :  { %7860 = vmatmul.mubr.msk.bf16.vlgmr.msra.gmra.mxu0 %vm177_vm3, %v1135_v42  ;;  %v1262_v42 = vld [vmem:[%s10244_s11 + $0x58] sm:$0xff] }
 0x5b5   :  { %1586 = vmatpush1.bf16.msra.mxu0 %v6653_v4  ;;  %1605 = vmatprep.mubr.bf16.mxu0 %v8393_v19 }
 0x5b6   :  { %1587 = vmatprep.subr.bf16.mxu0 %v6638_v14  ;;  %v6648_v14 = vcombine.high %v1257_v5, %v1265_v6 }
 0x5b9   :  { %1588 = vmatpush1.bf16.msra.mxu0 %v6637_v13 }
 0x5ba   :  { %1671 = vmatprep.subr.bf16.mxu0 %v6658_v25  ;;  %v8041_v25 = vld [vmem:[%s10245_s13 + $0x70] sm:$0xff]  }
 0x674   :  { %v1196_v44 = vpop.f32.mrf.mxu0 }
 0x675   :  { %v1197_v45 = vadd.f32 %v6629_v43, %v1196_v44 }
 0x676   :  { %v7861_v46 = vpop.f32.mrf.mxu0 }
 0x677   :  { %v1203_v47 = vadd.f32 %v1197_v45, %v8514_v10  ;;  %v1271_v46 = vld [vmem:[%s10244_s11 + $0xa0] sm:$0xff] }
 0x678   :  { %v1199_v48 = vpop.f32.mrf.mxu0 }
 0x679   :  { %v1200_v49 = vadd.f32 %v6629_v43, %v1199_v48  ;;  %v1207_v50 = vsel %vm177_vm3, %v1203_v47, 0.0  ;;  %v1272_v48 = vld [vmem:[%s10244_s11 + $0xa8] sm:$0xff] }
 0x67a   :  { %1208 = vadd.xlane.f32.xlu1 %v1207_v50  ;;  %v7862_v51 = vpop.f32.mrf.mxu0 }
 0x67b   :  { %v1204_v52 = vadd.f32 %v1200_v49, %v8512_v9  ;;  %v1267_v9 = vld [vmem:[%s10244_s11 + $0x80] sm:$0xff]  ;;  %v1280_v49 = vld [vmem:[%s10244_s11 + $0xe8] sm:$0xff]  ;;  %v6640_v51 = vcombine.high %v1253_v39, %v1261_v40 }
 0x67c   :  { %v6652_v1 = vcombine.high %v1267_v9, %v1275_v62  ;;  %v6651_v0 = vcombine.low %v1267_v9, %v1275_v62  ;;  %v1281_v9 = vld [vmem:[%s10244_s11 + $0xf0] sm:$0xff]  ;;  %v1274_v62 = vld [vmem:[%s10244_s11 + $0xb8] sm:$0xff] }
 0x67d   :  { %v1210_v53 = vsel %vm177_vm3, %v1204_v52, 0.0  ;;  %v6666_v20 = vcombine.high %v1274_v62, %v1282_v63  ;;  %v6665_v13 = vcombine.low %v1274_v62, %v1282_v63 }
 0x67e   :  { %1211 = vadd.xlane.f32.xlu0 %v1210_v53  ;;  %1542 = vmatprep.subr.bf16.mxu1 %v6652_v1  ;;  %v6639_v53 = vcombine.low %v1253_v39, %v1261_v40  ;;  %v8055_v39 = vld [vmem:[%s10245_s13 + $0x18] sm:$0xff]  }
 0x67f   :  { %1543 = vmatpush1.bf16.msra.mxu1 %v6651_v0  ;;  %v8056_v40 = vld [vmem:[%s10245_s13 + $0x98] sm:$0xff]  }
 0x680   :  { %1544 = vmatprep.subr.bf16.mxu1 %v6636_v11 }
 0x683   :  { %1545 = vmatpush1.bf16.msra.mxu1 %v6635_v12 }
 0x684   :  { %1628 = vmatprep.subr.bf16.mxu1 %v6656_v21  ;;  %v6647_v21 = vcombine.low %v1257_v5, %v1265_v6 }
 0x703   :  { %v1209_v16 = vpop.xlane.xlu1 %1208 }
 0x704   :  { %v1214_v54 = vmul.f32 0.03125, %v1209_v16  ;;  %v6641_v16 = vcombine.low %v1254_v41, %v1262_v42 }
 0x706   :  { %v1216_v55 = vsub.f32 %v1203_v47, %v1214_v54  ;;  %v1279_v47 = vld [vmem:[%s10244_s11 + $0xe0] sm:$0xff] }
 0x707   :  { %v1212_v56 = vpop.xlane.xlu0 %1211  ;;  %v1255_v54 = vld [vmem:[%s10244_s11 + $0x20] sm:$0xff] }
 0x708   :  { %v1215_v57 = vmul.f32 0.03125, %v1212_v56  ;;  %v1218_v58 = vmul.f32 %v1216_v55, %v1216_v55  ;;  %v1256_v56 = vld [vmem:[%s10244_s11 + $0x28] sm:$0xff] }
 0x70a   :  { %v1217_v59 = vsub.f32 %v1204_v52, %v1215_v57  ;;  %v1220_v10 = vsel %vm177_vm3, %v1218_v58, 0.0  ;;  %v6642_v52 = vcombine.high %v1254_v41, %v1262_v42  ;;  %v1264_v57 = vld [vmem:[%s10244_s11 + $0x68] sm:$0xff]  ;;  %v6660_v58 = vcombine.high %v1271_v46, %v1279_v47  ;;  %v8057_v41 = vld [vmem:[%s10245_s13 + $0x50] sm:$0xff]  }
 0x70b   :  { %1221 = vadd.xlane.f32.xlu0 %v1220_v10  ;;  %v6659_v10 = vcombine.low %v1271_v46, %v1279_v47  ;;  %v6646_v2 = vcombine.high %v1256_v56, %v1264_v57  ;;  %v6645_v4 = vcombine.low %v1256_v56, %v1264_v57  ;;  %v8058_v42 = vld [vmem:[%s10245_s13 + $0xd0] sm:$0xff]   ;;  %v8061_v47 = vld [vmem:[%s10245_s13 + $0x48] sm:$0xff]   ;;  %v1287_v56 = vlaneseq }
 0x70c   :  { %v1219_v60 = vmul.f32 %v1217_v59, %v1217_v59  ;;  %v8060_v46 = vld [vmem:[%s10245_s13 + $0x90] sm:$0xff]  }
 0x70d   :  { %v8969_v57 = vshrl.u32 %v1287_v56, 7  ;;  %v8076_v56 = vld [vmem:[%s10245_s13 + $0x1b0] sm:$0xff]  }
 0x70e   :  { %v1223_v61 = vsel %vm177_vm3, %v1219_v60, 0.0  ;;  %v6661_v60 = vcombine.low %v1272_v48, %v1280_v49 }
 0x70f   :  { %1224 = vadd.xlane.f32.xlu1 %v1223_v61  ;;  %v1273_v61 = vld [vmem:[%s10244_s11 + $0xb0] sm:$0xff]  ;;  %v8997_v8 = vsub.s32 5, %v8969_v57 }
 0x710   :  { %v6664_v11 = vcombine.high %v1273_v61, %v1281_v9  ;;  %v6663_v12 = vcombine.low %v1273_v61, %v1281_v9  ;;  %v8986_v61 = vld [vmem:[%s10248_s12] sm:$0xff] }
 0x794   :  { %v1222_v26 = vpop.xlane.xlu0 %1221 }
 0x795   :  { %v1226_v27 = vmul.f32 0.03125, %v1222_v26  ;;  %v8042_v26 = vld [vmem:[%s10245_s13 + $0xf0] sm:$0xff]  }
 0x797   :  { %v1228_v28 = vadd.f32 1e-05, %v1226_v27  ;;  %v8043_v27 = vld [vmem:[%s10245_s13 + $0x30] sm:$0xff]  }
 0x798   :  { %v1225_v29 = vpop.xlane.xlu1 %1224 }
 0x799   :  { %8329 = vrsqrt.f32 %v1228_v28  ;;  %v1227_v30 = vmul.f32 0.03125, %v1225_v29  ;;  %v8044_v28 = vld [vmem:[%s10245_s13 + $0xb0] sm:$0xff]   ;;  %v8045_v29 = vld [vmem:[%s10245_s13 + $0x68] sm:$0xff]  }
 0x79b   :  { %v1229_v31 = vadd.f32 1e-05, %v1227_v30  ;;  %v8046_v30 = vld [vmem:[%s10245_s13 + $0xe8] sm:$0xff]  }
 0x79d   :  { %8331 = vrsqrt.f32 %v1229_v31  ;;  %v8047_v31 = vld [vmem:[%s10245_s13 + $0x28] sm:$0xff]  }
 0x7a6   :  { %v8330_v32 = vpop.eup %8329 }
 0x7a7   :  { %v1232_v34 = vmul.f32 %v8330_v32, %v1216_v55  ;;  %v1263_v55 = vld [vmem:[%s10244_s11 + $0x60] sm:$0xff]  ;;  %v8048_v32 = vld [vmem:[%s10245_s13 + $0xa8] sm:$0xff]  }
 0x7a8   :  { %v6644_v1 = vcombine.high %v1255_v54, %v1263_v55  ;;  %v6643_v0 = vcombine.low %v1255_v54, %v1263_v55  ;;  %v8069_v54 = vld [vmem:[%s10245_s13 + $0x178] sm:$0xff]  }
 0x7a9   :  { %v1240_v37 = vmul.f32 %v6633_v33, %v1232_v34  ;;  %v8050_v34 = vld [vmem:[%s10245_s13 + $0xe0] sm:$0xff]   ;;  %v8070_v55 = vld [vmem:[%s10245_s13 + $0x1f8] sm:$0xff]  }
 0x7aa   :  { %v8332_v35 = vpop.eup %8331 }
 0x7ab   :  { %v1233_v38 = vmul.f32 %v8332_v35, %v1217_v59  ;;  %v8789_v44 = vadd.f32 %v6634_v36, %v1240_v37  ;;  %v6662_v59 = vcombine.high %v1272_v48, %v1280_v49  ;;  %v8051_v35 = vld [vmem:[%s10245_s13 + $0x20] sm:$0xff]   ;;  %v8053_v37 = vld [vmem:[%s10245_s13 + $0x58] sm:$0xff]   ;;  %v8062_v48 = vld [vmem:[%s10245_s13 + $0xc8] sm:$0xff]  }
 0x7ac   :  { %v8063_v49 = vld [vmem:[%s10245_s13 + $0x8] sm:$0xff]  }
 0x7ad   :  { %v1241_v43 = vmul.f32 %v6633_v33, %v1233_v38  ;;  %v8049_v33 = vld [vmem:[%s10245_s13 + $0x60] sm:$0xff]   ;;  %v8054_v38 = vld [vmem:[%s10245_s13 + $0xd8] sm:$0xff]  }
 0x7af   :  { %v8791_v45 = vadd.f32 %v6634_v36, %v1241_v43  ;;  %v8052_v36 = vld [vmem:[%s10245_s13 + $0xa0] sm:$0xff]   ;;  %v8059_v43 = vld [vmem:[%s10245_s13 + $0x10] sm:$0xff]  }
 0x7b1   :  { %v8807_v50 = vpack.c.bf16 %v8791_v45, %v8789_v44 }
 0x7b3   :  { %6667 = vmatmul.mubr.msk.bf16.vlgmr.msra.gmra.mxu1 %vm177_vm3, %v8807_v50  ;;  %6668 = vmatmul.mubr.msk.bf16.vlgmr.msra.gmra.mxu0 %vm177_vm3, %v8807_v50 }
 0x7b4   :  { %1629 = vmatpush1.bf16.msra.mxu1 %v6655_v23  ;;  %1672 = vmatpush1.bf16.msra.mxu0 %v6657_v24  ;;  %v8039_v23 = vld [vmem:[%s10245_s13 + $0x38] sm:$0xff]  }
 0x7b5   :  { %1630 = vmatprep.subr.bf16.mxu1 %v6640_v51  ;;  %1673 = vmatprep.subr.bf16.mxu0 %v6642_v52  ;;  %v8040_v24 = vld [vmem:[%s10245_s13 + $0xb8] sm:$0xff]   ;;  %v8065_v51 = vld [vmem:[%s10245_s13 + $0x40] sm:$0xff]  }
 0x7b6   :  { %1648 = vmatprep.mubr.bf16.mxu1 %v8393_v19  ;;  %1691 = vmatprep.mubr.bf16.mxu0 %v8393_v19  ;;  %v8066_v52 = vld [vmem:[%s10245_s13 + $0xc0] sm:$0xff]  }
 0x7b8   :  { %1631 = vmatpush1.bf16.msra.mxu1 %v6639_v53  ;;  %1674 = vmatpush1.bf16.msra.mxu0 %v6641_v16  ;;  %v8067_v53 = vld [vmem:[%s10245_s13] sm:$0xff]  }
 0x7b9   :  { %1714 = vmatprep.subr.bf16.mxu1 %v6660_v58  ;;  %1757 = vmatprep.subr.bf16.mxu0 %v6662_v59  ;;  %v8068_v16 = vld [vmem:[%s10245_s13 + $0x80] sm:$0xff]   ;;  %v8972_v58 = vsub.s32 1, %v8969_v57  ;;  %v8975_v59 = vsub.s32 3, %v8969_v57 }
 0x7bb   :  { %6669 = vmatmul.mubr.msk.bf16.vlgmr.msra.gmra.mxu1 %vm177_vm3, %v8807_v50  ;;  %6670 = vmatmul.mubr.msk.bf16.vlgmr.msra.gmra.mxu0 %vm177_vm3, %v8807_v50  ;;  %v1294_v63 = vrot.slane %v8986_v61, %v8972_v58 }
 0x7bc   :  { %1715 = vmatpush1.bf16.msra.mxu1 %v6659_v10  ;;  %1758 = vmatpush1.bf16.msra.mxu0 %v6661_v60  ;;  %v8978_v10 = vsub.s32 0, %v8969_v57  ;;  %v8981_v60 = vsub.s32 2, %v8969_v57 }
 0x7bd   :  { %1716 = vmatprep.subr.bf16.mxu1 %v6644_v1  ;;  %1759 = vmatprep.subr.bf16.mxu0 %v6646_v2  ;;  %v1302_v1 = vrot.slane %v8986_v61, %v8975_v59 }
 0x7be   :  { %1734 = vmatprep.mubr.bf16.mxu1 %v8393_v19  ;;  %1777 = vmatprep.mubr.bf16.mxu0 %v8393_v19  ;;  %v1290_v2 = vrot.slane %v8986_v61, %v8978_v10 }
 0x7c0   :  { %1717 = vmatpush1.bf16.msra.mxu1 %v6643_v0  ;;  %1760 = vmatpush1.bf16.msra.mxu0 %v6645_v4  ;;  %v1298_v0 = vrot.slane %v8986_v61, %v8981_v60 }
 0x7c1   :  { %1800 = vmatprep.subr.bf16.mxu1 %v6664_v11  ;;  %1843 = vmatprep.subr.bf16.mxu0 %v6666_v20  ;;  %v9000_v11 = vsub.s32 7, %v8969_v57 }
 0x7c3   :  { %6671 = vmatmul.mubr.msk.bf16.vlgmr.msra.gmra.mxu1 %vm177_vm3, %v8807_v50  ;;  %6672 = vmatmul.mubr.msk.bf16.vlgmr.msra.gmra.mxu0 %vm177_vm3, %v8807_v50 }
 0x7c4   :  { %1801 = vmatpush1.bf16.msra.mxu1 %v6663_v12  ;;  %1844 = vmatpush1.bf16.msra.mxu0 %v6665_v13 }
 0x7c5   :  { %1802 = vmatprep.subr.bf16.mxu1 %v6648_v14  ;;  %1845 = vmatprep.subr.bf16.mxu0 %v6650_v15 }
 0x7c6   :  { %1820 = vmatprep.mubr.bf16.mxu1 %v8393_v19  ;;  %1863 = vmatprep.mubr.bf16.mxu0 %v8393_v19 }
 0x7c8   :  { %1803 = vmatpush1.bf16.msra.mxu1 %v6647_v21  ;;  %1846 = vmatpush1.bf16.msra.mxu0 %v6649_v22 }
 0x7c9   :  { %7351 = vmatprep.subr.bf16.mxu1 %v8037_v17  ;;  %7373 = vmatprep.subr.bf16.mxu0 %v8038_v18 }
 0x7cb   :  { %6673 = vmatmul.mubr.msk.bf16.vlgmr.msra.gmra.mxu1 %vm177_vm3, %v8807_v50  ;;  %6674 = vmatmul.mubr.msk.bf16.vlgmr.msra.gmra.mxu0 %vm177_vm3, %v8807_v50  ;;  %v8064_v50 = vld [vmem:[%s10245_s13 + $0x88] sm:$0xff]  }
 0x7cc   :  { %7352 = vmatpush3.bf16.msra.mxu1 %v8039_v23  ;;  %7374 = vmatpush3.bf16.msra.mxu0 %v8040_v24 }
 0x7cd   :  { %7353 = vmatprep.subr.bf16.mxu1 %v8041_v25  ;;  %7375 = vmatprep.subr.bf16.mxu0 %v8042_v26 }
 0x7d0   :  { %7354 = vmatpush3.bf16.msra.mxu1 %v8043_v27  ;;  %7376 = vmatpush3.bf16.msra.mxu0 %v8044_v28  ;;  %v1310_v28 = vrot.slane %v8986_v61, %v8997_v8 }
 0x7d1   :  { %7355 = vmatprep.subr.bf16.mxu1 %v8045_v29  ;;  %7377 = vmatprep.subr.bf16.mxu0 %v8046_v30  ;;  %v1318_v29 = vrot.slane %v8986_v61, %v9000_v11 }
 0x7d4   :  { %7356 = vmatpush3.bf16.msra.mxu1 %v8047_v31  ;;  %7378 = vmatpush3.bf16.msra.mxu0 %v8048_v32 }
 0x7d5   :  { %7357 = vmatprep.subr.bf16.mxu1 %v8049_v33  ;;  %7379 = vmatprep.subr.bf16.mxu0 %v8050_v34 }
 0x7d8   :  { %7358 = vmatpush3.bf16.msra.mxu1 %v8051_v35  ;;  %7380 = vmatpush3.bf16.msra.mxu0 %v8052_v36 }
 0x7d9   :  { %7359 = vmatprep.subr.bf16.mxu1 %v8053_v37  ;;  %7381 = vmatprep.subr.bf16.mxu0 %v8054_v38 }
 0x7dc   :  { %7360 = vmatpush3.bf16.msra.mxu1 %v8055_v39  ;;  %7382 = vmatpush3.bf16.msra.mxu0 %v8056_v40  ;;  %v8071_v40 = vld [vmem:[%s10245_s13 + $0x138] sm:$0xff]  }
 0x7dd   :  { %7361 = vmatprep.subr.bf16.mxu1 %v8057_v41  ;;  %7383 = vmatprep.subr.bf16.mxu0 %v8058_v42  ;;  %v8072_v41 = vld [vmem:[%s10245_s13 + $0x1b8] sm:$0xff]  }
 0x7e0   :  { %7362 = vmatpush3.bf16.msra.mxu1 %v8059_v43  ;;  %7384 = vmatpush3.bf16.msra.mxu0 %v8060_v46 }
 0x7e1   :  { %7363 = vmatprep.subr.bf16.mxu1 %v8061_v47  ;;  %7385 = vmatprep.subr.bf16.mxu0 %v8062_v48  ;;  %v8073_v48 = vld [vmem:[%s10245_s13 + $0x170] sm:$0xff]  }
 0x7e4   :  { %7364 = vmatpush3.bf16.msra.mxu1 %v8063_v49  ;;  %7386 = vmatpush3.bf16.msra.mxu0 %v8064_v50  ;;  %v8074_v49 = vld [vmem:[%s10245_s13 + $0x1f0] sm:$0xff]  }
 0x7e5   :  { %7365 = vmatprep.subr.bf16.mxu1 %v8065_v51  ;;  %7387 = vmatprep.subr.bf16.mxu0 %v8066_v52 }
 0x7e8   :  { %7366 = vmatpush3.bf16.msra.mxu1 %v8067_v53  ;;  %7388 = vmatpush3.bf16.msra.mxu0 %v8068_v16 }
 0x7e9   :  { %7395 = vmatprep.subr.bf16.mxu1 %v8069_v54  ;;  %7417 = vmatprep.subr.bf16.mxu0 %v8070_v55  ;;  %v8075_v55 = vld [vmem:[%s10245_s13 + $0x130] sm:$0xff]  }
 0x873   :  { %v1564_v9 = vpop.f32.mrf.mxu1  ;;  %v1607_v62 = vpop.f32.mrf.mxu0 }
 0x874   :  { %v1565_v15 = vadd.f32 %v1564_v9, %v1290_v2  ;;  %v1608_v17 = vadd.f32 %v1607_v62, %v1298_v0  ;;  %v8077_v9 = vld [vmem:[%s10245_s13 + $0x168] sm:$0xff]  }
 0x875   :  { %v1566_v4 = vpop.f32.mrf.mxu1  ;;  %v1609_v5 = vpop.f32.mrf.mxu0 }
 0x876   :  { %v1567_v20 = vadd.f32 %v1566_v4, %v1294_v63  ;;  %v1610_v12 = vadd.f32 %v1609_v5, %v1302_v1  ;;  %v1874_v34 = vmax.f32 %v1565_v15, 0.0  ;;  %v1876_v35 = vmax.f32 %v1608_v17, 0.0  ;;  %v8084_v17 = vld [vmem:[%s10245_s13 + $0x1a0] sm:$0xff]  }
 0x877   :  { %v1568_v6 = vpop.f32.mrf.mxu1  ;;  %v1611_v7 = vpop.f32.mrf.mxu0 }
 0x878   :  { %v1569_v13 = vadd.f32 %v1568_v6, %v1290_v2  ;;  %v1612_v14 = vadd.f32 %v1611_v7, %v1298_v0  ;;  %v1875_v30 = vmax.f32 %v1567_v20, 0.0  ;;  %v1877_v31 = vmax.f32 %v1610_v12, 0.0  ;;  %v8078_v0 = vld [vmem:[%s10245_s13 + $0x1e8] sm:$0xff]   ;;  %v8081_v20 = vld [vmem:[%s10245_s13 + $0x160] sm:$0xff]  }
 0x879   :  { %v1570_v18 = vpop.f32.mrf.mxu1  ;;  %v1613_v21 = vpop.f32.mrf.mxu0  ;;  %v8079_v6 = vld [vmem:[%s10245_s13 + $0x128] sm:$0xff]   ;;  %v8082_v12 = vld [vmem:[%s10245_s13 + $0x1e0] sm:$0xff]  }
 0x87a   :  { %v1571_v22 = vadd.f32 %v1570_v18, %v1294_v63  ;;  %v1614_v23 = vadd.f32 %v1613_v21, %v1302_v1  ;;  %v1890_v24 = vmax.f32 %v1569_v13, 0.0  ;;  %v1892_v25 = vmax.f32 %v1612_v14, 0.0  ;;  %v8080_v7 = vld [vmem:[%s10245_s13 + $0x1a8] sm:$0xff]   ;;  %v8083_v14 = vld [vmem:[%s10245_s13 + $0x120] sm:$0xff]   ;;  %v8085_v18 = vld [vmem:[%s10245_s13 + $0x158] sm:$0xff]  }
 0x87b   :  { %v9002_v26 = vpop.f32.mrf.mxu1  ;;  %v9004_v27 = vpop.f32.mrf.mxu0  ;;  %v8086_v21 = vld [vmem:[%s10245_s13 + $0x1d8] sm:$0xff]  }
 0x87c   :  { %v1891_v32 = vmax.f32 %v1571_v22, 0.0  ;;  %v1893_v33 = vmax.f32 %v1614_v23, 0.0  ;;  %v1906_v42 = vpack.c.bf16 %v1890_v24, %v1874_v34  ;;  %v1908_v43 = vpack.c.bf16 %v1892_v25, %v1876_v35  ;;  %v8087_v23 = vld [vmem:[%s10245_s13 + $0x118] sm:$0xff]   ;;  %v8092_v35 = vld [vmem:[%s10245_s13 + $0x190] sm:$0xff]  }
 0x87d   :  { %v1652_v36 = vpop.f32.mrf.mxu1  ;;  %v1695_v37 = vpop.f32.mrf.mxu0  ;;  %v8088_v25 = vld [vmem:[%s10245_s13 + $0x198] sm:$0xff]  }
 0x87e   :  { %v1907_v38 = vpack.c.bf16 %v1891_v32, %v1875_v30  ;;  %v1909_v39 = vpack.c.bf16 %v1893_v33, %v1877_v31  ;;  %v1653_v50 = vadd.f32 %v1652_v36, %v1310_v28  ;;  %v1696_v51 = vadd.f32 %v1695_v37, %v1318_v29  ;;  %v8091_v33 = vld [vmem:[%s10245_s13 + $0x110] sm:$0xff]   ;;  %v8094_v36 = vld [vmem:[%s10245_s13 + $0x1c8] sm:$0xff]  }
 0x87f   :  { %v9016_v46 = vpop.f32.mrf.mxu1  ;;  %v9018_v47 = vpop.f32.mrf.mxu0  ;;  %v9079_v30 = vsub.s32 4, %v8969_v57  ;;  %v9082_v31 = vsub.s32 6, %v8969_v57  ;;  %v8093_v57 = vld [vmem:[%s10245_s13 + $0x148] sm:$0xff]  }
 0x880   :  { %2985 = vmatprep.mubr.bf16.mxu1 %v1907_v38  ;;  %3026 = vmatprep.mubr.bf16.mxu0 %v1909_v39  ;;  %v1879_v62 = vmax.f32 %v1653_v50, 0.0  ;;  %v1881_v63 = vmax.f32 %v1696_v51, 0.0  ;;  %v9107_v39 = vld [vmem:[%s10248_s12 + $0x8] sm:$0xff] }
 0x881   :  { %v1656_v52 = vpop.f32.mrf.mxu1  ;;  %v1699_v53 = vpop.f32.mrf.mxu0  ;;  %2986 = vmatmul.mubr.bf16.vlgmr.msra.gmra.mxu1 %v1906_v42  ;;  %3027 = vmatmul.mubr.bf16.vlgmr.msra.gmra.mxu0 %v1908_v43  ;;  %v1306_v37 = vrot.slane %v8986_v61, %v9079_v30  ;;  %v1314_v38 = vrot.slane %v8986_v61, %v9082_v31  ;;  %v1326_v43 = vrot.slane %v9107_v39, %v8972_v58  ;;  %v8096_v61 = vld [vmem:[%s10245_s13 + $0x188] sm:$0xff]  }
 0x882   :  { %v1657_v16 = vadd.f32 %v1656_v52, %v1310_v28  ;;  %v1700_v54 = vadd.f32 %v1699_v53, %v1318_v29  ;;  %7396 = vmatpush3.bf16.msra.mxu1 %v8071_v40  ;;  %7418 = vmatpush3.bf16.msra.mxu0 %v8072_v41  ;;  %v8089_v28 = vld [vmem:[%s10245_s13 + $0x150] sm:$0xff]   ;;  %v8095_v41 = vld [vmem:[%s10245_s13 + $0x108] sm:$0xff]   ;;  %v1334_v51 = vrot.slane %v9107_v39, %v8975_v59 }
 0x883   :  { %7397 = vmatprep.subr.bf16.mxu1 %v8073_v48  ;;  %7419 = vmatprep.subr.bf16.mxu0 %v8074_v49  ;;  %v9050_v13 = vpop.f32.mrf.mxu1  ;;  %v9055_v15 = vpop.f32.mrf.mxu0  ;;  %v8090_v29 = vld [vmem:[%s10245_s13 + $0x1d0] sm:$0xff]   ;;  %v1655_v42 = vadd.f32 %v9016_v46, %v1306_v37  ;;  %v8097_v49 = vld [vmem:[%s10245_s13 + $0x140] sm:$0xff]   ;;  %v1698_v50 = vadd.f32 %v9018_v47, %v1314_v38  ;;  %v1651_v52 = vadd.f32 %v9002_v26, %v1306_v37  ;;  %v8101_v26 = vld [vmem:[%s10245_s13 + $0x278] sm:$0xff]  }
 0x884   :  { %v1895_v1 = vmax.f32 %v1657_v16, 0.0  ;;  %v1897_v2 = vmax.f32 %v1700_v54, 0.0  ;;  %v8098_v46 = vld [vmem:[%s10245_s13 + $0x1c0] sm:$0xff]   ;;  %v1694_v16 = vadd.f32 %v9004_v27, %v1314_v38 }
 0x885   :  { %v1738_v22 = vpop.f32.mrf.mxu1  ;;  %v1781_v24 = vpop.f32.mrf.mxu0  ;;  %v1894_v47 = vmax.f32 %v1655_v42, 0.0  ;;  %v8115_v37 = vld [vmem:[%s10245_s13 + $0x220] sm:$0xff]   ;;  %v8118_v42 = vld [vmem:[%s10245_s13 + $0x2d8] sm:$0xff]  }
 0x886   :  { %v1911_v4 = vpack.c.bf16 %v1895_v1, %v1879_v62  ;;  %v1913_v5 = vpack.c.bf16 %v1897_v2, %v1881_v63  ;;  %7398 = vmatpush3.bf16.msra.mxu1 %v8075_v55  ;;  %7420 = vmatpush3.bf16.msra.mxu0 %v8076_v56  ;;  %v8099_v55 = vld [vmem:[%s10245_s13 + $0x100] sm:$0xff]   ;;  %v1739_v56 = vadd.f32 %v1738_v22, %v1326_v43  ;;  %v1896_v62 = vmax.f32 %v1698_v50, 0.0  ;;  %v8102_v63 = vld [vmem:[%s10245_s13 + $0x2f8] sm:$0xff]   ;;  %v8121_v50 = vld [vmem:[%s10245_s13 + $0x250] sm:$0xff]  }
 0x887   :  { %7399 = vmatprep.subr.bf16.mxu1 %v8077_v9  ;;  %7421 = vmatprep.subr.bf16.mxu0 %v8078_v0  ;;  %v9084_v32 = vpop.f32.mrf.mxu1  ;;  %v9089_v34 = vpop.f32.mrf.mxu0  ;;  %v8100_v9 = vld [vmem:[%s10245_s13 + $0x180] sm:$0xff]   ;;  %v1782_v27 = vadd.f32 %v1781_v24, %v1334_v51  ;;  %v1878_v1 = vmax.f32 %v1651_v52, 0.0  ;;  %v1880_v0 = vmax.f32 %v1694_v16, 0.0  ;;  %v8108_v24 = vld [vmem:[%s10245_s13 + $0x2b0] sm:$0xff]  }
 0x888   :  { %3067 = vmatprep.mubr.bf16.mxu1 %v1911_v4  ;;  %3108 = vmatprep.mubr.bf16.mxu0 %v1913_v5  ;;  %v8103_v5 = vld [vmem:[%s10245_s13 + $0x238] sm:$0xff]   ;;  %v8123_v52 = vld [vmem:[%s10245_s13 + $0x210] sm:$0xff]  }
 0x889   :  { %v1742_v40 = vpop.f32.mrf.mxu1  ;;  %v1785_v48 = vpop.f32.mrf.mxu0  ;;  %v8124_v16 = vld [vmem:[%s10245_s13 + $0x290] sm:$0xff]  }
 0x88a   :  { %7400 = vmatpush3.bf16.msra.mxu1 %v8079_v6  ;;  %7422 = vmatpush3.bf16.msra.mxu0 %v8080_v7  ;;  %v1743_v53 = vadd.f32 %v1742_v40, %v1326_v43  ;;  %v1786_v54 = vadd.f32 %v1785_v48, %v1334_v51  ;;  %v1910_v6 = vpack.c.bf16 %v1894_v47, %v1878_v1  ;;  %v1883_v7 = vmax.f32 %v1739_v56, 0.0  ;;  %v8116_v40 = vld [vmem:[%s10245_s13 + $0x2a0] sm:$0xff]   ;;  %v8119_v48 = vld [vmem:[%s10245_s13 + $0x218] sm:$0xff]   ;;  %v8122_v51 = vld [vmem:[%s10245_s13 + $0x2d0] sm:$0xff]  }
 0x88b   :  { %7401 = vmatprep.subr.bf16.mxu1 %v8081_v20  ;;  %7423 = vmatprep.subr.bf16.mxu0 %v8082_v12  ;;  %v8104_v20 = vld [vmem:[%s10245_s13 + $0x2b8] sm:$0xff]   ;;  %v1912_v12 = vpack.c.bf16 %v1896_v62, %v1880_v0  ;;  %v9182_v38 = vpop.f32.mrf.mxu0  ;;  %v1322_v47 = vrot.slane %v9107_v39, %v8978_v10  ;;  %v1330_v56 = vrot.slane %v9107_v39, %v8981_v60  ;;  %v8128_v1 = vld [vmem:[%s10245_s13 + $0x288] sm:$0xff]  }
 0x88c   :  { %v1899_v2 = vmax.f32 %v1743_v53, 0.0  ;;  %v1901_v4 = vmax.f32 %v1786_v54, 0.0  ;;  %v8125_v54 = vld [vmem:[%s10245_s13 + $0x248] sm:$0xff]  }
 0x88d   :  { %v1741_v62 = vadd.f32 %v9084_v32, %v1322_v47  ;;  %v1784_v0 = vadd.f32 %v9089_v34, %v1330_v56  ;;  %v8130_v32 = vld [vmem:[%s10245_s13 + $0x2c0] sm:$0xff]  }
 0x88e   :  { %7402 = vmatpush3.bf16.msra.mxu1 %v8083_v14  ;;  %7424 = vmatpush3.bf16.msra.mxu0 %v8084_v17  ;;  %v1885_v14 = vmax.f32 %v1782_v27, 0.0  ;;  %v8105_v17 = vld [vmem:[%s10245_s13 + $0x270] sm:$0xff]   ;;  %v1342_v27 = vrot.slane %v9107_v39, %v8997_v8 }
 0x88f   :  { %7403 = vmatprep.subr.bf16.mxu1 %v8085_v18  ;;  %7425 = vmatprep.subr.bf16.mxu0 %v8086_v21  ;;  %v1915_v18 = vpack.c.bf16 %v1899_v2, %v1883_v7  ;;  %v8106_v21 = vld [vmem:[%s10245_s13 + $0x2f0] sm:$0xff]   ;;  %v8129_v2 = vld [vmem:[%s10245_s13 + $0x240] sm:$0xff]   ;;  %v1780_v7 = vadd.f32 %v9055_v15, %v1330_v56  ;;  %v1898_v34 = vmax.f32 %v1741_v62, 0.0  ;;  %v8149_v56 = vld [vmem:[%s10245_s13 + $0x358] sm:$0xff]  }
 0x890   :  { %v1917_v22 = vpack.c.bf16 %v1901_v4, %v1885_v14  ;;  %v1350_v4 = vrot.slane %v9107_v39, %v9000_v11  ;;  %v8152_v62 = vld [vmem:[%s10245_s13 + $0x398] sm:$0xff]  }
 0x892   :  { %7404 = vmatpush3.bf16.msra.mxu1 %v8087_v23  ;;  %7426 = vmatpush3.bf16.msra.mxu0 %v8088_v25  ;;  %v8107_v23 = vld [vmem:[%s10245_s13 + $0x230] sm:$0xff]   ;;  %v8109_v25 = vld [vmem:[%s10245_s13 + $0x268] sm:$0xff]  }
 0x893   :  { %7405 = vmatprep.subr.bf16.mxu1 %v8089_v28  ;;  %7427 = vmatprep.subr.bf16.mxu0 %v8090_v29  ;;  %v8110_v28 = vld [vmem:[%s10245_s13 + $0x2e8] sm:$0xff]  }
 0x894   :  { %v8111_v29 = vld [vmem:[%s10245_s13 + $0x228] sm:$0xff]  }
 0x896   :  { %7406 = vmatpush3.bf16.msra.mxu1 %v8091_v33  ;;  %7428 = vmatpush3.bf16.msra.mxu0 %v8092_v35  ;;  %v8112_v33 = vld [vmem:[%s10245_s13 + $0x2a8] sm:$0xff]   ;;  %v8113_v35 = vld [vmem:[%s10245_s13 + $0x260] sm:$0xff]  }
 0x897   :  { %7407 = vmatprep.subr.bf16.mxu1 %v8093_v57  ;;  %7429 = vmatprep.subr.bf16.mxu0 %v8094_v36  ;;  %v8114_v57 = vld [vmem:[%s10245_s13 + $0x2e0] sm:$0xff]   ;;  %v9177_v36 = vpop.f32.mrf.mxu1 }
 0x899   :  { %v1824_v43 = vpop.f32.mrf.mxu1 }
 0x89a   :  { %7408 = vmatpush3.bf16.msra.mxu1 %v8095_v41  ;;  %7430 = vmatpush3.bf16.msra.mxu0 %v8096_v61  ;;  %v8117_v41 = vld [vmem:[%s10245_s13 + $0x258] sm:$0xff]   ;;  %v1867_v61 = vpop.f32.mrf.mxu0  ;;  %v1825_v14 = vadd.f32 %v1824_v43, %v1342_v27 }
 0x89b   :  { %7409 = vmatprep.subr.bf16.mxu1 %v8097_v49  ;;  %7431 = vmatprep.subr.bf16.mxu0 %v8098_v46  ;;  %v8120_v49 = vld [vmem:[%s10245_s13 + $0x298] sm:$0xff]   ;;  %v9205_v46 = vpop.f32.mrf.mxu1  ;;  %v1868_v15 = vadd.f32 %v1867_v61, %v1350_v4  ;;  %v8140_v61 = vld [vmem:[%s10245_s13 + $0x3b0] sm:$0xff]  }
 0x89c   :  { %v9210_v53 = vpop.f32.mrf.mxu0 }
 0x89e   :  { %7410 = vmatpush3.bf16.msra.mxu1 %v8099_v55  ;;  %7432 = vmatpush3.bf16.msra.mxu0 %v8100_v9  ;;  %v8126_v55 = vld [vmem:[%s10245_s13 + $0x2c8] sm:$0xff]   ;;  %v1828_v9 = vpop.f32.mrf.mxu1 }
 0x89f   :  { %7439 = vmatprep.subr.bf16.mxu1 %v8101_v26  ;;  %7461 = vmatprep.subr.bf16.mxu0 %v8102_v63  ;;  %v8127_v26 = vld [vmem:[%s10245_s13 + $0x208] sm:$0xff]   ;;  %v1871_v63 = vpop.f32.mrf.mxu0 }
 0x8a1   :  { %3068 = vmatmul.mubr.bf16.vlgmr.msra.gmra.mxu1 %v1910_v6  ;;  %3109 = vmatmul.mubr.bf16.vlgmr.msra.gmra.mxu0 %v1912_v12  ;;  %v1829_v6 = vadd.f32 %v1828_v9, %v1342_v27  ;;  %v8131_v12 = vld [vmem:[%s10245_s13 + $0x200] sm:$0xff]   ;;  %v8150_v9 = vld [vmem:[%s10245_s13 + $0x3d8] sm:$0xff]   ;;  %v8153_v27 = vld [vmem:[%s10245_s13 + $0x350] sm:$0xff]  }
 0x8a2   :  { %7440 = vmatpush3.bf16.msra.mxu1 %v8103_v5  ;;  %3149 = vmatprep.mubr.bf16.mxu1 %v1915_v18  ;;  %v1737_v5 = vadd.f32 %v9050_v13, %v1322_v47  ;;  %v8133_v13 = vld [vmem:[%s10245_s13 + $0x378] sm:$0xff]   ;;  %v1900_v18 = vmax.f32 %v1784_v0, 0.0  ;;  %v8148_v47 = vld [vmem:[%s10245_s13 + $0x3a0] sm:$0xff]   ;;  %v8157_v0 = vld [vmem:[%s10245_s13 + $0x348] sm:$0xff]  }
 0x8a3   :  { %7462 = vmatpush3.bf16.msra.mxu0 %v8104_v20  ;;  %3190 = vmatprep.mubr.bf16.mxu0 %v1917_v22  ;;  %v1872_v20 = vadd.f32 %v1871_v63, %v1350_v4  ;;  %v8154_v63 = vld [vmem:[%s10245_s13 + $0x3d0] sm:$0xff]   ;;  %v8158_v4 = vld [vmem:[%s10245_s13 + $0x3c8] sm:$0xff]  }
 0x8a4   :  { %7441 = vmatprep.subr.bf16.mxu1 %v8105_v17  ;;  %7463 = vmatprep.subr.bf16.mxu0 %v8106_v21  ;;  %v8132_v17 = vld [vmem:[%s10245_s13 + $0x280] sm:$0xff]   ;;  %v8134_v21 = vld [vmem:[%s10245_s13 + $0x3f8] sm:$0xff]   ;;  %v1882_v22 = vmax.f32 %v1737_v5, 0.0  ;;  %v1346_v5 = vrot.slane %v9107_v39, %v9082_v31 }
 0x8a6   :  { %7442 = vmatpush3.bf16.msra.mxu1 %v8107_v23  ;;  %v1903_v23 = vmax.f32 %v1829_v6, 0.0  ;;  %v8159_v6 = vld [vmem:[%s10245_s13 + $0x308] sm:$0xff]  }
 0x8a7   :  { %7464 = vmatpush3.bf16.msra.mxu0 %v8108_v24  ;;  %7443 = vmatprep.subr.bf16.mxu1 %v8109_v25  ;;  %v1884_v24 = vmax.f32 %v1780_v7, 0.0  ;;  %v1905_v25 = vmax.f32 %v1872_v20, 0.0  ;;  %v8160_v20 = vld [vmem:[%s10245_s13 + $0x388] sm:$0xff]  }
 0x8a8   :  { %7465 = vmatprep.subr.bf16.mxu0 %v8110_v28  ;;  %v8135_v28 = vld [vmem:[%s10245_s13 + $0x338] sm:$0xff]  }
 0x8aa   :  { %7444 = vmatpush3.bf16.msra.mxu1 %v8111_v29  ;;  %v1914_v29 = vpack.c.bf16 %v1898_v34, %v1882_v22  ;;  %v1870_v34 = vadd.f32 %v9210_v53, %v1346_v5  ;;  %v8164_v53 = vld [vmem:[%s10245_s13 + $0x380] sm:$0xff]  }
 0x8ab   :  { %7466 = vmatpush3.bf16.msra.mxu0 %v8112_v33  ;;  %7445 = vmatprep.subr.bf16.mxu1 %v8113_v35  ;;  %v1887_v33 = vmax.f32 %v1825_v14, 0.0  ;;  %v8136_v35 = vld [vmem:[%s10245_s13 + $0x3b8] sm:$0xff]  }
 0x8ac   :  { %7467 = vmatprep.subr.bf16.mxu0 %v8114_v57  ;;  %v1916_v57 = vpack.c.bf16 %v1900_v18, %v1884_v24  ;;  %v1904_v18 = vmax.f32 %v1870_v34, 0.0 }
 0x8ae   :  { %7446 = vmatpush3.bf16.msra.mxu1 %v8115_v37  ;;  %v1889_v37 = vmax.f32 %v1868_v15, 0.0 }
 0x8af   :  { %7468 = vmatpush3.bf16.msra.mxu0 %v8116_v40  ;;  %7447 = vmatprep.subr.bf16.mxu1 %v8117_v41  ;;  %v8137_v40 = vld [vmem:[%s10245_s13 + $0x370] sm:$0xff]   ;;  %v1919_v41 = vpack.c.bf16 %v1903_v23, %v1887_v33 }
 0x8b0   :  { %7469 = vmatprep.subr.bf16.mxu0 %v8118_v42  ;;  %v8138_v42 = vld [vmem:[%s10245_s13 + $0x3f0] sm:$0xff]   ;;  %v1921_v43 = vpack.c.bf16 %v1905_v25, %v1889_v37 }
 0x8b2   :  { %7448 = vmatpush3.bf16.msra.mxu1 %v8119_v48  ;;  %v8139_v48 = vld [vmem:[%s10245_s13 + $0x330] sm:$0xff]  }
 0x8b3   :  { %7470 = vmatpush3.bf16.msra.mxu0 %v8120_v49  ;;  %7449 = vmatprep.subr.bf16.mxu1 %v8121_v50  ;;  %v8141_v49 = vld [vmem:[%s10245_s13 + $0x368] sm:$0xff]  }
 0x8b4   :  { %7471 = vmatprep.subr.bf16.mxu0 %v8122_v51  ;;  %v8142_v50 = vld [vmem:[%s10245_s13 + $0x3e8] sm:$0xff]  }
 0x8b5   :  { %v8143_v51 = vld [vmem:[%s10245_s13 + $0x328] sm:$0xff]  }
 0x8b6   :  { %7450 = vmatpush3.bf16.msra.mxu1 %v8123_v52  ;;  %v8144_v52 = vld [vmem:[%s10245_s13 + $0x3a8] sm:$0xff]  }
 0x8b7   :  { %7472 = vmatpush3.bf16.msra.mxu0 %v8124_v16  ;;  %7451 = vmatprep.subr.bf16.mxu1 %v8125_v54  ;;  %v8145_v16 = vld [vmem:[%s10245_s13 + $0x360] sm:$0xff]  }
 0x8b8   :  { %7473 = vmatprep.subr.bf16.mxu0 %v8126_v55  ;;  %v8146_v54 = vld [vmem:[%s10245_s13 + $0x3e0] sm:$0xff]  }
 0x8b9   :  { %v8147_v55 = vld [vmem:[%s10245_s13 + $0x320] sm:$0xff]  }
 0x8ba   :  { %7452 = vmatpush3.bf16.msra.mxu1 %v8127_v26  ;;  %v8151_v26 = vld [vmem:[%s10245_s13 + $0x318] sm:$0xff]  }
 0x8bb   :  { %7474 = vmatpush3.bf16.msra.mxu0 %v8128_v1  ;;  %7453 = vmatprep.subr.bf16.mxu1 %v8129_v2  ;;  %v8155_v1 = vld [vmem:[%s10245_s13 + $0x310] sm:$0xff]  }
 0x8bc   :  { %7475 = vmatprep.subr.bf16.mxu0 %v8130_v32  ;;  %v8156_v2 = vld [vmem:[%s10245_s13 + $0x390] sm:$0xff]   ;;  %v1338_v32 = vrot.slane %v9107_v39, %v9079_v30  ;;  %v8162_v39 = vld [vmem:[%s10245_s13 + $0x3c0] sm:$0xff]  }
 0x8be   :  { %7454 = vmatpush3.bf16.msra.mxu1 %v8131_v12  ;;  %v1827_v7 = vadd.f32 %v9205_v46, %v1338_v32  ;;  %v8161_v12 = vld [vmem:[%s10245_s13 + $0x340] sm:$0xff]   ;;  %v1823_v14 = vadd.f32 %v9177_v36, %v1338_v32  ;;  %v1866_v46 = vadd.f32 %v9182_v38, %v1346_v5 }
 0x8bf   :  { %7476 = vmatpush3.bf16.msra.mxu0 %v8132_v17  ;;  %7483 = vmatprep.subr.bf16.mxu1 %v8133_v13  ;;  %v8163_v17 = vld [vmem:[%s10245_s13 + $0x300] sm:$0xff]  }
 0x8c0   :  { %7505 = vmatprep.subr.bf16.mxu0 %v8134_v21  ;;  %v1902_v13 = vmax.f32 %v1827_v7, 0.0  ;;  %v1886_v15 = vmax.f32 %v1823_v14, 0.0  ;;  %v1888_v21 = vmax.f32 %v1866_v46, 0.0 }
 0x8c1   :  { %3150 = vmatmul.mubr.bf16.vlgmr.msra.gmra.mxu1 %v1914_v29 }
 0x8c2   :  { %3191 = vmatmul.mubr.bf16.vlgmr.msra.gmra.mxu0 %v1916_v57  ;;  %7484 = vmatpush3.bf16.msra.mxu1 %v8135_v28  ;;  %v1918_v36 = vpack.c.bf16 %v1902_v13, %v1886_v15  ;;  %v1920_v38 = vpack.c.bf16 %v1904_v18, %v1888_v21 }
 0x8c3   :  { %3231 = vmatprep.mubr.bf16.mxu1 %v1919_v41  ;;  %7506 = vmatpush3.bf16.msra.mxu0 %v8136_v35 }
 0x8c4   :  { %3272 = vmatprep.mubr.bf16.mxu0 %v1921_v43  ;;  %7485 = vmatprep.subr.bf16.mxu1 %v8137_v40 }
 0x8c5   :  { %7507 = vmatprep.subr.bf16.mxu0 %v8138_v42 }
 0x8c6   :  { %7486 = vmatpush3.bf16.msra.mxu1 %v8139_v48 }
 0x8c7   :  { %7508 = vmatpush3.bf16.msra.mxu0 %v8140_v61  ;;  %7487 = vmatprep.subr.bf16.mxu1 %v8141_v49  ;;  %v6675_v49 = vld [vmem:[%s10249_s14] ss:$0 sm:$0xff] }
 0x8c8   :  { %7509 = vmatprep.subr.bf16.mxu0 %v8142_v50 }
 0x8ca   :  { %7488 = vmatpush3.bf16.msra.mxu1 %v8143_v51 }
 0x8cb   :  { %7510 = vmatpush3.bf16.msra.mxu0 %v8144_v52  ;;  %7489 = vmatprep.subr.bf16.mxu1 %v8145_v16 }
 0x8cc   :  { %7511 = vmatprep.subr.bf16.mxu0 %v8146_v54 }
 0x8ce   :  { %7490 = vmatpush3.bf16.msra.mxu1 %v8147_v55 }
 0x8cf   :  { %7512 = vmatpush3.bf16.msra.mxu0 %v8148_v47  ;;  %7491 = vmatprep.subr.bf16.mxu1 %v8149_v56 }
 0x8d0   :  { %7513 = vmatprep.subr.bf16.mxu0 %v8150_v9 }
 0x8d2   :  { %7492 = vmatpush3.bf16.msra.mxu1 %v8151_v26 }
 0x8d3   :  { %7514 = vmatpush3.bf16.msra.mxu0 %v8152_v62  ;;  %7493 = vmatprep.subr.bf16.mxu1 %v8153_v27 }
 0x8d4   :  { %7515 = vmatprep.subr.bf16.mxu0 %v8154_v63 }
 0x8d6   :  { %7494 = vmatpush3.bf16.msra.mxu1 %v8155_v1 }
 0x8d7   :  { %7516 = vmatpush3.bf16.msra.mxu0 %v8156_v2  ;;  %7495 = vmatprep.subr.bf16.mxu1 %v8157_v0 }
 0x8d8   :  { %7517 = vmatprep.subr.bf16.mxu0 %v8158_v4 }
 0x8da   :  { %7496 = vmatpush3.bf16.msra.mxu1 %v8159_v6 }
 0x8db   :  { %7518 = vmatpush3.bf16.msra.mxu0 %v8160_v20  ;;  %7497 = vmatprep.subr.bf16.mxu1 %v8161_v12 }
 0x8dc   :  { %7519 = vmatprep.subr.bf16.mxu0 %v8162_v39 }
 0x8de   :  { %7498 = vmatpush3.bf16.msra.mxu1 %v8163_v17 }
 0x8df   :  { %7520 = vmatpush3.bf16.msra.mxu0 %v8164_v53  ;;  %7863 = vmatprep.subr.bf16.mxu1 %v8377_v3 }
 0x8e0   :  { %7871 = vmatprep.subr.bf16.mxu0 %v8377_v3 }
 0x8e1   :  { %3232 = vmatmul.mubr.bf16.vlgmr.msra.gmra.mxu1 %v1918_v36 }
 0x8e2   :  { %3273 = vmatmul.mubr.bf16.vlgmr.msra.gmra.mxu0 %v1920_v38  ;;  %7867 = vmatprep.mubr.msk.bf16.mxu1 %vm8378_vm2, %v8377_v3 }
 0x8e3   :  { %7873 = vmatprep.mubr.msk.bf16.mxu0 %vm8378_vm2, %v8377_v3 }
 0x941   :  { %v7367_v22 = vpop.f32.mrf.mxu1  ;;  %v7389_v23 = vpop.f32.mrf.mxu0 }
 0x943   :  { %v7368_v24 = vpop.f32.mrf.mxu1  ;;  %v7390_v25 = vpop.f32.mrf.mxu0 }
 0x944   :  { %v7369_v61 = vadd.f32 %v7368_v24, %v7367_v22  ;;  %v7391_v47 = vadd.f32 %v7390_v25, %v7389_v23 }
 0x945   :  { %v7370_v28 = vpop.f32.mrf.mxu1  ;;  %v7392_v29 = vpop.f32.mrf.mxu0 }
 0x946   :  { %v2988_v52 = vadd.f32 %v7369_v61, %v6675_v49 }
 0x947   :  { %v7371_v33 = vpop.f32.mrf.mxu1  ;;  %v7393_v57 = vpop.f32.mrf.mxu0 }
 0x948   :  { %v7372_v16 = vadd.f32 %v7371_v33, %v7370_v28  ;;  %v3029_v9 = vadd.f32 %v7391_v47, %v2988_v52  ;;  %v7394_v63 = vadd.f32 %v7393_v57, %v7392_v29 }
 0x94a   :  { %v2991_v26 = vadd.f32 %v7372_v16, %v6675_v49 }
 0x94c   :  { %v3032_v0 = vadd.f32 %v7394_v63, %v2991_v26  ;;  %v8166_v26 = vld [vmem:[%s10239_s3 + $0x10] sm:$0xff]  }
 0x961   :  { %v7411_v35 = vpop.f32.mrf.mxu1  ;;  %v7433_v37 = vpop.f32.mrf.mxu0 }
 0x963   :  { %v7412_v40 = vpop.f32.mrf.mxu1  ;;  %v7434_v41 = vpop.f32.mrf.mxu0 }
 0x964   :  { %v7413_v56 = vadd.f32 %v7412_v40, %v7411_v35  ;;  %v7435_v4 = vadd.f32 %v7434_v41, %v7433_v37 }
 0x965   :  { %v7414_v42 = vpop.f32.mrf.mxu1  ;;  %v7436_v43 = vpop.f32.mrf.mxu0 }
 0x966   :  { %v3070_v1 = vadd.f32 %v7413_v56, %v3029_v9 }
 0x967   :  { %v7415_v48 = vpop.f32.mrf.mxu1  ;;  %v7437_v51 = vpop.f32.mrf.mxu0 }
 0x968   :  { %v7416_v2 = vadd.f32 %v7415_v48, %v7414_v42  ;;  %v3111_v7 = vadd.f32 %v7435_v4, %v3070_v1  ;;  %v7438_v12 = vadd.f32 %v7437_v51, %v7436_v43 }
 0x96a   :  { %v3073_v20 = vadd.f32 %v7416_v2, %v3032_v0 }
 0x96c   :  { %v3114_v17 = vadd.f32 %v7438_v12, %v3073_v20  ;;  %v6805_v12 = vld [vmem:[%s10251_s10] ss:$0 sm:$0xff] }
 0x981   :  { %v7455_v50 = vpop.f32.mrf.mxu1 }
 0x982   :  { %v7477_v54 = vpop.f32.mrf.mxu0 }
 0x983   :  { %v7456_v55 = vpop.f32.mrf.mxu1 }
 0x984   :  { %v7478_v62 = vpop.f32.mrf.mxu0  ;;  %v7457_v32 = vadd.f32 %v7456_v55, %v7455_v50 }
 0x985   :  { %v7458_v27 = vpop.f32.mrf.mxu1  ;;  %v7479_v13 = vadd.f32 %v7478_v62, %v7477_v54 }
 0x986   :  { %v7480_v5 = vpop.f32.mrf.mxu0  ;;  %v3152_v34 = vadd.f32 %v7457_v32, %v3111_v7 }
 0x987   :  { %v7459_v6 = vpop.f32.mrf.mxu1 }
 0x988   :  { %v7460_v39 = vadd.f32 %v7459_v6, %v7458_v27  ;;  %v7481_v14 = vpop.f32.mrf.mxu0  ;;  %v3193_v15 = vadd.f32 %v7479_v13, %v3152_v34 }
 0x989   :  { %v7482_v23 = vadd.f32 %v7481_v14, %v7480_v5  ;;  %v6804_v5 = vld [vmem:[%s10250_s9] ss:$0 sm:$0xff] }
 0x98a   :  { %v3155_v21 = vadd.f32 %v7460_v39, %v3114_v17  ;;  %v6811_v17 = vld [vmem:[%s10241_s4 + $0x1] ss:$0 sm:$0xff]  ;;  %s10273_s4 = smov 104  }
 0x98c   :  { %v3196_v33 = vadd.f32 %v7482_v23, %v3155_v21 }
 0x9a1   :  { %v7499_v46 = vpop.f32.mrf.mxu1 }
 0x9a2   :  { %v7521_v53 = vpop.f32.mrf.mxu0 }
 0x9a3   :  { %v7500_v18 = vpop.f32.mrf.mxu1 }
 0x9a4   :  { %v7501_v36 = vadd.f32 %v7500_v18, %v7499_v46  ;;  %v7522_v38 = vpop.f32.mrf.mxu0 }
 0x9a5   :  { %v7502_v22 = vpop.f32.mrf.mxu1  ;;  %v7523_v25 = vadd.f32 %v7522_v38, %v7521_v53 }
 0x9a6   :  { %v3234_v24 = vadd.f32 %v7501_v36, %v3193_v15  ;;  %v7524_v28 = vpop.f32.mrf.mxu0 }
 0x9a7   :  { %v7503_v29 = vpop.f32.mrf.mxu1 }
 0x9a8   :  { %v3275_v35 = vadd.f32 %v7523_v25, %v3234_v24  ;;  %v7504_v57 = vadd.f32 %v7503_v29, %v7502_v22  ;;  %v7525_v37 = vpop.f32.mrf.mxu0 }
 0x9a9   :  { %v7526_v41 = vadd.f32 %v7525_v37, %v7524_v28 }
 0x9aa   :  { %v3237_v40 = vadd.f32 %v7504_v57, %v3196_v33  ;;  %v3281_v42 = vadd.f32 %v3275_v35, %v8789_v44 }
 0x9ac   :  { %v3278_v43 = vadd.f32 %v7526_v41, %v3237_v40  ;;  %v3285_v48 = vsel %vm177_vm3, %v3281_v42, 0.0 }
 0x9ad   :  { %3286 = vadd.xlane.f32.xlu0 %v3285_v48 }
 0x9ae   :  { %v3282_v61 = vadd.f32 %v3278_v43, %v8791_v45  ;;  %v8165_v45 = vld [vmem:[%s10239_s3 + $0x18] sm:$0xff]  }
 0x9af   :  { %7864 = vmatpush3.bf16.msra.mxu1 %v8165_v45 }
 0x9b0   :  { %v3288_v49 = vsel %vm177_vm3, %v3282_v61, 0.0  ;;  %7865 = vmatprep.subr.bf16.mxu1 %v8377_v3 }
 0x9b1   :  { %3289 = vadd.xlane.f32.xlu1 %v3288_v49 }
 0x9b3   :  { %7866 = vmatpush3.bf16.msra.mxu1 %v8166_v26 }
 0x9b4   :  { %7877 = vmatprep.subr.bf16.mxu1 %v8377_v3 }
 0xa36   :  { %v3287_v50 = vpop.xlane.xlu0 %3286 }
 0xa37   :  { %v3291_v51 = vmul.f32 0.03125, %v3287_v50 }
 0xa39   :  { %v3293_v52 = vsub.f32 %v3281_v42, %v3291_v51 }
 0xa3a   :  { %v3290_v16 = vpop.xlane.xlu1 %3289 }
 0xa3b   :  { %v3292_v54 = vmul.f32 0.03125, %v3290_v16  ;;  %v3295_v55 = vmul.f32 %v3293_v52, %v3293_v52 }
 0xa3d   :  { %v3294_v47 = vsub.f32 %v3282_v61, %v3292_v54  ;;  %v3297_v56 = vsel %vm177_vm3, %v3295_v55, 0.0 }
 0xa3e   :  { %3298 = vadd.xlane.f32.xlu0 %v3297_v56 }
 0xa3f   :  { %v3296_v44 = vmul.f32 %v3294_v47, %v3294_v47 }
 0xa41   :  { %v3300_v9 = vsel %vm177_vm3, %v3296_v44, 0.0 }
 0xa42   :  { %3301 = vadd.xlane.f32.xlu1 %v3300_v9 }
 0xac7   :  { %v3299_v62 = vpop.xlane.xlu0 %3298 }
 0xac8   :  { %v3303_v27 = vmul.f32 0.03125, %v3299_v62 }
 0xaca   :  { %v3305_v63 = vadd.f32 1e-05, %v3303_v27 }
 0xacb   :  { %v3302_v1 = vpop.xlane.xlu1 %3301 }
 0xacc   :  { %8333 = vrsqrt.f32 %v3305_v63  ;;  %v3304_v2 = vmul.f32 0.03125, %v3302_v1 }
 0xace   :  { %v3306_v0 = vadd.f32 1e-05, %v3304_v2 }
 0xad0   :  { %8335 = vrsqrt.f32 %v3306_v0 }
 0xad9   :  { %v8334_v4 = vpop.eup %8333 }
 0xada   :  { %v3309_v32 = vmul.f32 %v8334_v4, %v3293_v52 }
 0xadc   :  { %v3317_v20 = vmul.f32 %v6804_v5, %v3309_v32 }
 0xadd   :  { %v8336_v6 = vpop.eup %8335 }
 0xade   :  { %v3310_v7 = vmul.f32 %v8336_v6, %v3294_v47  ;;  %v9384_v39 = vadd.f32 %v6805_v12, %v3317_v20 }
 0xae0   :  { %v3318_v34 = vmul.f32 %v6804_v5, %v3310_v7 }
 0xae2   :  { %v9386_v14 = vadd.f32 %v6805_v12, %v3318_v34 }
 0xae4   :  { %v3327_v46 = vpack.c.bf16 %v9386_v14, %v9384_v39 }
 0xae6   :  { %7868 = vmatmul.mubr.msk.bf16.vlgmr.msra.gmra.mxu1 %vm177_vm3, %v3327_v46 }
 0xae7   :  { %7879 = vmatprep.mubr.msk.bf16.mxu1 %vm8378_vm2, %v8377_v3 }
 0xba6   :  { %v3390_v13 = vpop.f32.mrf.mxu1 }
 0xba7   :  { %v3391_v53 = vadd.f32 %v6811_v17, %v3390_v13 }
 0xba8   :  { %v7869_v18 = vpop.f32.mrf.mxu1 }
 0xba9   :  { %v9396_v15 = vpack.c.bf16 %v3391_v53, %v3391_v53 }
 0xbaa   :  { %v3393_v21 = vpop.f32.mrf.mxu1 }
 0xbab   :  { %3509 = vrot.lane.b32.xlu1 %v9396_v15, %s8382_s27  ;;  %3399 = vrot.lane.b32.xlu0 %v9396_v15, %s8380_s25  ;;  %v3394_v38 = vadd.f32 %v6811_v17, %v3393_v21 }
 0xbac   :  { %v7870_v36 = vpop.f32.mrf.mxu1 }
 0xbad   :  { %v9410_v22 = vpack.c.bf16 %v3394_v38, %v3394_v38 }
 0xbaf   :  { %3507 = vrot.lane.b32.xlu1 %v9396_v15, %s8379_s2  ;;  %3619 = vrot.lane.b32.xlu0 %v9396_v15, %s8381_s26 }
 0xbb3   :  { %3617 = vrot.lane.b32.xlu1 %v9396_v15, %s8384_s29  ;;  %3729 = vrot.lane.b32.xlu0 %v9396_v15, %s8383_s28 }
 0xbb7   :  { %3727 = vrot.lane.b32.xlu1 %v9396_v15, %s10273_s4  ;;  %3854 = vrot.lane.b32.xlu0 %v9410_v22, %s8380_s25  ;;  %s10275_s25 = smov 64  }
 0xbbb   :  { %3964 = vrot.lane.b32.xlu1 %v9410_v22, %s8382_s27  ;;  %3962 = vrot.lane.b32.xlu0 %v9410_v22, %s8379_s2  ;;  %s10274_s2 = smov 56   ;;  %s10277_s27 = smov 40  }
 0xbbf   :  { %4074 = vrot.lane.b32.xlu1 %v9410_v22, %s8381_s26  ;;  %4072 = vrot.lane.b32.xlu0 %v9410_v22, %s8384_s29  ;;  %s10276_s26 = smov 48  }
 0xbc3   :  { %4184 = vrot.lane.b32.xlu1 %v9410_v22, %s8383_s28  ;;  %4182 = vrot.lane.b32.xlu0 %v9410_v22, %s10273_s4 }
 0xc1d   :  { %v3400_v23 = vpop.permute.xlu0 %3399  ;;  %v3510_v25 = vpop.permute.xlu1 %3509 }
 0xc1e   :  { %v3405_v24 = vsel %vm226_vm4, %v3400_v23, 0  ;;  %v3515_v28 = vsel %vm226_vm4, %v3510_v25, 0 }
 0xc1f   :  { %7872 = vmatpush3.bf16.xpose.msra.mxu0 %v3405_v24 }
 0xc20   :  { %7883 = vmatprep.subr.bf16.mxu0 %v8377_v3 }
 0xc21   :  { %v3620_v29 = vpop.permute.xlu0 %3619  ;;  %v3508_v33 = vpop.permute.xlu1 %3507 }
 0xc22   :  { %v3625_v35 = vsel %vm226_vm4, %v3620_v29, 0 }
 0xc25   :  { %v3730_v57 = vpop.permute.xlu0 %3729  ;;  %v3618_v37 = vpop.permute.xlu1 %3617 }
 0xc26   :  { %7874 = vmatmul.mubr.msk.bf16.vlgmr.msra.gmra.mxu0 %vm226_vm4, %v9396_v15  ;;  %v3735_v40 = vsel %vm226_vm4, %v3730_v57, 0 }
 0xc27   :  { %7884 = vmatpush3.bf16.xpose.msra.mxu0 %v3515_v28  ;;  %7885 = vmatprep.mubr.msk.bf16.mxu0 %vm8378_vm2, %v8377_v3 }
 0xc28   :  { %7895 = vmatprep.subr.bf16.mxu0 %v8377_v3 }
 0xc29   :  { %v3855_v41 = vpop.permute.xlu0 %3854  ;;  %v3728_v42 = vpop.permute.xlu1 %3727 }
 0xc2a   :  { %v3860_v43 = vsel %vm226_vm4, %v3855_v41, 0 }
 0xc2d   :  { %v3965_v48 = vpop.permute.xlu1 %3964  ;;  %v3963_v50 = vpop.permute.xlu0 %3962 }
 0xc2e   :  { %7886 = vmatmul.mubr.msk.bf16.vlgmr.msra.gmra.mxu0 %vm226_vm4, %v3508_v33  ;;  %v3970_v61 = vsel %vm226_vm4, %v3965_v48, 0 }
 0xc2f   :  { %7896 = vmatpush3.bf16.xpose.msra.mxu0 %v3625_v35  ;;  %7897 = vmatprep.mubr.msk.bf16.mxu0 %vm8378_vm2, %v8377_v3 }
 0xc30   :  { %7907 = vmatprep.subr.bf16.mxu0 %v8377_v3 }
 0xc31   :  { %v4075_v49 = vpop.permute.xlu1 %4074  ;;  %v4073_v16 = vpop.permute.xlu0 %4072 }
 0xc32   :  { %v4080_v51 = vsel %vm226_vm4, %v4075_v49, 0 }
 0xc35   :  { %v4185_v52 = vpop.permute.xlu1 %4184  ;;  %v4183_v55 = vpop.permute.xlu0 %4182 }
 0xc36   :  { %7898 = vmatmul.mubr.msk.bf16.vlgmr.msra.gmra.mxu0 %vm226_vm4, %v3618_v37  ;;  %v4190_v54 = vsel %vm226_vm4, %v4185_v52, 0 }
 0xc37   :  { %7908 = vmatpush3.bf16.xpose.msra.mxu0 %v3735_v40  ;;  %7909 = vmatprep.mubr.msk.bf16.mxu0 %vm8378_vm2, %v8377_v3 }
 0xc38   :  { %7919 = vmatprep.subr.bf16.mxu0 %v8377_v3 }
 0xc3e   :  { %7910 = vmatmul.mubr.msk.bf16.vlgmr.msra.gmra.mxu0 %vm226_vm4, %v3728_v42 }
 0xc3f   :  { %7920 = vmatpush3.bf16.xpose.msra.mxu0 %v3860_v43  ;;  %7921 = vmatprep.mubr.msk.bf16.mxu0 %vm8378_vm2, %v8377_v3 }
 0xc40   :  { %7931 = vmatprep.subr.bf16.mxu0 %v8377_v3 }
 0xc46   :  { %7922 = vmatmul.mubr.msk.bf16.vlgmr.msra.gmra.mxu0 %vm226_vm4, %v9410_v22 }
 0xc47   :  { %7932 = vmatpush3.bf16.xpose.msra.mxu0 %v3970_v61  ;;  %7933 = vmatprep.mubr.msk.bf16.mxu0 %vm8378_vm2, %v8377_v3 }
 0xc48   :  { %7943 = vmatprep.subr.bf16.mxu0 %v8377_v3 }
 0xc4e   :  { %7934 = vmatmul.mubr.msk.bf16.vlgmr.msra.gmra.mxu0 %vm226_vm4, %v3963_v50 }
 0xc4f   :  { %7944 = vmatpush3.bf16.xpose.msra.mxu0 %v4080_v51  ;;  %7945 = vmatprep.mubr.msk.bf16.mxu0 %vm8378_vm2, %v8377_v3 }
 0xc50   :  { %7955 = vmatprep.subr.bf16.mxu0 %v8377_v3 }
 0xc56   :  { %7946 = vmatmul.mubr.msk.bf16.vlgmr.msra.gmra.mxu0 %vm226_vm4, %v4073_v16 }
 0xc57   :  { %7956 = vmatpush3.bf16.xpose.msra.mxu0 %v4190_v54  ;;  %7957 = vmatprep.mubr.msk.bf16.mxu0 %vm8378_vm2, %v8377_v3 }
 0xc58   :  { %7967 = vmatprep.subr.bf16.mxu0 %v8377_v3 }
 0xc5e   :  { %7958 = vmatmul.mubr.msk.bf16.vlgmr.msra.gmra.mxu0 %vm226_vm4, %v4183_v55 }
 0xc5f   :  { %7971 = vmatprep.mubr.msk.bf16.mxu0 %vm8378_vm2, %v8377_v3 }
 0xce6   :  { %v3441_v47 = vpop.f32.mrf.mxu0 }
 0xce7   :  { %v3447_v56 = vsel %vm226_vm4, %v3441_v47, -inf }
 0xce8   :  { %v7875_v44 = vpop.f32.mrf.mxu0  ;;  %3448 = vmax.xlane.f32.xlu1 %v3447_v56 }
 0xcea   :  { %v3444_v9 = vpop.f32.mrf.mxu0 }
 0xcec   :  { %v7876_v45 = vpop.f32.mrf.mxu0 }
 0xcee   :  { %v3551_v26 = vpop.f32.mrf.mxu0 }
 0xcef   :  { %v3557_v62 = vsel %vm226_vm4, %v3551_v26, -inf }
 0xcf0   :  { %v7887_v27 = vpop.f32.mrf.mxu0  ;;  %3558 = vmax.xlane.f32.xlu0 %v3557_v62 }
 0xcf2   :  { %v3554_v63 = vpop.f32.mrf.mxu0 }
 0xcf4   :  { %v7888_v1 = vpop.f32.mrf.mxu0 }
 0xcf6   :  { %v3661_v2 = vpop.f32.mrf.mxu0 }
 0xcf7   :  { %v3667_v0 = vsel %vm226_vm4, %v3661_v2, -inf }
 0xcf8   :  { %v7899_v4 = vpop.f32.mrf.mxu0  ;;  %3668 = vmax.xlane.f32.xlu0 %v3667_v0 }
 0xcfa   :  { %v3664_v32 = vpop.f32.mrf.mxu0 }
 0xcfc   :  { %v7900_v5 = vpop.f32.mrf.mxu0 }
 0xcfe   :  { %v3771_v6 = vpop.f32.mrf.mxu0 }
 0xcff   :  { %v3777_v7 = vsel %vm226_vm4, %v3771_v6, -inf }
 0xd00   :  { %v7911_v20 = vpop.f32.mrf.mxu0  ;;  %3778 = vmax.xlane.f32.xlu1 %v3777_v7 }
 0xd02   :  { %v3774_v12 = vpop.f32.mrf.mxu0 }
 0xd04   :  { %v7912_v34 = vpop.f32.mrf.mxu0 }
 0xd06   :  { %v3896_v46 = vpop.f32.mrf.mxu0 }
 0xd07   :  { %v3902_v17 = vsel %vm226_vm4, %v3896_v46, -inf }
 0xd08   :  { %3903 = vmax.xlane.f32.xlu0 %v3902_v17  ;;  %v7923_v13 = vpop.f32.mrf.mxu0 }
 0xd0a   :  { %v3899_v53 = vpop.f32.mrf.mxu0 }
 0xd0c   :  { %v7924_v18 = vpop.f32.mrf.mxu0 }
 0xd0e   :  { %v9475_v21 = vpop.f32.mrf.mxu0 }
 0xd0f   :  { %v4012_v36 = vsel %vm226_vm4, %v9475_v21, -inf }
 0xd10   :  { %4013 = vmax.xlane.f32.xlu1 %v4012_v36  ;;  %v7935_v38 = vpop.f32.mrf.mxu0 }
 0xd12   :  { %v4009_v23 = vpop.f32.mrf.mxu0 }
 0xd14   :  { %v7936_v24 = vpop.f32.mrf.mxu0 }
 0xd16   :  { %v4116_v25 = vpop.f32.mrf.mxu0 }
 0xd17   :  { %v4122_v28 = vsel %vm226_vm4, %v4116_v25, -inf }
 0xd18   :  { %4123 = vmax.xlane.f32.xlu0 %v4122_v28  ;;  %v7947_v29 = vpop.f32.mrf.mxu0 }
 0xd1a   :  { %v4119_v33 = vpop.f32.mrf.mxu0 }
 0xd1c   :  { %v7948_v35 = vpop.f32.mrf.mxu0 }
 0xd1e   :  { %v9480_v57 = vpop.f32.mrf.mxu0 }
 0xd1f   :  { %v4232_v42 = vsel %vm226_vm4, %v9480_v57, -inf }
 0xd20   :  { %v7959_v37 = vpop.f32.mrf.mxu0 }
 0xd21   :  { %3569 = vrot.lane.b32.xlu1 %v9396_v15, %s10274_s2 }
 0xd22   :  { %v4229_v40 = vpop.f32.mrf.mxu0 }
 0xd24   :  { %v7960_v41 = vpop.f32.mrf.mxu0 }
 0xd2e   :  { %3459 = vrot.lane.b32.xlu0 %v9396_v15, %s10275_s25 }
 0xd45   :  { %4233 = vmax.xlane.f32.xlu1 %v4232_v42 }
 0xd56   :  { %3679 = vrot.lane.b32.xlu1 %v9396_v15, %s10276_s26 }
 0xd71   :  { %v3449_v43 = vpop.xlane.xlu1 %3448 }
 0xd72   :  { %v3450_v48 = vsub.f32 %v3441_v47, %v3449_v43 }
 0xd74   :  { %v3451_v61 = vmul.f32 1.442695, %v3450_v48 }
 0xd76   :  { %8337 = vpow2.f32 %v3451_v61 }
 0xd79   :  { %v3559_v49 = vpop.xlane.xlu0 %3558 }
 0xd7a   :  { %v3560_v50 = vsub.f32 %v3551_v26, %v3559_v49 }
 0xd7c   :  { %v3561_v51 = vmul.f32 1.442695, %v3560_v50 }
 0xd7e   :  { %8339 = vpow2.f32 %v3561_v51 }
 0xd81   :  { %v3669_v52 = vpop.xlane.xlu0 %3668 }
 0xd82   :  { %v3670_v16 = vsub.f32 %v3661_v2, %v3669_v52 }
 0xd83   :  { %v8338_v54 = vpop.eup %8337 }
 0xd84   :  { %v3671_v55 = vmul.f32 1.442695, %v3670_v16  ;;  %v3453_v56 = vsel %vm226_vm4, %v8338_v54, 0.0 }
 0xd85   :  { %3454 = vadd.xlane.f32.xlu0 %v3453_v56 }
 0xd86   :  { %8341 = vpow2.f32 %v3671_v55 }
 0xd89   :  { %v3779_v44 = vpop.xlane.xlu1 %3778 }
 0xd8a   :  { %v3780_v9 = vsub.f32 %v3771_v6, %v3779_v44 }
 0xd8b   :  { %v9491_v45 = vpop.eup %8339 }
 0xd8c   :  { %v3781_v62 = vmul.f32 1.442695, %v3780_v9  ;;  %v3563_v47 = vsel %vm226_vm4, %v9491_v45, 0.0 }
 0xd8d   :  { %3564 = vadd.xlane.f32.xlu1 %v3563_v47 }
 0xd8e   :  { %8343 = vpow2.f32 %v3781_v62 }
 0xd91   :  { %v3904_v26 = vpop.xlane.xlu0 %3903 }
 0xd92   :  { %v3905_v27 = vsub.f32 %v3896_v46, %v3904_v26 }
 0xd93   :  { %v9495_v63 = vpop.eup %8341 }
 0xd94   :  { %v3906_v1 = vmul.f32 1.442695, %v3905_v27  ;;  %v3673_v2 = vsel %vm226_vm4, %v9495_v63, 0.0 }
 0xd95   :  { %3674 = vadd.xlane.f32.xlu0 %v3673_v2 }
 0xd96   :  { %8345 = vpow2.f32 %v3906_v1 }
 0xd99   :  { %v4014_v46 = vpop.xlane.xlu1 %4013 }
 0xd9a   :  { %v4015_v17 = vsub.f32 %v9475_v21, %v4014_v46 }
 0xd9b   :  { %v9499_v0 = vpop.eup %8343 }
 0xd9c   :  { %v3783_v4 = vsel %vm226_vm4, %v9499_v0, 0.0  ;;  %v4016_v18 = vmul.f32 1.442695, %v4015_v17 }
 0xd9d   :  { %3784 = vadd.xlane.f32.xlu1 %v3783_v4  ;;  %v3570_v23 = vpop.permute.xlu1 %3569 }
 0xd9e   :  { %v3575_v42 = vsel %vm74_vm0, %v3570_v23, 0 }
 0xda1   :  { %v4124_v32 = vpop.xlane.xlu0 %4123 }
 0xda2   :  { %v4125_v5 = vsub.f32 %v4116_v25, %v4124_v32 }
 0xda3   :  { %v9503_v6 = vpop.eup %8345 }
 0xda4   :  { %v4126_v7 = vmul.f32 1.442695, %v4125_v5  ;;  %v3908_v20 = vsel %vm226_vm4, %v9503_v6, 0.0 }
 0xda5   :  { %3909 = vadd.xlane.f32.xlu1 %v3908_v20  ;;  %v3460_v12 = vpop.permute.xlu0 %3459 }
 0xda6   :  { %8347 = vpow2.f32 %v4126_v7  ;;  %v3465_v34 = vsel %vm74_vm0, %v3460_v12, 0 }
 0xda7   :  { %7878 = vmatpush3.bf16.msra.mxu1 %v3465_v34  ;;  %8349 = vpow2.f32 %v4016_v18 }
 0xda8   :  { %7889 = vmatprep.subr.bf16.mxu1 %v8377_v3 }
 0xdab   :  { %3789 = vrot.lane.b32.xlu0 %v9396_v15, %s10277_s27 }
 0xdb3   :  { %v9512_v13 = vpop.eup %8347 }
 0xdb4   :  { %v4128_v53 = vsel %vm226_vm4, %v9512_v13, 0.0  ;;  %v9516_v36 = vpop.eup %8349 }
 0xdb5   :  { %4129 = vadd.xlane.f32.xlu1 %v4128_v53  ;;  %v4018_v38 = vsel %vm226_vm4, %v9516_v36, 0.0 }
 0xdca   :  { %4019 = vadd.xlane.f32.xlu0 %v4018_v38 }
 0xdce   :  { %v4234_v24 = vpop.xlane.xlu1 %4233 }
 0xdcf   :  { %v4235_v15 = vsub.f32 %v9480_v57, %v4234_v24 }
 0xdd1   :  { %v4236_v25 = vmul.f32 1.442695, %v4235_v15 }
 0xdd2   :  { %v3680_v33 = vpop.permute.xlu1 %3679 }
 0xdd3   :  { %8351 = vpow2.f32 %v4236_v25  ;;  %v3685_v49 = vsel %vm74_vm0, %v3680_v33, 0 }
 0xde0   :  { %v9521_v21 = vpop.eup %8351  ;;  %4024 = vrot.lane.b32.xlu0 %v9410_v22, %s10274_s2 }
 0xde1   :  { %v4238_v28 = vsel %vm226_vm4, %v9521_v21, 0.0 }
 0xde2   :  { %4239 = vadd.xlane.f32.xlu1 %v4238_v28 }
 0xde4   :  { %4134 = vrot.lane.b32.xlu0 %v9410_v22, %s10276_s26 }
 0xde8   :  { %4244 = vrot.lane.b32.xlu0 %v9410_v22, %s10277_s27 }
 0xdf3   :  { %3914 = vrot.lane.b32.xlu1 %v9410_v22, %s10275_s25 }
 0xe0e   :  { %v3455_v29 = vpop.xlane.xlu0 %3454 }
 0xe0f   :  { %8353 = vrcp.f32 %v3455_v29 }
 0xe16   :  { %v3565_v35 = vpop.xlane.xlu1 %3564 }
 0xe17   :  { %8355 = vrcp.f32 %v3565_v35 }
 0xe1c   :  { %v8354_v57 = vpop.eup %8353 }
 0xe1d   :  { %v3457_v37 = vmul.f32 %v8354_v57, %v8338_v54 }
 0xe1e   :  { %v3675_v40 = vpop.xlane.xlu0 %3674 }
 0xe1f   :  { %8357 = vrcp.f32 %v3675_v40  ;;  %v3458_v41 = vpack.c.bf16 %v3457_v37, %v3457_v37 }
 0xe21   :  { %7880 = vmatmul.mubr.msk.bf16.vlgmr.msra.gmra.mxu1 %vm226_vm4, %v3458_v41 }
 0xe22   :  { %7890 = vmatpush3.bf16.msra.mxu1 %v3575_v42  ;;  %7891 = vmatprep.mubr.msk.bf16.mxu1 %vm8378_vm2, %v8377_v3  ;;  %v3790_v52 = vpop.permute.xlu0 %3789 }
 0xe23   :  { %7901 = vmatprep.subr.bf16.mxu1 %v8377_v3  ;;  %v3795_v54 = vsel %vm74_vm0, %v3790_v52, 0 }
 0xe24   :  { %v8356_v22 = vpop.eup %8355 }
 0xe25   :  { %v3567_v43 = vmul.f32 %v8356_v22, %v9491_v45 }
 0xe26   :  { %v3785_v48 = vpop.xlane.xlu1 %3784 }
 0xe27   :  { %8359 = vrcp.f32 %v3785_v48  ;;  %v3568_v61 = vpack.c.bf16 %v3567_v43, %v3567_v43 }
 0xe29   :  { %7892 = vmatmul.mubr.msk.bf16.vlgmr.msra.gmra.mxu1 %vm226_vm4, %v3568_v61 }
 0xe2a   :  { %7902 = vmatpush3.bf16.msra.mxu1 %v3685_v49  ;;  %7903 = vmatprep.mubr.msk.bf16.mxu1 %vm8378_vm2, %v8377_v3 }
 0xe2b   :  { %7913 = vmatprep.subr.bf16.mxu1 %v8377_v3 }
 0xe2c   :  { %v8358_v50 = vpop.eup %8357 }
 0xe2d   :  { %v3677_v51 = vmul.f32 %v8358_v50, %v9495_v63 }
 0xe2e   :  { %v3910_v9 = vpop.xlane.xlu1 %3909 }
 0xe2f   :  { %v3678_v16 = vpack.c.bf16 %v3677_v51, %v3677_v51  ;;  %8361 = vrcp.f32 %v3910_v9  ;;  %v8167_v51 = vld [vmem:[%s10242_s5 + $0x18] sm:$0xff]  }
 0xe30   :  { %7968 = vmatpush3.bf16.msra.mxu0 %v8167_v51  ;;  %v6868_v51 = vld [vmem:[%s10244_s11 + $0x1c0] sm:$0xff] }
 0xe31   :  { %7904 = vmatmul.mubr.msk.bf16.vlgmr.msra.gmra.mxu1 %vm226_vm4, %v3678_v16  ;;  %7969 = vmatprep.subr.bf16.mxu0 %v8377_v3 }
 0xe32   :  { %7914 = vmatpush3.bf16.msra.mxu1 %v3795_v54  ;;  %7915 = vmatprep.mubr.msk.bf16.mxu1 %vm8378_vm2, %v8377_v3 }
 0xe33   :  { %7925 = vmatprep.subr.bf16.mxu1 %v8377_v3 }
 0xe34   :  { %v8360_v55 = vpop.eup %8359 }
 0xe35   :  { %v3787_v56 = vmul.f32 %v8360_v55, %v9499_v0 }
 0xe37   :  { %v3788_v44 = vpack.c.bf16 %v3787_v56, %v3787_v56 }
 0xe39   :  { %7916 = vmatmul.mubr.msk.bf16.vlgmr.msra.gmra.mxu1 %vm226_vm4, %v3788_v44  ;;  %v8168_v44 = vld [vmem:[%s10242_s5 + $0x10] sm:$0xff]  }
 0xe3a   :  { %7927 = vmatprep.mubr.msk.bf16.mxu1 %vm8378_vm2, %v8377_v3  ;;  %7970 = vmatpush3.bf16.msra.mxu0 %v8168_v44 }
 0xe3c   :  { %v8362_v47 = vpop.eup %8361 }
 0xe3d   :  { %v3912_v27 = vmul.f32 %v8362_v47, %v9503_v6 }
 0xe3e   :  { %v4130_v62 = vpop.xlane.xlu1 %4129 }
 0xe3f   :  { %v3913_v0 = vpack.c.bf16 %v3912_v27, %v3912_v27 }
 0xe53   :  { %v4020_v45 = vpop.xlane.xlu0 %4019 }
 0xe54   :  { %8363 = vrcp.f32 %v4020_v45 }
 0xe55   :  { %8365 = vrcp.f32 %v4130_v62 }
 0xe57   :  { %v4025_v2 = vpop.permute.xlu0 %4024 }
 0xe58   :  { %v4030_v32 = vsel %vm74_vm0, %v4025_v2, 0 }
 0xe5b   :  { %v4135_v6 = vpop.permute.xlu0 %4134 }
 0xe5c   :  { %v4140_v12 = vsel %vm74_vm0, %v4135_v6, 0 }
 0xe5f   :  { %v4245_v46 = vpop.permute.xlu0 %4244 }
 0xe60   :  { %v4250_v18 = vsel %vm74_vm0, %v4245_v46, 0 }
 0xe61   :  { %v8364_v4 = vpop.eup %8363 }
 0xe62   :  { %v4022_v5 = vmul.f32 %v8364_v4, %v9516_v36  ;;  %v8366_v20 = vpop.eup %8365 }
 0xe63   :  { %v4132_v34 = vmul.f32 %v8366_v20, %v9512_v13 }
 0xe64   :  { %v4023_v7 = vpack.c.bf16 %v4022_v5, %v4022_v5 }
 0xe65   :  { %v4133_v17 = vpack.c.bf16 %v4132_v34, %v4132_v34 }
 0xe6b   :  { %v4240_v26 = vpop.xlane.xlu1 %4239 }
 0xe6c   :  { %8367 = vrcp.f32 %v4240_v26 }
 0xe6f   :  { %v3915_v63 = vpop.permute.xlu1 %3914 }
 0xe70   :  { %v3920_v1 = vsel %vm74_vm0, %v3915_v63, 0 }
 0xe71   :  { %7926 = vmatpush3.bf16.msra.mxu1 %v3920_v1 }
 0xe72   :  { %7937 = vmatprep.subr.bf16.mxu1 %v8377_v3 }
 0xe74   :  { %7928 = vmatmul.mubr.msk.bf16.vlgmr.msra.gmra.mxu1 %vm226_vm4, %v3913_v0 }
 0xe75   :  { %7938 = vmatpush3.bf16.msra.mxu1 %v4030_v32  ;;  %7939 = vmatprep.mubr.msk.bf16.mxu1 %vm8378_vm2, %v8377_v3 }
 0xe76   :  { %7949 = vmatprep.subr.bf16.mxu1 %v8377_v3 }
 0xe79   :  { %v8368_v53 = vpop.eup %8367 }
 0xe7a   :  { %v4242_v36 = vmul.f32 %v8368_v53, %v9521_v21 }
 0xe7c   :  { %7940 = vmatmul.mubr.msk.bf16.vlgmr.msra.gmra.mxu1 %vm226_vm4, %v4023_v7  ;;  %v4243_v38 = vpack.c.bf16 %v4242_v36, %v4242_v36 }
 0xe7d   :  { %7950 = vmatpush3.bf16.msra.mxu1 %v4140_v12  ;;  %7951 = vmatprep.mubr.msk.bf16.mxu1 %vm8378_vm2, %v8377_v3 }
 0xe7e   :  { %7961 = vmatprep.subr.bf16.mxu1 %v8377_v3 }
 0xe84   :  { %7952 = vmatmul.mubr.msk.bf16.vlgmr.msra.gmra.mxu1 %vm226_vm4, %v4133_v17 }
 0xe85   :  { %7962 = vmatpush3.bf16.msra.mxu1 %v4250_v18  ;;  %7963 = vmatprep.mubr.msk.bf16.mxu1 %vm8378_vm2, %v8377_v3 }
 0xe8c   :  { %7964 = vmatmul.mubr.msk.bf16.vlgmr.msra.gmra.mxu1 %vm226_vm4, %v4243_v38 }
 0xe8d   :  { %4739 = vmatprep.mubr.bf16.mxu1 %v8393_v19 }
 0xee1   :  { %v3501_v23 = vpop.f32.mrf.mxu1 }
 0xee3   :  { %v7881_v13 = vpop.f32.mrf.mxu1 }
 0xee5   :  { %v3504_v24 = vpop.f32.mrf.mxu1 }
 0xee6   :  { %v6836_v24 = vld [vmem:[%s10243_s6 + $0x1] ss:$0 sm:$0xff] }
 0xee7   :  { %v7882_v15 = vpop.f32.mrf.mxu1 }
 0xee9   :  { %v3611_v25 = vpop.f32.mrf.mxu1 }
 0xeeb   :  { %v7893_v28 = vpop.f32.mrf.mxu1 }
 0xeed   :  { %v3614_v29 = vpop.f32.mrf.mxu1 }
 0xeef   :  { %v7894_v33 = vpop.f32.mrf.mxu1 }
 0xef1   :  { %v3721_v35 = vpop.f32.mrf.mxu1 }
 0xef3   :  { %v7905_v57 = vpop.f32.mrf.mxu1 }
 0xef5   :  { %v3724_v37 = vpop.f32.mrf.mxu1 }
 0xef7   :  { %v7906_v40 = vpop.f32.mrf.mxu1 }
 0xef9   :  { %v3831_v41 = vpop.f32.mrf.mxu1 }
 0xefb   :  { %v7917_v42 = vpop.f32.mrf.mxu1 }
 0xefd   :  { %v3834_v21 = vpop.f32.mrf.mxu1 }
 0xeff   :  { %v7918_v22 = vpop.f32.mrf.mxu1 }
 0xf34   :  { %v3956_v43 = vpop.f32.mrf.mxu1 }
 0xf36   :  { %v7929_v48 = vpop.f32.mrf.mxu1 }
 0xf38   :  { %v3959_v61 = vpop.f32.mrf.mxu1 }
 0xf3a   :  { %v7930_v49 = vpop.f32.mrf.mxu1 }
 0xf3c   :  { %v4066_v50 = vpop.f32.mrf.mxu1 }
 0xf3d   :  { %v8018_v52 = vpack.i.bf16 %v4066_v50, %v3611_v25 }
 0xf3e   :  { %v7941_v16 = vpop.f32.mrf.mxu1 }
 0xf3f   :  { %8019 = vrot.lane.b32.xlu1 %v8018_v52, %s10278_s22  ;;  %v6861_v52 = vld [vmem:[%s10244_s11 + $0x188] sm:$0xff] }
 0xf40   :  { %v4069_v54 = vpop.f32.mrf.mxu1 }
 0xf41   :  { %v6869_v54 = vld [vmem:[%s10244_s11 + $0x1c8] sm:$0xff] }
 0xf42   :  { %v7942_v55 = vpop.f32.mrf.mxu1  ;;  %v6897_v44 = vcombine.high %v6861_v52, %v6869_v54 }
 0xf44   :  { %v4176_v56 = vpop.f32.mrf.mxu1  ;;  %4762 = vmatprep.subr.bf16.mxu0 %v6897_v44 }
 0xf45   :  { %v8023_v9 = vpack.i.bf16 %v4176_v56, %v3721_v35  ;;  %v6896_v56 = vcombine.low %v6861_v52, %v6869_v54  ;;  %v6856_v52 = vld [vmem:[%s10244_s11 + $0x160] sm:$0xff]  ;;  %v6857_v54 = vld [vmem:[%s10244_s11 + $0x168] sm:$0xff] }
 0xf46   :  { %v7953_v45 = vpop.f32.mrf.mxu1 }
 0xf47   :  { %8024 = vrot.lane.b32.xlu0 %v8023_v9, %s10279_s30  ;;  %v6844_v9 = vld [vmem:[%s10244_s11 + $0x100] sm:$0xff] }
 0xf48   :  { %v4179_v62 = vpop.f32.mrf.mxu1  ;;  %v6852_v45 = vld [vmem:[%s10244_s11 + $0x140] sm:$0xff] }
 0xf49   :  { %v6845_v62 = vld [vmem:[%s10244_s11 + $0x108] sm:$0xff] }
 0xf4a   :  { %v7954_v47 = vpop.f32.mrf.mxu1 }
 0xf4b   :  { %v6879_v47 = vcombine.high %v6844_v9, %v6852_v45 }
 0xf4c   :  { %v4286_v26 = vpop.f32.mrf.mxu1 }
 0xf4d   :  { %v8028_v27 = vpack.i.bf16 %v4286_v26, %v3831_v41  ;;  %v6853_v26 = vld [vmem:[%s10244_s11 + $0x148] sm:$0xff] }
 0xf4e   :  { %v7965_v63 = vpop.f32.mrf.mxu1 }
 0xf4f   :  { %8029 = vrot.lane.b32.xlu1 %v8028_v27, %s10280_s19  ;;  %v6878_v27 = vcombine.low %v6844_v9, %v6852_v45  ;;  %v6880_v63 = vcombine.low %v6845_v62, %v6853_v26  ;;  %v6866_v45 = vld [vmem:[%s10244_s11 + $0x1b0] sm:$0xff] }
 0xf50   :  { %v4289_v1 = vpop.f32.mrf.mxu1 }
 0xf51   :  { %v6881_v1 = vcombine.high %v6845_v62, %v6853_v26  ;;  %v6874_v62 = vld [vmem:[%s10244_s11 + $0x1f0] sm:$0xff]  ;;  %v6875_v26 = vld [vmem:[%s10244_s11 + $0x1f8] sm:$0xff] }
 0xf52   :  { %v7966_v2 = vpop.f32.mrf.mxu1 }
 0xf53   :  { %v6862_v2 = vld [vmem:[%s10244_s11 + $0x190] sm:$0xff] }
 0xfb1   :  { %v8020_v0 = vpop.permute.xlu1 %8019 }
 0xfb2   :  { %v8022_v32 = vunpack.i.h.bf16 %v8020_v0  ;;  %v8021_v5 = vunpack.i.l.bf16 %v8020_v0  ;;  %v6870_v0 = vld [vmem:[%s10244_s11 + $0x1d0] sm:$0xff] }
 0xfb4   :  { %v4304_v12 = vsel %vm226_vm4, %v3956_v43, %v8022_v32  ;;  %v3849_v34 = vsel %vm226_vm4, %v3501_v23, %v8021_v5  ;;  %v6898_v32 = vcombine.low %v6862_v2, %v6870_v0  ;;  %v6899_v5 = vcombine.high %v6862_v2, %v6870_v0  ;;  %v6850_v0 = vld [vmem:[%s10244_s11 + $0x130] sm:$0xff] }
 0xfb9   :  { %v8025_v4 = vpop.permute.xlu0 %8024 }
 0xfba   :  { %v8027_v6 = vunpack.i.h.bf16 %v8025_v4  ;;  %v8026_v7 = vunpack.i.l.bf16 %v8025_v4  ;;  %v6863_v4 = vld [vmem:[%s10244_s11 + $0x198] sm:$0xff] }
 0xfbc   :  { %v4305_v53 = vsel %vm676_vm5, %v4304_v12, %v8027_v6  ;;  %v3850_v18 = vsel %vm676_vm5, %v3849_v34, %v8026_v7  ;;  %v6871_v6 = vld [vmem:[%s10244_s11 + $0x1d8] sm:$0xff] }
 0xfbd   :  { %v6900_v7 = vcombine.low %v6863_v4, %v6871_v6 }
 0xfc1   :  { %v8030_v20 = vpop.permute.xlu1 %8029 }
 0xfc2   :  { %v8032_v46 = vunpack.i.h.bf16 %v8030_v20  ;;  %v8031_v17 = vunpack.i.l.bf16 %v8030_v20  ;;  %v6901_v20 = vcombine.high %v6863_v4, %v6871_v6  ;;  %v6858_v4 = vld [vmem:[%s10244_s11 + $0x170] sm:$0xff]  ;;  %v6906_v6 = vcombine.low %v6866_v45, %v6874_v62 }
 0xfc4   :  { %v4306_v36 = vsel %vm678_vm6, %v4305_v53, %v8032_v46  ;;  %v3851_v38 = vsel %vm678_vm6, %v3850_v18, %v8031_v17 }
 0xfc5   :  { %v4307_v13 = vpack.c.bf16 %v4306_v36, %v3851_v38 }
 0xfc7   :  { %7972 = vmatmul.mubr.msk.bf16.vlgmr.msra.gmra.mxu0 %vm177_vm3, %v4307_v13  ;;  %v6842_v13 = vld [vmem:[%s10246_s7 + $0x1] ss:$0 sm:$0xff] }
 0xfc8   :  { %4782 = vmatprep.mubr.bf16.mxu0 %v8393_v19  ;;  %4763 = vmatpush1.bf16.msra.mxu0 %v6896_v56 }
 0xfc9   :  { %4764 = vmatprep.subr.bf16.mxu0 %v6881_v1  ;;  %v6907_v1 = vcombine.high %v6866_v45, %v6874_v62 }
 0xfcc   :  { %4765 = vmatpush1.bf16.msra.mxu0 %v6880_v63 }
 0xfcd   :  { %4848 = vmatprep.subr.bf16.mxu0 %v6901_v20  ;;  %v6891_v20 = vcombine.high %v6850_v0, %v6858_v4 }
0x1087   :  { %v4370_v23 = vpop.f32.mrf.mxu0 }
0x1088   :  { %v4371_v15 = vadd.f32 %v6836_v24, %v4370_v23 }
0x1089   :  { %v7973_v25 = vpop.f32.mrf.mxu0 }
0x108a   :  { %v4377_v28 = vadd.f32 %v4371_v15, %v9384_v39  ;;  %v6843_v25 = vld [vmem:[%s10247_s8 + $0x1] ss:$0 sm:$0xff] }
0x108b   :  { %v4373_v29 = vpop.f32.mrf.mxu0 }
0x108c   :  { %v4374_v33 = vadd.f32 %v6836_v24, %v4373_v29  ;;  %v4383_v35 = vsel %vm177_vm3, %v4377_v28, 0.0  ;;  %v6846_v29 = vld [vmem:[%s10244_s11 + $0x110] sm:$0xff] }
0x108d   :  { %4384 = vadd.xlane.f32.xlu0 %v4383_v35  ;;  %v7974_v57 = vpop.f32.mrf.mxu0  ;;  %v6847_v35 = vld [vmem:[%s10244_s11 + $0x118] sm:$0xff] }
0x108e   :  { %v4378_v37 = vadd.f32 %v4374_v33, %v9386_v14  ;;  %v6860_v14 = vld [vmem:[%s10244_s11 + $0x180] sm:$0xff]  ;;  %v6854_v33 = vld [vmem:[%s10244_s11 + $0x150] sm:$0xff]  ;;  %v6855_v57 = vld [vmem:[%s10244_s11 + $0x158] sm:$0xff] }
0x108f   :  { %v6895_v16 = vcombine.high %v6860_v14, %v6868_v51  ;;  %v6894_v55 = vcombine.low %v6860_v14, %v6868_v51  ;;  %v6848_v51 = vld [vmem:[%s10244_s11 + $0x120] sm:$0xff] }
0x1090   :  { %v4386_v40 = vsel %vm177_vm3, %v4378_v37, 0.0  ;;  %v6887_v44 = vcombine.high %v6848_v51, %v6856_v52 }
0x1091   :  { %4387 = vadd.xlane.f32.xlu1 %v4386_v40  ;;  %4719 = vmatprep.subr.bf16.mxu1 %v6895_v16  ;;  %v6849_v16 = vld [vmem:[%s10244_s11 + $0x128] sm:$0xff] }
0x1092   :  { %4720 = vmatpush1.bf16.msra.mxu1 %v6894_v55  ;;  %v6889_v9 = vcombine.high %v6849_v16, %v6857_v54  ;;  %v6888_v63 = vcombine.low %v6849_v16, %v6857_v54  ;;  %v8198_v16 = vld [vmem:[%s10245_s13 + $0x4c0] sm:$0xff]  }
0x1093   :  { %4721 = vmatprep.subr.bf16.mxu1 %v6879_v47  ;;  %v6867_v47 = vld [vmem:[%s10244_s11 + $0x1b8] sm:$0xff]  ;;  %v8199_v54 = vld [vmem:[%s10245_s13 + $0x400] sm:$0xff]  }
0x1094   :  { %v6909_v2 = vcombine.high %v6867_v47, %v6875_v26 }
0x1096   :  { %4722 = vmatpush1.bf16.msra.mxu1 %v6878_v27  ;;  %v6886_v27 = vcombine.low %v6848_v51, %v6856_v52  ;;  %v8196_v51 = vld [vmem:[%s10245_s13 + $0x488] sm:$0xff]   ;;  %v8197_v52 = vld [vmem:[%s10245_s13 + $0x440] sm:$0xff]  }
0x1097   :  { %4805 = vmatprep.subr.bf16.mxu1 %v6899_v5  ;;  %v6859_v5 = vld [vmem:[%s10244_s11 + $0x178] sm:$0xff] }
0x1116   :  { %v4385_v41 = vpop.xlane.xlu0 %4384 }
0x1117   :  { %v4389_v42 = vmul.f32 0.03125, %v4385_v41 }
0x1119   :  { %v4391_v21 = vsub.f32 %v4377_v28, %v4389_v42  ;;  %v6883_v42 = vcombine.high %v6846_v29, %v6854_v33 }
0x111a   :  { %v4388_v22 = vpop.xlane.xlu1 %4387 }
0x111b   :  { %v4390_v43 = vmul.f32 0.03125, %v4388_v22  ;;  %v4393_v48 = vmul.f32 %v4391_v21, %v4391_v21  ;;  %v6864_v22 = vld [vmem:[%s10244_s11 + $0x1a0] sm:$0xff] }
0x111d   :  { %v4392_v61 = vsub.f32 %v4378_v37, %v4390_v43  ;;  %v4395_v39 = vsel %vm177_vm3, %v4393_v48, 0.0  ;;  %v6872_v43 = vld [vmem:[%s10244_s11 + $0x1e0] sm:$0xff]  ;;  %v6865_v48 = vld [vmem:[%s10244_s11 + $0x1a8] sm:$0xff] }
0x111e   :  { %4396 = vadd.xlane.f32.xlu0 %v4395_v39  ;;  %v6882_v39 = vcombine.low %v6846_v29, %v6854_v33  ;;  %v6902_v55 = vcombine.low %v6864_v22, %v6872_v43  ;;  %v8181_v29 = vld [vmem:[%s10245_s13 + $0x460] sm:$0xff]  }
0x111f   :  { %v4394_v49 = vmul.f32 %v4392_v61, %v4392_v61  ;;  %v8182_v33 = vld [vmem:[%s10245_s13 + $0x4e0] sm:$0xff]  }
0x1121   :  { %v4398_v50 = vsel %vm177_vm3, %v4394_v49, 0.0  ;;  %v6884_v49 = vcombine.low %v6847_v35, %v6855_v57 }
0x1122   :  { %4399 = vadd.xlane.f32.xlu0 %v4398_v50  ;;  %v6903_v50 = vcombine.high %v6864_v22, %v6872_v43  ;;  %v8188_v22 = vld [vmem:[%s10245_s13 + $0x498] sm:$0xff]   ;;  %v8189_v43 = vld [vmem:[%s10245_s13 + $0x450] sm:$0xff]  }
0x11a7   :  { %v4397_v12 = vpop.xlane.xlu0 %4396 }
0x11a8   :  { %v4401_v34 = vmul.f32 0.03125, %v4397_v12 }
0x11aa   :  { %v4403_v46 = vadd.f32 1e-05, %v4401_v34  ;;  %v6890_v34 = vcombine.low %v6850_v0, %v6858_v4 }
0x11ab   :  { %v4400_v17 = vpop.xlane.xlu0 %4399 }
0x11ac   :  { %8369 = vrsqrt.f32 %v4403_v46  ;;  %v4402_v53 = vmul.f32 0.03125, %v4400_v17  ;;  %v8169_v17 = vld [vmem:[%s10245_s13 + $0x478] sm:$0xff]  }
0x11ae   :  { %v4404_v18 = vadd.f32 1e-05, %v4402_v53  ;;  %v8170_v53 = vld [vmem:[%s10245_s13 + $0x4f8] sm:$0xff]  }
0x11b0   :  { %8371 = vrsqrt.f32 %v4404_v18  ;;  %v8171_v18 = vld [vmem:[%s10245_s13 + $0x438] sm:$0xff]  }
0x11b9   :  { %v8370_v36 = vpop.eup %8369 }
0x11ba   :  { %v4407_v38 = vmul.f32 %v8370_v36, %v4391_v21  ;;  %v6885_v21 = vcombine.high %v6847_v35, %v6855_v57  ;;  %v8172_v36 = vld [vmem:[%s10245_s13 + $0x4b8] sm:$0xff]   ;;  %v8183_v35 = vld [vmem:[%s10245_s13 + $0x420] sm:$0xff]  }
0x11bb   :  { %v8184_v57 = vld [vmem:[%s10245_s13 + $0x4a0] sm:$0xff]  }
0x11bc   :  { %v4415_v23 = vmul.f32 %v6842_v13, %v4407_v38  ;;  %v8173_v38 = vld [vmem:[%s10245_s13 + $0x470] sm:$0xff]  }
0x11bd   :  { %v8372_v24 = vpop.eup %8371 }
0x11be   :  { %v4408_v15 = vmul.f32 %v8372_v24, %v4392_v61  ;;  %v9657_v37 = vadd.f32 %v6843_v25, %v4415_v23  ;;  %v6873_v61 = vld [vmem:[%s10244_s11 + $0x1e8] sm:$0xff]  ;;  %v8176_v24 = vld [vmem:[%s10245_s13 + $0x4b0] sm:$0xff]  }
0x11bf   :  { %v6905_v14 = vcombine.high %v6865_v48, %v6873_v61  ;;  %v6904_v56 = vcombine.low %v6865_v48, %v6873_v61  ;;  %v8177_v23 = vld [vmem:[%s10245_s13 + $0x468] sm:$0xff]   ;;  %v8190_v48 = vld [vmem:[%s10245_s13 + $0x4d0] sm:$0xff]  }
0x11c0   :  { %v4416_v28 = vmul.f32 %v6842_v13, %v4408_v15  ;;  %v8175_v13 = vld [vmem:[%s10245_s13 + $0x430] sm:$0xff]   ;;  %v8178_v15 = vld [vmem:[%s10245_s13 + $0x4e8] sm:$0xff]  }
0x11c1   :  { %v8191_v61 = vld [vmem:[%s10245_s13 + $0x410] sm:$0xff]  }
0x11c2   :  { %v9659_v40 = vadd.f32 %v6843_v25, %v4416_v28  ;;  %v8179_v25 = vld [vmem:[%s10245_s13 + $0x428] sm:$0xff]  }
0x11c3   :  { %v8180_v28 = vld [vmem:[%s10245_s13 + $0x4a8] sm:$0xff]  }
0x11c4   :  { %v9663_v41 = vpack.c.bf16 %v9659_v40, %v9657_v37 }
0x11c6   :  { %6910 = vmatmul.mubr.msk.bf16.vlgmr.msra.gmra.mxu1 %vm177_vm3, %v9663_v41  ;;  %6911 = vmatmul.mubr.msk.bf16.vlgmr.msra.gmra.mxu0 %vm177_vm3, %v9663_v41 }
0x11c7   :  { %4806 = vmatpush1.bf16.msra.mxu1 %v6898_v32  ;;  %4849 = vmatpush1.bf16.msra.mxu0 %v6900_v7  ;;  %v6851_v32 = vld [vmem:[%s10244_s11 + $0x138] sm:$0xff]  ;;  %v6908_v7 = vcombine.low %v6867_v47, %v6875_v26 }
0x11c8   :  { %4807 = vmatprep.subr.bf16.mxu1 %v6883_v42  ;;  %4850 = vmatprep.subr.bf16.mxu0 %v6885_v21  ;;  %v6893_v12 = vcombine.high %v6851_v32, %v6859_v5  ;;  %v6892_v46 = vcombine.low %v6851_v32, %v6859_v5  ;;  %v8186_v42 = vld [vmem:[%s10245_s13 + $0x4d8] sm:$0xff]  }
0x11c9   :  { %4825 = vmatprep.mubr.bf16.mxu1 %v8393_v19  ;;  %4868 = vmatprep.mubr.bf16.mxu0 %v8393_v19  ;;  %v8187_v21 = vld [vmem:[%s10245_s13 + $0x418] sm:$0xff]  }
0x11cb   :  { %4808 = vmatpush1.bf16.msra.mxu1 %v6882_v39  ;;  %4851 = vmatpush1.bf16.msra.mxu0 %v6884_v49  ;;  %v8192_v39 = vld [vmem:[%s10245_s13 + $0x490] sm:$0xff]   ;;  %v8193_v49 = vld [vmem:[%s10245_s13 + $0x448] sm:$0xff]  }
0x11cc   :  { %4891 = vmatprep.subr.bf16.mxu1 %v6903_v50  ;;  %4934 = vmatprep.subr.bf16.mxu0 %v6905_v14  ;;  %v8194_v50 = vld [vmem:[%s10245_s13 + $0x4c8] sm:$0xff]  }
0x11cd   :  { %v8195_v14 = vld [vmem:[%s10245_s13 + $0x408] sm:$0xff]  }
0x11ce   :  { %6912 = vmatmul.mubr.msk.bf16.vlgmr.msra.gmra.mxu1 %vm177_vm3, %v9663_v41  ;;  %6913 = vmatmul.mubr.msk.bf16.vlgmr.msra.gmra.mxu0 %vm177_vm3, %v9663_v41 }
0x11cf   :  { %4892 = vmatpush1.bf16.msra.mxu1 %v6902_v55  ;;  %4935 = vmatpush1.bf16.msra.mxu0 %v6904_v56  ;;  %v8200_v55 = vld [vmem:[%s10245_s13 + $0x480] sm:$0xff]   ;;  %v8201_v56 = vld [vmem:[%s10245_s13 + $0x578] sm:$0xff]  }
0x11d0   :  { %4893 = vmatprep.subr.bf16.mxu1 %v6887_v44  ;;  %4936 = vmatprep.subr.bf16.mxu0 %v6889_v9  ;;  %v8202_v44 = vld [vmem:[%s10245_s13 + $0x5f8] sm:$0xff]   ;;  %v9840_v9 = vld [vmem:[%s10248_s12 + $0x10] sm:$0xff] }
0x11d1   :  { %4911 = vmatprep.mubr.bf16.mxu1 %v8393_v19  ;;  %4954 = vmatprep.mubr.bf16.mxu0 %v8393_v19  ;;  %v4471_v47 = vrot.slane %v9840_v9, %v8972_v58  ;;  %v4479_v26 = vrot.slane %v9840_v9, %v8975_v59 }
0x11d3   :  { %4894 = vmatpush1.bf16.msra.mxu1 %v6886_v27  ;;  %4937 = vmatpush1.bf16.msra.mxu0 %v6888_v63  ;;  %v4467_v27 = vrot.slane %v9840_v9, %v8978_v10  ;;  %v4475_v63 = vrot.slane %v9840_v9, %v8981_v60 }
0x11d4   :  { %4977 = vmatprep.subr.bf16.mxu1 %v6907_v1  ;;  %5020 = vmatprep.subr.bf16.mxu0 %v6909_v2 }
0x11d6   :  { %6914 = vmatmul.mubr.msk.bf16.vlgmr.msra.gmra.mxu1 %vm177_vm3, %v9663_v41  ;;  %6915 = vmatmul.mubr.msk.bf16.vlgmr.msra.gmra.mxu0 %vm177_vm3, %v9663_v41 }
0x11d7   :  { %4978 = vmatpush1.bf16.msra.mxu1 %v6906_v6  ;;  %5021 = vmatpush1.bf16.msra.mxu0 %v6908_v7 }
0x11d8   :  { %4979 = vmatprep.subr.bf16.mxu1 %v6891_v20  ;;  %5022 = vmatprep.subr.bf16.mxu0 %v6893_v12 }
0x11d9   :  { %4997 = vmatprep.mubr.bf16.mxu1 %v8393_v19  ;;  %5040 = vmatprep.mubr.bf16.mxu0 %v8393_v19  ;;  %v8174_v19 = vld [vmem:[%s10245_s13 + $0x4f0] sm:$0xff]  }
0x11db   :  { %4980 = vmatpush1.bf16.msra.mxu1 %v6890_v34  ;;  %5023 = vmatpush1.bf16.msra.mxu0 %v6892_v46 }
0x11dc   :  { %7565 = vmatprep.subr.bf16.mxu1 %v8169_v17  ;;  %7587 = vmatprep.subr.bf16.mxu0 %v8170_v53 }
0x11de   :  { %6916 = vmatmul.mubr.msk.bf16.vlgmr.msra.gmra.mxu1 %vm177_vm3, %v9663_v41  ;;  %6917 = vmatmul.mubr.msk.bf16.vlgmr.msra.gmra.mxu0 %vm177_vm3, %v9663_v41  ;;  %v8185_v41 = vld [vmem:[%s10245_s13 + $0x458] sm:$0xff]  }
0x11df   :  { %7566 = vmatpush3.bf16.msra.mxu1 %v8171_v18  ;;  %7588 = vmatpush3.bf16.msra.mxu0 %v8172_v36 }
0x11e0   :  { %7567 = vmatprep.subr.bf16.mxu1 %v8173_v38  ;;  %7589 = vmatprep.subr.bf16.mxu0 %v8174_v19 }
0x11e3   :  { %7568 = vmatpush3.bf16.msra.mxu1 %v8175_v13  ;;  %7590 = vmatpush3.bf16.msra.mxu0 %v8176_v24  ;;  %v4487_v13 = vrot.slane %v9840_v9, %v8997_v8  ;;  %v4495_v24 = vrot.slane %v9840_v9, %v9000_v11 }
0x11e4   :  { %7569 = vmatprep.subr.bf16.mxu1 %v8177_v23  ;;  %7591 = vmatprep.subr.bf16.mxu0 %v8178_v15 }
0x11e7   :  { %7570 = vmatpush3.bf16.msra.mxu1 %v8179_v25  ;;  %7592 = vmatpush3.bf16.msra.mxu0 %v8180_v28 }
0x11e8   :  { %7571 = vmatprep.subr.bf16.mxu1 %v8181_v29  ;;  %7593 = vmatprep.subr.bf16.mxu0 %v8182_v33 }
0x11eb   :  { %7572 = vmatpush3.bf16.msra.mxu1 %v8183_v35  ;;  %7594 = vmatpush3.bf16.msra.mxu0 %v8184_v57 }
0x11ec   :  { %7573 = vmatprep.subr.bf16.mxu1 %v8185_v41  ;;  %7595 = vmatprep.subr.bf16.mxu0 %v8186_v42 }
0x11ef   :  { %7574 = vmatpush3.bf16.msra.mxu1 %v8187_v21  ;;  %7596 = vmatpush3.bf16.msra.mxu0 %v8188_v22  ;;  %v8203_v21 = vld [vmem:[%s10245_s13 + $0x538] sm:$0xff]  }
0x11f0   :  { %7575 = vmatprep.subr.bf16.mxu1 %v8189_v43  ;;  %7597 = vmatprep.subr.bf16.mxu0 %v8190_v48  ;;  %v8204_v22 = vld [vmem:[%s10245_s13 + $0x5b8] sm:$0xff]  }
0x11f3   :  { %7576 = vmatpush3.bf16.msra.mxu1 %v8191_v61  ;;  %7598 = vmatpush3.bf16.msra.mxu0 %v8192_v39 }
0x11f4   :  { %7577 = vmatprep.subr.bf16.mxu1 %v8193_v49  ;;  %7599 = vmatprep.subr.bf16.mxu0 %v8194_v50  ;;  %v8205_v49 = vld [vmem:[%s10245_s13 + $0x570] sm:$0xff]  }
0x11f5   :  { %v8206_v50 = vld [vmem:[%s10245_s13 + $0x5f0] sm:$0xff]  }
0x11f7   :  { %7578 = vmatpush3.bf16.msra.mxu1 %v8195_v14  ;;  %7600 = vmatpush3.bf16.msra.mxu0 %v8196_v51 }
0x11f8   :  { %7579 = vmatprep.subr.bf16.mxu1 %v8197_v52  ;;  %7601 = vmatprep.subr.bf16.mxu0 %v8198_v16 }
0x11fb   :  { %7580 = vmatpush3.bf16.msra.mxu1 %v8199_v54  ;;  %7602 = vmatpush3.bf16.msra.mxu0 %v8200_v55 }
0x11fc   :  { %7609 = vmatprep.subr.bf16.mxu1 %v8201_v56  ;;  %7631 = vmatprep.subr.bf16.mxu0 %v8202_v44  ;;  %v8207_v56 = vld [vmem:[%s10245_s13 + $0x530] sm:$0xff]  }
0x11fd   :  { %v8208_v44 = vld [vmem:[%s10245_s13 + $0x5b0] sm:$0xff]  }
0x1286   :  { %v4741_v45 = vpop.f32.mrf.mxu1  ;;  %v4784_v62 = vpop.f32.mrf.mxu0 }
0x1287   :  { %v4742_v20 = vadd.f32 %v4741_v45, %v4467_v27  ;;  %v4785_v12 = vadd.f32 %v4784_v62, %v4475_v63  ;;  %v8209_v45 = vld [vmem:[%s10245_s13 + $0x568] sm:$0xff]  }
0x1288   :  { %v4743_v1 = vpop.f32.mrf.mxu1  ;;  %v4786_v2 = vpop.f32.mrf.mxu0 }
0x1289   :  { %v4744_v32 = vadd.f32 %v4743_v1, %v4471_v47  ;;  %v4787_v5 = vadd.f32 %v4786_v2, %v4479_v26  ;;  %v5051_v29 = vmax.f32 %v4742_v20, 0.0  ;;  %v5053_v33 = vmax.f32 %v4785_v12, 0.0  ;;  %v8216_v12 = vld [vmem:[%s10245_s13 + $0x5a0] sm:$0xff]  }
0x128a   :  { %v4745_v0 = vpop.f32.mrf.mxu1  ;;  %v4788_v4 = vpop.f32.mrf.mxu0 }
0x128b   :  { %v4746_v6 = vadd.f32 %v4745_v0, %v4467_v27  ;;  %v4789_v7 = vadd.f32 %v4788_v4, %v4475_v63  ;;  %v5052_v23 = vmax.f32 %v4744_v32, 0.0  ;;  %v5054_v15 = vmax.f32 %v4787_v5, 0.0  ;;  %v8210_v63 = vld [vmem:[%s10245_s13 + $0x5e8] sm:$0xff]   ;;  %v8213_v32 = vld [vmem:[%s10245_s13 + $0x560] sm:$0xff]  }
0x128c   :  { %v4747_v34 = vpop.f32.mrf.mxu1  ;;  %v4790_v46 = vpop.f32.mrf.mxu0  ;;  %v8211_v0 = vld [vmem:[%s10245_s13 + $0x528] sm:$0xff]   ;;  %v8214_v5 = vld [vmem:[%s10245_s13 + $0x5e0] sm:$0xff]  }
0x128d   :  { %v4748_v17 = vadd.f32 %v4747_v34, %v4471_v47  ;;  %v4791_v53 = vadd.f32 %v4790_v46, %v4479_v26  ;;  %v5067_v18 = vmax.f32 %v4746_v6, 0.0  ;;  %v5069_v36 = vmax.f32 %v4789_v7, 0.0  ;;  %v8212_v4 = vld [vmem:[%s10245_s13 + $0x5a8] sm:$0xff]   ;;  %v8215_v7 = vld [vmem:[%s10245_s13 + $0x520] sm:$0xff]   ;;  %v8217_v34 = vld [vmem:[%s10245_s13 + $0x558] sm:$0xff]  }
0x128e   :  { %v9850_v38 = vpop.f32.mrf.mxu1  ;;  %v9852_v19 = vpop.f32.mrf.mxu0  ;;  %v8218_v46 = vld [vmem:[%s10245_s13 + $0x5d8] sm:$0xff]  }
0x128f   :  { %v5068_v25 = vmax.f32 %v4748_v17, 0.0  ;;  %v5070_v28 = vmax.f32 %v4791_v53, 0.0  ;;  %v5083_v43 = vpack.c.bf16 %v5067_v18, %v5051_v29  ;;  %v5085_v48 = vpack.c.bf16 %v5069_v36, %v5053_v33  ;;  %v8219_v53 = vld [vmem:[%s10245_s13 + $0x518] sm:$0xff]   ;;  %v8225_v29 = vld [vmem:[%s10245_s13 + $0x548] sm:$0xff]  }
0x1290   :  { %v4829_v35 = vpop.f32.mrf.mxu1  ;;  %v4872_v57 = vpop.f32.mrf.mxu0  ;;  %v8220_v36 = vld [vmem:[%s10245_s13 + $0x598] sm:$0xff]   ;;  %v8226_v33 = vld [vmem:[%s10245_s13 + $0x5c8] sm:$0xff]  }
0x1291   :  { %v5084_v41 = vpack.c.bf16 %v5068_v25, %v5052_v23  ;;  %v5086_v42 = vpack.c.bf16 %v5070_v28, %v5054_v15  ;;  %v4830_v14 = vadd.f32 %v4829_v35, %v4487_v13  ;;  %v4873_v51 = vadd.f32 %v4872_v57, %v4495_v24  ;;  %v8223_v15 = vld [vmem:[%s10245_s13 + $0x510] sm:$0xff]  }
0x1292   :  { %v9864_v61 = vpop.f32.mrf.mxu1  ;;  %v9866_v39 = vpop.f32.mrf.mxu0  ;;  %v8224_v28 = vld [vmem:[%s10245_s13 + $0x590] sm:$0xff]   ;;  %v4483_v35 = vrot.slane %v9840_v9, %v9079_v30  ;;  %v4491_v57 = vrot.slane %v9840_v9, %v9082_v31  ;;  %v8228_v9 = vld [vmem:[%s10245_s13 + $0x588] sm:$0xff]  }
0x1293   :  { %6164 = vmatprep.mubr.bf16.mxu1 %v5084_v41  ;;  %6205 = vmatprep.mubr.bf16.mxu0 %v5086_v42  ;;  %v5056_v62 = vmax.f32 %v4830_v14, 0.0  ;;  %v5058_v47 = vmax.f32 %v4873_v51, 0.0  ;;  %v9949_v41 = vld [vmem:[%s10248_s12 + $0x18] sm:$0xff] }
0x1294   :  { %v4833_v52 = vpop.f32.mrf.mxu1  ;;  %v4876_v16 = vpop.f32.mrf.mxu0  ;;  %6165 = vmatmul.mubr.bf16.vlgmr.msra.gmra.mxu1 %v5083_v43  ;;  %6206 = vmatmul.mubr.bf16.vlgmr.msra.gmra.mxu0 %v5085_v48  ;;  %v4503_v43 = vrot.slane %v9949_v41, %v8972_v58  ;;  %v4511_v14 = vrot.slane %v9949_v41, %v8975_v59  ;;  %v8230_v58 = vld [vmem:[%s10245_s13 + $0x5c0] sm:$0xff]  }
0x1295   :  { %v4834_v54 = vadd.f32 %v4833_v52, %v4487_v13  ;;  %v4877_v55 = vadd.f32 %v4876_v16, %v4495_v24  ;;  %7610 = vmatpush3.bf16.msra.mxu1 %v8203_v21  ;;  %7632 = vmatpush3.bf16.msra.mxu0 %v8204_v22  ;;  %v8221_v13 = vld [vmem:[%s10245_s13 + $0x550] sm:$0xff]   ;;  %v8227_v21 = vld [vmem:[%s10245_s13 + $0x508] sm:$0xff]   ;;  %v4832_v22 = vadd.f32 %v9864_v61, %v4483_v35  ;;  %v8232_v59 = vld [vmem:[%s10245_s13 + $0x580] sm:$0xff]  }
0x1296   :  { %7611 = vmatprep.subr.bf16.mxu1 %v8205_v49  ;;  %7633 = vmatprep.subr.bf16.mxu0 %v8206_v50  ;;  %v9898_v6 = vpop.f32.mrf.mxu1  ;;  %v9903_v20 = vpop.f32.mrf.mxu0  ;;  %v8222_v24 = vld [vmem:[%s10245_s13 + $0x5d0] sm:$0xff]   ;;  %v8229_v49 = vld [vmem:[%s10245_s13 + $0x540] sm:$0xff]   ;;  %v4875_v50 = vadd.f32 %v9866_v39, %v4491_v57  ;;  %v4828_v61 = vadd.f32 %v9850_v38, %v4483_v35  ;;  %v4871_v52 = vadd.f32 %v9852_v19, %v4491_v57  ;;  %v8233_v38 = vld [vmem:[%s10245_s13 + $0x678] sm:$0xff]  }
0x1297   :  { %v5072_v26 = vmax.f32 %v4834_v54, 0.0  ;;  %v5074_v27 = vmax.f32 %v4877_v55, 0.0  ;;  %v8231_v54 = vld [vmem:[%s10245_s13 + $0x500] sm:$0xff]   ;;  %v5071_v39 = vmax.f32 %v4832_v22, 0.0  ;;  %v8249_v35 = vld [vmem:[%s10245_s13 + $0x658] sm:$0xff]  }
0x1298   :  { %v4915_v17 = vpop.f32.mrf.mxu1  ;;  %v4958_v18 = vpop.f32.mrf.mxu0  ;;  %v8250_v57 = vld [vmem:[%s10245_s13 + $0x6d8] sm:$0xff]  }
0x1299   :  { %v5088_v1 = vpack.c.bf16 %v5072_v26, %v5056_v62  ;;  %v5090_v2 = vpack.c.bf16 %v5074_v27, %v5058_v47  ;;  %7612 = vmatpush3.bf16.msra.mxu1 %v8207_v56  ;;  %7634 = vmatpush3.bf16.msra.mxu0 %v8208_v44  ;;  %v4916_v55 = vadd.f32 %v4915_v17, %v4503_v43  ;;  %v5073_v56 = vmax.f32 %v4875_v50, 0.0  ;;  %v8234_v44 = vld [vmem:[%s10245_s13 + $0x6f8] sm:$0xff]   ;;  %v8241_v17 = vld [vmem:[%s10245_s13 + $0x668] sm:$0xff]   ;;  %v8255_v50 = vld [vmem:[%s10245_s13 + $0x610] sm:$0xff]  }
0x129a   :  { %7613 = vmatprep.subr.bf16.mxu1 %v8209_v45  ;;  %7635 = vmatprep.subr.bf16.mxu0 %v8210_v63  ;;  %v9926_v23 = vpop.f32.mrf.mxu1  ;;  %v9931_v25 = vpop.f32.mrf.mxu0  ;;  %v4959_v19 = vadd.f32 %v4958_v18, %v4511_v14  ;;  %v5055_v45 = vmax.f32 %v4828_v61, 0.0  ;;  %v5057_v47 = vmax.f32 %v4871_v52, 0.0  ;;  %v8235_v27 = vld [vmem:[%s10245_s13 + $0x638] sm:$0xff]   ;;  %v8243_v18 = vld [vmem:[%s10245_s13 + $0x628] sm:$0xff]   ;;  %v4499_v52 = vrot.slane %v9949_v41, %v8978_v10 }
0x129b   :  { %6246 = vmatprep.mubr.bf16.mxu1 %v5088_v1  ;;  %6287 = vmatprep.mubr.bf16.mxu0 %v5090_v2  ;;  %v5060_v1 = vmax.f32 %v4916_v55, 0.0  ;;  %v8236_v2 = vld [vmem:[%s10245_s13 + $0x6b8] sm:$0xff]   ;;  %v8257_v61 = vld [vmem:[%s10245_s13 + $0x648] sm:$0xff]  }
0x129c   :  { %v4919_v42 = vpop.f32.mrf.mxu1  ;;  %v4962_v48 = vpop.f32.mrf.mxu0  ;;  %v5087_v63 = vpack.c.bf16 %v5071_v39, %v5055_v45  ;;  %v8259_v39 = vld [vmem:[%s10245_s13 + $0x608] sm:$0xff]   ;;  %v4918_v55 = vadd.f32 %v9926_v23, %v4499_v52  ;;  %v4914_v23 = vadd.f32 %v9898_v6, %v4499_v52  ;;  %v8265_v6 = vld [vmem:[%s10245_s13 + $0x778] sm:$0xff]   ;;  %v8287_v52 = vld [vmem:[%s10245_s13 + $0x710] sm:$0xff]  }
0x129d   :  { %7614 = vmatpush3.bf16.msra.mxu1 %v8211_v0  ;;  %7636 = vmatpush3.bf16.msra.mxu0 %v8212_v4  ;;  %v4920_v51 = vadd.f32 %v4919_v42, %v4503_v43  ;;  %v4963_v16 = vadd.f32 %v4962_v48, %v4511_v14  ;;  %v5089_v0 = vpack.c.bf16 %v5073_v56, %v5057_v47  ;;  %v5062_v4 = vmax.f32 %v4959_v19, 0.0  ;;  %v8252_v43 = vld [vmem:[%s10245_s13 + $0x698] sm:$0xff]   ;;  %v8253_v48 = vld [vmem:[%s10245_s13 + $0x650] sm:$0xff]   ;;  %v8260_v10 = vld [vmem:[%s10245_s13 + $0x688] sm:$0xff]  }
0x129e   :  { %7615 = vmatprep.subr.bf16.mxu1 %v8213_v32  ;;  %7637 = vmatprep.subr.bf16.mxu0 %v8214_v5  ;;  %v8237_v32 = vld [vmem:[%s10245_s13 + $0x670] sm:$0xff]   ;;  %v4527_v19 = vrot.slane %v9949_v41, %v9000_v11  ;;  %v8263_v47 = vld [vmem:[%s10245_s13 + $0x600] sm:$0xff]  }
0x129f   :  { %v5076_v62 = vmax.f32 %v4920_v51, 0.0  ;;  %v5078_v26 = vmax.f32 %v4963_v16, 0.0  ;;  %v8258_v51 = vld [vmem:[%s10245_s13 + $0x6c8] sm:$0xff]   ;;  %v4507_v16 = vrot.slane %v9949_v41, %v8981_v60  ;;  %v8261_v60 = vld [vmem:[%s10245_s13 + $0x640] sm:$0xff]  }
0x12a0   :  { %v8264_v11 = vld [vmem:[%s10245_s13 + $0x680] sm:$0xff]  }
0x12a1   :  { %7616 = vmatpush3.bf16.msra.mxu1 %v8215_v7  ;;  %7638 = vmatpush3.bf16.msra.mxu0 %v8216_v12  ;;  %v5092_v5 = vpack.c.bf16 %v5076_v62, %v5060_v1  ;;  %v8238_v7 = vld [vmem:[%s10245_s13 + $0x6f0] sm:$0xff]   ;;  %v5094_v12 = vpack.c.bf16 %v5078_v26, %v5062_v4  ;;  %v4961_v56 = vadd.f32 %v9931_v25, %v4507_v16  ;;  %v5075_v25 = vmax.f32 %v4918_v55, 0.0 }
0x12a2   :  { %7617 = vmatprep.subr.bf16.mxu1 %v8217_v34  ;;  %7639 = vmatprep.subr.bf16.mxu0 %v8218_v46  ;;  %v8239_v34 = vld [vmem:[%s10245_s13 + $0x630] sm:$0xff]   ;;  %v4957_v45 = vadd.f32 %v9903_v20, %v4507_v16  ;;  %v5059_v1 = vmax.f32 %v4914_v23, 0.0  ;;  %v4515_v55 = vrot.slane %v9949_v41, %v9079_v30  ;;  %v8293_v30 = vld [vmem:[%s10245_s13 + $0x740] sm:$0xff]  }
0x12a3   :  { %v8240_v46 = vld [vmem:[%s10245_s13 + $0x6b0] sm:$0xff]  }
0x12a4   :  { %v8288_v16 = vld [vmem:[%s10245_s13 + $0x790] sm:$0xff]  }
0x12a5   :  { %7618 = vmatpush3.bf16.msra.mxu1 %v8219_v53  ;;  %7640 = vmatpush3.bf16.msra.mxu0 %v8220_v36  ;;  %v8242_v53 = vld [vmem:[%s10245_s13 + $0x6e8] sm:$0xff]  }
0x12a6   :  { %7619 = vmatprep.subr.bf16.mxu1 %v8221_v13  ;;  %7641 = vmatprep.subr.bf16.mxu0 %v8222_v24  ;;  %v8244_v36 = vld [vmem:[%s10245_s13 + $0x6a8] sm:$0xff]   ;;  %v8245_v13 = vld [vmem:[%s10245_s13 + $0x660] sm:$0xff]  }
0x12a7   :  { %v8246_v24 = vld [vmem:[%s10245_s13 + $0x6e0] sm:$0xff]  }
0x12a9   :  { %7620 = vmatpush3.bf16.msra.mxu1 %v8223_v15  ;;  %7642 = vmatpush3.bf16.msra.mxu0 %v8224_v28  ;;  %v10019_v15 = vpop.f32.mrf.mxu1  ;;  %v8247_v28 = vld [vmem:[%s10245_s13 + $0x620] sm:$0xff]  }
0x12aa   :  { %7621 = vmatprep.subr.bf16.mxu1 %v8225_v29  ;;  %7643 = vmatprep.subr.bf16.mxu0 %v8226_v33  ;;  %v10024_v29 = vpop.f32.mrf.mxu0  ;;  %v8248_v33 = vld [vmem:[%s10245_s13 + $0x6a0] sm:$0xff]  }
0x12ab   :  { %v5001_v42 = vpop.f32.mrf.mxu1 }
0x12ac   :  { %v5044_v22 = vpop.f32.mrf.mxu0 }
0x12ad   :  { %7622 = vmatpush3.bf16.msra.mxu1 %v8227_v21  ;;  %7644 = vmatpush3.bf16.msra.mxu0 %v8228_v9  ;;  %v8251_v21 = vld [vmem:[%s10245_s13 + $0x618] sm:$0xff]   ;;  %v8254_v9 = vld [vmem:[%s10245_s13 + $0x6d0] sm:$0xff]   ;;  %v5045_v20 = vadd.f32 %v5044_v22, %v4527_v19  ;;  %v8279_v22 = vld [vmem:[%s10245_s13 + $0x720] sm:$0xff]  }
0x12ae   :  { %7623 = vmatprep.subr.bf16.mxu1 %v8229_v49  ;;  %7645 = vmatprep.subr.bf16.mxu0 %v8230_v58  ;;  %v10047_v49 = vpop.f32.mrf.mxu1  ;;  %v10052_v14 = vpop.f32.mrf.mxu0  ;;  %v8256_v58 = vld [vmem:[%s10245_s13 + $0x690] sm:$0xff]  }
0x12b1   :  { %7624 = vmatpush3.bf16.msra.mxu1 %v8231_v54  ;;  %7646 = vmatpush3.bf16.msra.mxu0 %v8232_v59  ;;  %v5005_v54 = vpop.f32.mrf.mxu1  ;;  %v4519_v59 = vrot.slane %v9949_v41, %v8997_v8  ;;  %v8262_v8 = vld [vmem:[%s10245_s13 + $0x6c0] sm:$0xff]  }
0x12b2   :  { %7653 = vmatprep.subr.bf16.mxu1 %v8233_v38  ;;  %7675 = vmatprep.subr.bf16.mxu0 %v8234_v44  ;;  %v5048_v38 = vpop.f32.mrf.mxu0 }
0x12b3   :  { %v5006_v44 = vadd.f32 %v5005_v54, %v4519_v59  ;;  %v5049_v62 = vadd.f32 %v5048_v38, %v4527_v19  ;;  %v5002_v26 = vadd.f32 %v5001_v42, %v4519_v59  ;;  %v8277_v42 = vld [vmem:[%s10245_s13 + $0x760] sm:$0xff]   ;;  %v8289_v54 = vld [vmem:[%s10245_s13 + $0x748] sm:$0xff]   ;;  %v4523_v59 = vrot.slane %v9949_v41, %v9082_v31 }
0x12b4   :  { %6247 = vmatmul.mubr.bf16.vlgmr.msra.gmra.mxu1 %v5087_v63  ;;  %6288 = vmatmul.mubr.bf16.vlgmr.msra.gmra.mxu0 %v5089_v0  ;;  %v8266_v63 = vld [vmem:[%s10245_s13 + $0x7f8] sm:$0xff]   ;;  %v5061_v0 = vmax.f32 %v4957_v45, 0.0  ;;  %v8291_v38 = vld [vmem:[%s10245_s13 + $0x708] sm:$0xff]   ;;  %v8294_v31 = vld [vmem:[%s10245_s13 + $0x7c0] sm:$0xff]   ;;  %v5000_v41 = vadd.f32 %v10019_v15, %v4515_v55 }
0x12b5   :  { %7654 = vmatpush3.bf16.msra.mxu1 %v8235_v27  ;;  %6328 = vmatprep.mubr.bf16.mxu1 %v5092_v5  ;;  %v5077_v27 = vmax.f32 %v4961_v56, 0.0  ;;  %v5082_v4 = vmax.f32 %v5049_v62, 0.0  ;;  %v5091_v5 = vpack.c.bf16 %v5075_v25, %v5059_v1  ;;  %v5047_v56 = vadd.f32 %v10052_v14, %v4523_v59  ;;  %v8295_v19 = vld [vmem:[%s10245_s13 + $0x700] sm:$0xff]  }
0x12b6   :  { %7676 = vmatpush3.bf16.msra.mxu0 %v8236_v2  ;;  %6369 = vmatprep.mubr.bf16.mxu0 %v5094_v12  ;;  %v5080_v2 = vmax.f32 %v5006_v44, 0.0  ;;  %v8268_v12 = vld [vmem:[%s10245_s13 + $0x7b8] sm:$0xff]   ;;  %v8296_v14 = vld [vmem:[%s10245_s13 + $0x780] sm:$0xff]   ;;  %v5063_v44 = vmax.f32 %v5000_v41, 0.0 }
0x12b7   :  { %7655 = vmatprep.subr.bf16.mxu1 %v8237_v32  ;;  %7677 = vmatprep.subr.bf16.mxu0 %v8238_v7  ;;  %v8267_v32 = vld [vmem:[%s10245_s13 + $0x738] sm:$0xff]   ;;  %v5064_v7 = vmax.f32 %v5002_v26, 0.0  ;;  %v5081_v23 = vmax.f32 %v5047_v56, 0.0 }
0x12b9   :  { %7656 = vmatpush3.bf16.msra.mxu1 %v8239_v34  ;;  %v5093_v34 = vpack.c.bf16 %v5077_v27, %v5061_v0 }
0x12ba   :  { %7678 = vmatpush3.bf16.msra.mxu0 %v8240_v46  ;;  %7657 = vmatprep.subr.bf16.mxu1 %v8241_v17  ;;  %v5066_v46 = vmax.f32 %v5045_v20, 0.0  ;;  %v8269_v17 = vld [vmem:[%s10245_s13 + $0x770] sm:$0xff]  }
0x12bb   :  { %7679 = vmatprep.subr.bf16.mxu0 %v8242_v53  ;;  %v5096_v53 = vpack.c.bf16 %v5080_v2, %v5064_v7 }
0x12bd   :  { %7658 = vmatpush3.bf16.msra.mxu1 %v8243_v18  ;;  %v8270_v18 = vld [vmem:[%s10245_s13 + $0x7f0] sm:$0xff]  }
0x12be   :  { %7680 = vmatpush3.bf16.msra.mxu0 %v8244_v36  ;;  %7659 = vmatprep.subr.bf16.mxu1 %v8245_v13  ;;  %v5098_v36 = vpack.c.bf16 %v5082_v4, %v5066_v46  ;;  %v8271_v13 = vld [vmem:[%s10245_s13 + $0x730] sm:$0xff]  }
0x12bf   :  { %7681 = vmatprep.subr.bf16.mxu0 %v8246_v24  ;;  %v8272_v24 = vld [vmem:[%s10245_s13 + $0x7b0] sm:$0xff]  }
0x12c1   :  { %7660 = vmatpush3.bf16.msra.mxu1 %v8247_v28  ;;  %v8273_v28 = vld [vmem:[%s10245_s13 + $0x768] sm:$0xff]  }
0x12c2   :  { %7682 = vmatpush3.bf16.msra.mxu0 %v8248_v33  ;;  %7661 = vmatprep.subr.bf16.mxu1 %v8249_v35  ;;  %v8274_v33 = vld [vmem:[%s10245_s13 + $0x7e8] sm:$0xff]  }
0x12c3   :  { %7683 = vmatprep.subr.bf16.mxu0 %v8250_v57  ;;  %v8275_v35 = vld [vmem:[%s10245_s13 + $0x728] sm:$0xff]  }
0x12c4   :  { %v8276_v57 = vld [vmem:[%s10245_s13 + $0x7a8] sm:$0xff]  }
0x12c5   :  { %7662 = vmatpush3.bf16.msra.mxu1 %v8251_v21  ;;  %v8278_v21 = vld [vmem:[%s10245_s13 + $0x7e0] sm:$0xff]  }
0x12c6   :  { %7684 = vmatpush3.bf16.msra.mxu0 %v8252_v43  ;;  %7663 = vmatprep.subr.bf16.mxu1 %v8253_v48  ;;  %v8280_v43 = vld [vmem:[%s10245_s13 + $0x7a0] sm:$0xff]   ;;  %v8281_v48 = vld [vmem:[%s10245_s13 + $0x758] sm:$0xff]  }
0x12c7   :  { %7685 = vmatprep.subr.bf16.mxu0 %v8254_v9  ;;  %v8282_v9 = vld [vmem:[%s10245_s13 + $0x7d8] sm:$0xff]  }
0x12c9   :  { %7664 = vmatpush3.bf16.msra.mxu1 %v8255_v50  ;;  %v8283_v50 = vld [vmem:[%s10245_s13 + $0x718] sm:$0xff]  }
0x12ca   :  { %7686 = vmatpush3.bf16.msra.mxu0 %v8256_v58  ;;  %7665 = vmatprep.subr.bf16.mxu1 %v8257_v61  ;;  %v8284_v58 = vld [vmem:[%s10245_s13 + $0x798] sm:$0xff]   ;;  %v8285_v61 = vld [vmem:[%s10245_s13 + $0x750] sm:$0xff]  }
0x12cb   :  { %7687 = vmatprep.subr.bf16.mxu0 %v8258_v51  ;;  %v8286_v51 = vld [vmem:[%s10245_s13 + $0x7d0] sm:$0xff]  }
0x12cd   :  { %7666 = vmatpush3.bf16.msra.mxu1 %v8259_v39  ;;  %v8290_v39 = vld [vmem:[%s10245_s13 + $0x7c8] sm:$0xff]  }
0x12ce   :  { %7688 = vmatpush3.bf16.msra.mxu0 %v8260_v10  ;;  %7667 = vmatprep.subr.bf16.mxu1 %v8261_v60  ;;  %v5004_v10 = vadd.f32 %v10047_v49, %v4515_v55  ;;  %v8292_v60 = vld [vmem:[%s10245_s13 + $0x788] sm:$0xff]   ;;  %v5043_v49 = vadd.f32 %v10024_v29, %v4523_v59 }
0x12cf   :  { %7689 = vmatprep.subr.bf16.mxu0 %v8262_v8 }
0x12d0   :  { %v5079_v8 = vmax.f32 %v5004_v10, 0.0  ;;  %v5065_v45 = vmax.f32 %v5043_v49, 0.0 }
0x12d1   :  { %7668 = vmatpush3.bf16.msra.mxu1 %v8263_v47 }
0x12d2   :  { %7690 = vmatpush3.bf16.msra.mxu0 %v8264_v11  ;;  %7697 = vmatprep.subr.bf16.mxu1 %v8265_v6  ;;  %v5095_v15 = vpack.c.bf16 %v5079_v8, %v5063_v44  ;;  %v5097_v29 = vpack.c.bf16 %v5081_v23, %v5065_v45 }
0x12d3   :  { %7719 = vmatprep.subr.bf16.mxu0 %v8266_v63 }
0x12d4   :  { %6329 = vmatmul.mubr.bf16.vlgmr.msra.gmra.mxu1 %v5091_v5 }
0x12d5   :  { %6370 = vmatmul.mubr.bf16.vlgmr.msra.gmra.mxu0 %v5093_v34  ;;  %7698 = vmatpush3.bf16.msra.mxu1 %v8267_v32 }
0x12d6   :  { %6410 = vmatprep.mubr.bf16.mxu1 %v5096_v53  ;;  %7720 = vmatpush3.bf16.msra.mxu0 %v8268_v12  ;;  %v7175_v12 = vld [vmem:[%s10249_s14 + $0x1] ss:$0 sm:$0xff] }
0x12d7   :  { %6451 = vmatprep.mubr.bf16.mxu0 %v5098_v36  ;;  %7699 = vmatprep.subr.bf16.mxu1 %v8269_v17 }
0x12d8   :  { %7721 = vmatprep.subr.bf16.mxu0 %v8270_v18 }
0x12d9   :  { %7700 = vmatpush3.bf16.msra.mxu1 %v8271_v13 }
0x12da   :  { %7722 = vmatpush3.bf16.msra.mxu0 %v8272_v24  ;;  %7701 = vmatprep.subr.bf16.mxu1 %v8273_v28 }
0x12db   :  { %7723 = vmatprep.subr.bf16.mxu0 %v8274_v33 }
0x12dd   :  { %7702 = vmatpush3.bf16.msra.mxu1 %v8275_v35 }
0x12de   :  { %7724 = vmatpush3.bf16.msra.mxu0 %v8276_v57  ;;  %7703 = vmatprep.subr.bf16.mxu1 %v8277_v42 }
0x12df   :  { %7725 = vmatprep.subr.bf16.mxu0 %v8278_v21 }
0x12e1   :  { %7704 = vmatpush3.bf16.msra.mxu1 %v8279_v22 }
0x12e2   :  { %7726 = vmatpush3.bf16.msra.mxu0 %v8280_v43  ;;  %7705 = vmatprep.subr.bf16.mxu1 %v8281_v48 }
0x12e3   :  { %7727 = vmatprep.subr.bf16.mxu0 %v8282_v9 }
0x12e5   :  { %7706 = vmatpush3.bf16.msra.mxu1 %v8283_v50 }
0x12e6   :  { %7728 = vmatpush3.bf16.msra.mxu0 %v8284_v58  ;;  %7707 = vmatprep.subr.bf16.mxu1 %v8285_v61 }
0x12e7   :  { %7729 = vmatprep.subr.bf16.mxu0 %v8286_v51 }
0x12e9   :  { %7708 = vmatpush3.bf16.msra.mxu1 %v8287_v52 }
0x12ea   :  { %7730 = vmatpush3.bf16.msra.mxu0 %v8288_v16  ;;  %7709 = vmatprep.subr.bf16.mxu1 %v8289_v54 }
0x12eb   :  { %7731 = vmatprep.subr.bf16.mxu0 %v8290_v39 }
0x12ed   :  { %7710 = vmatpush3.bf16.msra.mxu1 %v8291_v38 }
0x12ee   :  { %7732 = vmatpush3.bf16.msra.mxu0 %v8292_v60  ;;  %7711 = vmatprep.subr.bf16.mxu1 %v8293_v30 }
0x12ef   :  { %7733 = vmatprep.subr.bf16.mxu0 %v8294_v31 }
0x12f1   :  { %7712 = vmatpush3.bf16.msra.mxu1 %v8295_v19 }
0x12f2   :  { %7734 = vmatpush3.bf16.msra.mxu0 %v8296_v14  ;;  %7975 = vmatprep.subr.mxu1 %v8377_v3 }
0x12f4   :  { %6411 = vmatmul.mubr.bf16.vlgmr.msra.gmra.mxu1 %v5095_v15 }
0x12f5   :  { %6452 = vmatmul.mubr.bf16.vlgmr.msra.gmra.mxu0 %v5097_v29  ;;  %7983 = vmatprep.mubr.msk.f32.mxu1 %vm8378_vm2, %v8377_v3 }
0x1354   :  { %v7581_v62 = vpop.f32.mrf.mxu1  ;;  %v7603_v47 = vpop.f32.mrf.mxu0 }
0x1356   :  { %v7582_v25 = vpop.f32.mrf.mxu1  ;;  %v7604_v26 = vpop.f32.mrf.mxu0 }
0x1357   :  { %v7583_v7 = vadd.f32 %v7582_v25, %v7581_v62  ;;  %v7605_v13 = vadd.f32 %v7604_v26, %v7603_v47 }
0x1358   :  { %v7584_v11 = vpop.f32.mrf.mxu1  ;;  %v7606_v6 = vpop.f32.mrf.mxu0 }
0x1359   :  { %v6167_v17 = vadd.f32 %v7583_v7, %v7175_v12 }
0x135a   :  { %v7585_v27 = vpop.f32.mrf.mxu1  ;;  %v7607_v63 = vpop.f32.mrf.mxu0 }
0x135b   :  { %v7586_v53 = vadd.f32 %v7585_v27, %v7584_v11  ;;  %v6208_v28 = vadd.f32 %v7605_v13, %v6167_v17  ;;  %v7608_v42 = vadd.f32 %v7607_v63, %v7606_v6  ;;  %v6516_v17 = vld [vmem:[%s10252_s15] sm:$0xff] }
0x135d   :  { %v6170_v33 = vadd.f32 %v7586_v53, %v7175_v12 }
0x135f   :  { %v6211_v43 = vadd.f32 %v7608_v42, %v6170_v33 }
0x1374   :  { %v7625_v20 = vpop.f32.mrf.mxu1  ;;  %v7647_v1 = vpop.f32.mrf.mxu0 }
0x1376   :  { %v7626_v2 = vpop.f32.mrf.mxu1  ;;  %v7648_v0 = vpop.f32.mrf.mxu0 }
0x1377   :  { %v7627_v24 = vadd.f32 %v7626_v2, %v7625_v20  ;;  %v7649_v48 = vadd.f32 %v7648_v0, %v7647_v1 }
0x1378   :  { %v7628_v4 = vpop.f32.mrf.mxu1  ;;  %v7650_v32 = vpop.f32.mrf.mxu0 }
0x1379   :  { %v6249_v21 = vadd.f32 %v7627_v24, %v6208_v28 }
0x137a   :  { %v7629_v5 = vpop.f32.mrf.mxu1  ;;  %v7651_v46 = vpop.f32.mrf.mxu0 }
0x137b   :  { %v7630_v22 = vadd.f32 %v7629_v5, %v7628_v4  ;;  %v6290_v61 = vadd.f32 %v7649_v48, %v6249_v21  ;;  %v7652_v52 = vadd.f32 %v7651_v46, %v7650_v32  ;;  %v6517_v46 = vld [vmem:[%s10252_s15 + $0x8] sm:$0xff] }
0x137d   :  { %v6252_v51 = vadd.f32 %v7630_v22, %v6211_v43 }
0x137f   :  { %v6293_v59 = vadd.f32 %v7652_v52, %v6252_v51  ;;  %v7308_v51 = vld [vmem:[%s10253_s16] ss:$0 sm:$0xff] }
0x1394   :  { %v7669_v34 = vpop.f32.mrf.mxu1 }
0x1395   :  { %v7691_v18 = vpop.f32.mrf.mxu0 }
0x1396   :  { %v7670_v36 = vpop.f32.mrf.mxu1 }
0x1397   :  { %v7692_v35 = vpop.f32.mrf.mxu0  ;;  %v7671_v9 = vadd.f32 %v7670_v36, %v7669_v34  ;;  %v6518_v34 = vld [vmem:[%s10252_s15 + $0x10] sm:$0xff] }
0x1398   :  { %v7672_v57 = vpop.f32.mrf.mxu1  ;;  %v7693_v38 = vadd.f32 %v7692_v35, %v7691_v18  ;;  %v7306_v35 = vld [vmem:[%s10250_s9 + $0x1] ss:$0 sm:$0xff] }
0x1399   :  { %v7694_v50 = vpop.f32.mrf.mxu0  ;;  %v6331_v16 = vadd.f32 %v7671_v9, %v6290_v61 }
0x139a   :  { %v7673_v58 = vpop.f32.mrf.mxu1 }
0x139b   :  { %v7674_v54 = vadd.f32 %v7673_v58, %v7672_v57  ;;  %v7695_v39 = vpop.f32.mrf.mxu0  ;;  %v6372_v30 = vadd.f32 %v7693_v38, %v6331_v16 }
0x139c   :  { %v7696_v19 = vadd.f32 %v7695_v39, %v7694_v50 }
0x139d   :  { %v6334_v56 = vadd.f32 %v7674_v54, %v6293_v59 }
0x139f   :  { %v6375_v45 = vadd.f32 %v7696_v19, %v6334_v56 }
0x13b4   :  { %v7713_v55 = vpop.f32.mrf.mxu1 }
0x13b5   :  { %v7735_v10 = vpop.f32.mrf.mxu0 }
0x13b6   :  { %v7714_v60 = vpop.f32.mrf.mxu1 }
0x13b7   :  { %v7715_v31 = vadd.f32 %v7714_v60, %v7713_v55  ;;  %v7736_v41 = vpop.f32.mrf.mxu0 }
0x13b8   :  { %v7716_v49 = vpop.f32.mrf.mxu1  ;;  %v7737_v14 = vadd.f32 %v7736_v41, %v7735_v10 }
0x13b9   :  { %v6413_v8 = vadd.f32 %v7715_v31, %v6372_v30  ;;  %v7738_v23 = vpop.f32.mrf.mxu0 }
0x13ba   :  { %v7717_v44 = vpop.f32.mrf.mxu1 }
0x13bb   :  { %v6454_v15 = vadd.f32 %v7737_v14, %v6413_v8  ;;  %v7718_v29 = vadd.f32 %v7717_v44, %v7716_v49  ;;  %v7739_v62 = vpop.f32.mrf.mxu0 }
0x13bc   :  { %v7740_v25 = vadd.f32 %v7739_v62, %v7738_v23 }
0x13bd   :  { %v6416_v47 = vadd.f32 %v7718_v29, %v6375_v45  ;;  %v6460_v26 = vadd.f32 %v6454_v15, %v9657_v37 }
0x13bf   :  { %v6457_v11 = vadd.f32 %v7740_v25, %v6416_v47  ;;  %v6466_v6 = vsel %vm177_vm3, %v6460_v26, 0.0 }
0x13c0   :  { %6467 = vadd.xlane.f32.xlu1 %v6466_v6 }
0x13c1   :  { %v6461_v27 = vadd.f32 %v6457_v11, %v9659_v40  ;;  %v6519_v40 = vld [vmem:[%s10252_s15 + $0x18] sm:$0xff] }
0x13c2   :  { %7976 = vmatpush3.msra.mxu1 %v6519_v40 }
0x13c3   :  { %v6469_v20 = vsel %vm177_vm3, %v6461_v27, 0.0  ;;  %7977 = vmatprep.subr.mxu1 %v8377_v3 }
0x13c4   :  { %6470 = vadd.xlane.f32.xlu0 %v6469_v20  ;;  %7978 = vmatpush3.msra.mxu1 %v6518_v34 }
0x13c5   :  { %7979 = vmatprep.subr.mxu1 %v8377_v3 }
0x13c6   :  { %7980 = vmatpush3.msra.mxu1 %v6517_v46 }
0x13c7   :  { %7981 = vmatprep.subr.mxu1 %v8377_v3  ;;  %v7307_v3 = vld [vmem:[%s10251_s10 + $0x1] ss:$0 sm:$0xff] }
0x13c8   :  { %7982 = vmatpush3.msra.mxu1 %v6516_v17 }
0x1449   :  { %v6468_v63 = vpop.xlane.xlu1 %6467 }
0x144a   :  { %v6472_v1 = vmul.f32 0.03125, %v6468_v63 }
0x144c   :  { %v6474_v2 = vsub.f32 %v6460_v26, %v6472_v1 }
0x144d   :  { %v6471_v0 = vpop.xlane.xlu0 %6470 }
0x144e   :  { %v6473_v4 = vmul.f32 0.03125, %v6471_v0  ;;  %v6476_v32 = vmul.f32 %v6474_v2, %v6474_v2 }
0x1450   :  { %v6475_v5 = vsub.f32 %v6461_v27, %v6473_v4  ;;  %v6478_v7 = vsel %vm177_vm3, %v6476_v32, 0.0 }
0x1451   :  { %6479 = vadd.xlane.f32.xlu1 %v6478_v7 }
0x1452   :  { %v6477_v37 = vmul.f32 %v6475_v5, %v6475_v5 }
0x1454   :  { %v6481_v12 = vsel %vm177_vm3, %v6477_v37, 0.0 }
0x1455   :  { %6482 = vadd.xlane.f32.xlu0 %v6481_v12 }
0x14da   :  { %v6480_v53 = vpop.xlane.xlu1 %6479 }
0x14db   :  { %v6484_v18 = vmul.f32 0.03125, %v6480_v53 }
0x14dd   :  { %v6486_v36 = vadd.f32 1e-05, %v6484_v18 }
0x14de   :  { %v6483_v13 = vpop.xlane.xlu0 %6482 }
0x14df   :  { %8373 = vrsqrt.f32 %v6486_v36  ;;  %v6485_v24 = vmul.f32 0.03125, %v6483_v13 }
0x14e1   :  { %v6487_v28 = vadd.f32 1e-05, %v6485_v24 }
0x14e3   :  { %8375 = vrsqrt.f32 %v6487_v28 }
0x14ec   :  { %v8374_v33 = vpop.eup %8373 }
0x14ed   :  { %v6490_v57 = vmul.f32 %v8374_v33, %v6474_v2 }
0x14ef   :  { %v6498_v42 = vmul.f32 %v7306_v35, %v6490_v57 }
0x14f0   :  { %v8376_v21 = vpop.eup %8375 }
0x14f1   :  { %v6491_v22 = vmul.f32 %v8376_v21, %v6475_v5  ;;  %v6506_v48 = vadd.f32 %v7307_v3, %v6498_v42 }
0x14f3   :  { %v6499_v43 = vmul.f32 %v7306_v35, %v6491_v22  ;;  %v6509_v50 = vrot.slane %v6506_v48, 7 }
0x14f5   :  { %v6507_v9 = vadd.f32 %v7307_v3, %v6499_v43 }
0x14f7   :  { %v6512_v58 = vrot.slane %v6507_v9, 6 }
0x14f9   :  { %v6515_v61 = vsel %vm6514_vm7, %v6509_v50, %v6512_v58 }
0x14fa   :  { %7984 = vmatmul.mubr.msk.f32.vlgmr.msra.gmra.mxu1 %vm177_vm3, %v6515_v61 }
0x15ba   :  { %v6596_v52 = vpop.f32.mrf.mxu1 }
0x15bb   :  { %v6597_v16 = vadd.f32 %v7308_v51, %v6596_v52 }
0x15bc   :  { %v7985_v54 = vpop.f32.mrf.mxu1 }
0x15bd   :  { %6600 = vst [vmem:[%s10254_s17] sm:$0x3] %v6597_v16 }

</bundles_post_ra>
